<compile_context>
chip_gen: v7x
topology: tpu7x:2x2x1
jax: 0.10.0
libtpu: 0.0.40
codegen_flags: <defaults>
</compile_context>

<pallas_src>
import functools

import jax
import jax.numpy as jnp
from jax.experimental import pallas as pl
from jax.experimental.pallas import tpu as pltpu


# ---------------------------------------------------------------------------
# Fused Pallas kernel
# ---------------------------------------------------------------------------
def make_net_kernel(num_layers, T, B, H, V, O, O_pad):
    """Fused kernel: in-kernel embedding gather + all LSTM layers (both directions)
    + FC + log_softmax.

    Kernel ref layout (all VMEM):
      ids_ref                 : [T*B, 1] int32   time-major token ids
      emb_ref                 : [V, D]   bf16    embedding table
      per layer, per direction (fwd then bwd):
        layer 0 : wih [D,4H], whh [H,4H], b [1,4H]
        layer>0 : wih_fromF [H,4H], wih_fromB [H,4H], whh [H,4H], b [1,4H]
      fc_w_f [H, O_pad] bf16, fc_w_b [H, O_pad] bf16, fc_b [1, O_pad] f32
      out_ref                 : [B, O_pad] f32  (log-probs, padded lanes = -1e30)
    """
    TB = T * B
    bf16 = jnp.bfloat16

    def cell(gx, h, c, whh):
        """One LSTM step. gx: [B,4H] f32 (x-proj + bias), h/c: [B,H] f32, whh: [H,4H] bf16."""
        g = gx + jnp.dot(h.astype(bf16), whh, preferred_element_type=jnp.float32)
        # Full-vreg nonlinearities, then slice (2 EUP passes instead of 4 quarter passes).
        s = jax.nn.sigmoid(g)          # i, f, o gates
        th = jnp.tanh(g)               # g gate
        i_g = s[:, 0 * H:1 * H]
        f_g = s[:, 1 * H:2 * H]
        o_g = s[:, 3 * H:4 * H]
        g_g = th[:, 2 * H:3 * H]
        c_new = f_g * c + i_g * g_g
        h_new = o_g * jnp.tanh(c_new)
        return h_new, c_new

    def proj(xs, ws, bias):
        """Hoisted input projection: sum_k xs[k] @ ws[k] + bias  (bf16 x bf16 -> f32)."""
        g = None
        for xi, wi in zip(xs, ws):
            d = jnp.dot(xi, wi, preferred_element_type=jnp.float32)
            g = d if g is None else g + d
        return g + bias

    def kernel(ids_ref, emb_ref, *refs):
        # ---- unpack refs -------------------------------------------------
        idx = 0
        layer_refs = []
        for layer in range(num_layers):
            nper = 3 if layer == 0 else 4
            dirs = []
            for _ in range(2):                 # fwd, bwd
                dirs.append(refs[idx:idx + nper])
                idx += nper
            layer_refs.append(dirs)
        fcw_f_ref = refs[idx]
        fcw_b_ref = refs[idx + 1]
        fcb_ref = refs[idx + 2]
        out_ref = refs[idx + 3]

        # ---- in-kernel embedding gather (one-hot MXU matmul) --------------
        ids = ids_ref[...]                                              # [TB, 1] int32
        vocab_iota = jax.lax.broadcasted_iota(jnp.int32, (TB, V), 1)
        onehot = jnp.where(vocab_iota == ids, 1.0, 0.0).astype(bf16)    # [TB, V]
        x_f32 = jnp.dot(onehot, emb_ref[...],
                        preferred_element_type=jnp.float32)             # [TB, D] f32
        inputs = (x_f32.astype(bf16),)                                  # bf16 slab(s) for matmuls
        # last-timestep input blocks (for the single bwd step of the final layer)
        inputs_last = (x_f32[(T - 1) * B:T * B, :].astype(bf16),)

        h_f_last = None
        h_b_last = None

        for layer in range(num_layers):
            f_refs, b_refs = layer_refs[layer]
            if layer == 0:
                wih_f = (f_refs[0][...],)
                wih_b = (b_refs[0][...],)
                whh_f, bias_f = f_refs[1][...], f_refs[2][...]
                whh_b, bias_b = b_refs[1][...], b_refs[2][...]
            else:
                wih_f = (f_refs[0][...], f_refs[1][...])   # halves acting on (out_f, out_b)
                wih_b = (b_refs[0][...], b_refs[1][...])
                whh_f, bias_f = f_refs[2][...], f_refs[3][...]
                whh_b, bias_b = b_refs[2][...], b_refs[3][...]

            last_layer = layer == num_layers - 1
            zeros = jnp.zeros((B, H), jnp.float32)

            # Hoisted input projection: one big MXU call covers all T timesteps.
            gx_f = proj(inputs, wih_f, bias_f)                          # [TB, 4H] f32

            if last_layer:
                # Classifier only consumes timestep T-1:
                #   fwd contribution  = final step of the fwd recurrence
                #   bwd contribution  = FIRST step of the reversed recurrence (== lstm_out[:, -1, H:])
                gx_b_last = proj(inputs_last, wih_b, bias_b)            # [B, 4H]
                h_b_last, _ = cell(gx_b_last, zeros, zeros, whh_b)      # independent of fwd chain

                h_f, c_f = zeros, zeros
                for t in range(T):                                       # fully unrolled (T static)
                    h_f, c_f = cell(gx_f[t * B:(t + 1) * B, :], h_f, c_f, whh_f)
                h_f_last = h_f
            else:
                gx_b = proj(inputs, wih_b, bias_b)                      # [TB, 4H] f32
                # Interleave the two independent recurrences so the scheduler can overlap
                # MXU / EUP latency across the fwd and bwd chains.
                h_f, c_f = zeros, zeros
                h_b, c_b = zeros, zeros
                hs_f = [None] * T
                hs_b = [None] * T
                for t in range(T):                                       # fully unrolled
                    tb = T - 1 - t
                    h_f, c_f = cell(gx_f[t * B:(t + 1) * B, :], h_f, c_f, whh_f)
                    hs_f[t] = h_f
                    h_b, c_b = cell(gx_b[tb * B:(tb + 1) * B, :], h_b, c_b, whh_b)
                    hs_b[tb] = h_b
                # Keep the two direction slabs SEPARATE (no lane-offset-32 concat); the next
                # layer's split W_ih halves consume them directly.
                inputs = (jnp.concatenate(hs_f, axis=0).astype(bf16),   # [TB, H]
                          jnp.concatenate(hs_b, axis=0).astype(bf16))   # [TB, H]
                inputs_last = (hs_f[T - 1].astype(bf16), hs_b[T - 1].astype(bf16))

        # ---- FC + log_softmax (split fc_w: no [B, 2H] lane concat) ---------
        logits = (jnp.dot(h_f_last.astype(bf16), fcw_f_ref[...],
                          preferred_element_type=jnp.float32)
                  + jnp.dot(h_b_last.astype(bf16), fcw_b_ref[...],
                            preferred_element_type=jnp.float32)
                  + fcb_ref[...])                                       # [B, O_pad] f32
        col = jax.lax.broadcasted_iota(jnp.int32, (B, O_pad), 1)
        logits = jnp.where(col < O, logits, jnp.float32(-1e30))         # mask padded lanes
        m = jnp.max(logits, axis=-1, keepdims=True)
        z = logits - m
        lse = jnp.log(jnp.sum(jnp.exp(z), axis=-1, keepdims=True))
        out_ref[...] = z - lse                                           # lane-dense [B, 128] store

    return kernel


# ---------------------------------------------------------------------------
# Wrapper (single pallas_call; only tiny integer/weight prep outside)
# ---------------------------------------------------------------------------
def net_forward(params, x_tokens):
    """Forward pass matching PyTorch Net.forward (eval mode, dropout = identity)."""
    B, T = x_tokens.shape
    emb = params["embedding"]
    V, D = emb.shape
    H = params["lstm"][0]["fwd"]["w_hh"].shape[0]
    num_layers = len(params["lstm"])
    O = params["fc_w"].shape[1]
    O_pad = ((O + 127) // 128) * 128
    bf16 = jnp.bfloat16

    # Pad batch to a multiple of 8 (vreg sublanes); pad rows use token 0 and are sliced away.
    Bp = max(8, ((B + 7) // 8) * 8)
    ids = x_tokens.astype(jnp.int32)
    if Bp != B:
        ids = jnp.pad(ids, ((0, Bp - B), (0, 0)))
    ids_tm = jnp.transpose(ids, (1, 0)).reshape(T * Bp, 1)   # time-major [T*Bp, 1]

    # Flatten weights; matmul operands as bf16, biases f32. Layer>0 W_ih split into halves so the
    # kernel never concatenates the two direction slabs along lanes.
    flat_w = []
    for li, layer in enumerate(params["lstm"]):
        for direction in ("fwd", "bwd"):
            p = layer[direction]
            if li == 0:
                flat_w.append(p["w_ih"].astype(bf16))
            else:
                flat_w.append(p["w_ih"][:H].astype(bf16))   # acts on prev-layer fwd outputs
                flat_w.append(p["w_ih"][H:].astype(bf16))   # acts on prev-layer bwd outputs
            flat_w.append(p["w_hh"].astype(bf16))
            flat_w.append(p["b"].astype(jnp.float32))

    fc_w_pad = jnp.pad(params["fc_w"], ((0, 0), (0, O_pad - O)))
    fc_w_f = fc_w_pad[:H].astype(bf16)
    fc_w_b = fc_w_pad[H:].astype(bf16)
    fc_b_pad = jnp.pad(params["fc_b"], ((0, 0), (0, O_pad - O))).astype(jnp.float32)

    vmem = pl.BlockSpec(memory_space=pltpu.MemorySpace.VMEM)
    n_in = 2 + len(flat_w) + 3

    out = pl.pallas_call(
        make_net_kernel(num_layers, T, Bp, H, V, O, O_pad),
        out_shape=jax.ShapeDtypeStruct((Bp, O_pad), jnp.float32),
        in_specs=[vmem] * n_in,
        out_specs=vmem,
    )(ids_tm, emb.astype(bf16), *flat_w, fc_w_f, fc_w_b, fc_b_pad)

    return out[:B, :O]   # drop batch padding and lane padding


# ---------------------------------------------------------------------------
# Pure-JAX f32 reference (mirrors PyTorch Net.forward exactly)
# ---------------------------------------------------------------------------
def net_forward_ref(params, x_tokens):
    emb = params["embedding"]
    x = jnp.take(emb, x_tokens, axis=0)          # [B, T, D]
    B, T, _ = x.shape
    H = params["lstm"][0]["fwd"]["w_hh"].shape[0]

    def run_dir(seq, p, reverse):
        w_ih, w_hh, b = p["w_ih"], p["w_hh"], p["b"]
        order = range(T - 1, -1, -1) if reverse else range(T)
        h = jnp.zeros((B, H), jnp.float32)
        c = jnp.zeros((B, H), jnp.float32)
        outs = [None] * T
        for t in order:
            g = seq[:, t, :] @ w_ih + h @ w_hh + b
            i = jax.nn.sigmoid(g[:, 0 * H:1 * H])
            f = jax.nn.sigmoid(g[:, 1 * H:2 * H])
            gg = jnp.tanh(g[:, 2 * H:3 * H])
            o = jax.nn.sigmoid(g[:, 3 * H:4 * H])
            c = f * c + i * gg
            h = o * jnp.tanh(c)
            outs[t] = h
        return jnp.stack(outs, axis=1)           # [B, T, H]

    seq = x
    for layer in params["lstm"]:
        of = run_dir(seq, layer["fwd"], reverse=False)
        ob = run_dir(seq, layer["bwd"], reverse=True)
        seq = jnp.concatenate([of, ob], axis=-1)
    last = seq[:, -1, :]
    logits = last @ params["fc_w"] + params["fc_b"]
    return jax.nn.log_softmax(logits, axis=-1)


# ---------------------------------------------------------------------------
# Deterministic parameter construction
# ---------------------------------------------------------------------------
def init_params(key, word_count, embedding_dim, num_layers, hidden_size, output_size):
    keys = jax.random.split(key, 2 + num_layers * 2 * 3 + 2)
    kidx = iter(range(len(keys)))

    def unif(k, shape, scale):
        return jax.random.uniform(k, shape, jnp.float32, -scale, scale)

    params = {}
    params["embedding"] = jax.random.normal(
        keys[next(kidx)], (word_count, embedding_dim), jnp.float32
    )

    h_scale = 1.0 / jnp.sqrt(hidden_size)
    lstm_layers = []
    for layer in range(num_layers):
        din = embedding_dim if layer == 0 else 2 * hidden_size
        layer_p = {}
        for direction in ("fwd", "bwd"):
            w_ih = unif(keys[next(kidx)], (din, 4 * hidden_size), h_scale)
            w_hh = unif(keys[next(kidx)], (hidden_size, 4 * hidden_size), h_scale)
            b = unif(keys[next(kidx)], (1, 4 * hidden_size), h_scale)  # b_ih + b_hh merged
            layer_p[direction] = {"w_ih": w_ih, "w_hh": w_hh, "b": b}
        lstm_layers.append(layer_p)
    params["lstm"] = lstm_layers

    fc_scale = 1.0 / jnp.sqrt(2 * hidden_size)
    params["fc_w"] = unif(keys[next(kidx)], (2 * hidden_size, output_size), fc_scale)
    params["fc_b"] = unif(keys[next(kidx)], (1, output_size), fc_scale)
    return params


# ---------------------------------------------------------------------------
if __name__ == "__main__":
    WORD_COUNT = 64
    EMBEDDING_DIM = 32
    NUM_LAYERS = 2
    HIDDEN_SIZE = 32
    OUTPUT_SIZE = 16
    BATCH = 2
    SEQ = 8

    key = jax.random.PRNGKey(0)
    pkey, xkey = jax.random.split(key)
    params = init_params(
        pkey, WORD_COUNT, EMBEDDING_DIM, NUM_LAYERS, HIDDEN_SIZE, OUTPUT_SIZE
    )
    x_tokens = jax.random.randint(xkey, (BATCH, SEQ), 0, WORD_COUNT, dtype=jnp.int32)

    fwd = jax.jit(functools.partial(net_forward, params))
    log_probs = fwd(x_tokens)
    jax.block_until_ready(log_probs)

    assert log_probs.shape == (BATCH, OUTPUT_SIZE)
    assert bool(jnp.all(jnp.isfinite(log_probs)))
    # rows of log_softmax must exp-sum to 1
    assert jnp.allclose(jnp.sum(jnp.exp(log_probs), axis=1), 1.0, atol=1e-4)
    # parity vs pure-JAX f32 reference (loose tolerance: bf16 matmul operands in the kernel)
    ref = net_forward_ref(params, x_tokens)
    assert jnp.allclose(log_probs, ref, atol=5e-2, rtol=5e-2), (
        float(jnp.max(jnp.abs(log_probs - ref)))
    )
    print("KERNEL_OK")
</pallas_src>

<mosaic_0001>
module attributes {stable_mosaic.version = 11 : i64} {
  func.func @kernel(%arg0: memref<64x1xi32, #tpu.memory_space<vmem>>, %arg1: memref<64x32xbf16, #tpu.memory_space<vmem>>, %arg2: memref<32x128xbf16, #tpu.memory_space<vmem>>, %arg3: memref<32x128xbf16, #tpu.memory_space<vmem>>, %arg4: memref<1x128xf32, #tpu.memory_space<vmem>>, %arg5: memref<32x128xbf16, #tpu.memory_space<vmem>>, %arg6: memref<32x128xbf16, #tpu.memory_space<vmem>>, %arg7: memref<1x128xf32, #tpu.memory_space<vmem>>, %arg8: memref<32x128xbf16, #tpu.memory_space<vmem>>, %arg9: memref<32x128xbf16, #tpu.memory_space<vmem>>, %arg10: memref<32x128xbf16, #tpu.memory_space<vmem>>, %arg11: memref<1x128xf32, #tpu.memory_space<vmem>>, %arg12: memref<32x128xbf16, #tpu.memory_space<vmem>>, %arg13: memref<32x128xbf16, #tpu.memory_space<vmem>>, %arg14: memref<32x128xbf16, #tpu.memory_space<vmem>>, %arg15: memref<1x128xf32, #tpu.memory_space<vmem>>, %arg16: memref<32x128xbf16, #tpu.memory_space<vmem>>, %arg17: memref<32x128xbf16, #tpu.memory_space<vmem>>, %arg18: memref<1x128xf32, #tpu.memory_space<vmem>>, %arg19: memref<8x128xf32, #tpu.memory_space<vmem>>) attributes {dimension_semantics = [], scalar_prefetch = 0 : i64, scratch_operands = 0 : i64, tpu.core_type = #tpu.core_type<tc>} {
    %c0 = arith.constant 0 : index
    %c0_0 = arith.constant 0 : index
    %0 = vector.load %arg0[%c0, %c0_0] : memref<64x1xi32, #tpu.memory_space<vmem>>, vector<64x1xi32>
    %1 = tpu.iota {dimensions = array<i32: 1>} : vector<64x64xi32>
    %2 = vector.broadcast %0 : vector<64x1xi32> to vector<64x64xi32>
    %3 = arith.cmpi eq, %1, %2 : vector<64x64xi32>
    %cst = arith.constant 1.000000e+00 : f32
    %cst_1 = arith.constant 0.000000e+00 : f32
    %4 = vector.broadcast %cst : f32 to vector<64x64xf32>
    %5 = vector.broadcast %cst_1 : f32 to vector<64x64xf32>
    %6 = arith.select %3, %4, %5 : vector<64x64xi1>, vector<64x64xf32>
    %7 = arith.truncf %6 : vector<64x64xf32> to vector<64x64xbf16>
    %c0_2 = arith.constant 0 : index
    %c0_3 = arith.constant 0 : index
    %8 = vector.load %arg1[%c0_2, %c0_3] : memref<64x32xbf16, #tpu.memory_space<vmem>>, vector<64x32xbf16>
    %cst_4 = arith.constant dense<0.000000e+00> : vector<64x32xf32>
    %9 = tpu.matmul %7, %8, %cst_4 {dimension_numbers = #tpu.dot_dimension_numbers<[1], [0], [0], [1], [0, 0, 1, 1], [], []>} : vector<64x64xbf16>, vector<64x32xbf16>, vector<64x32xf32> -> vector<64x32xf32>
    %10 = arith.truncf %9 : vector<64x32xf32> to vector<64x32xbf16>
    %c0_5 = arith.constant 0 : index
    %c0_6 = arith.constant 0 : index
    %11 = vector.load %arg2[%c0_5, %c0_6] : memref<32x128xbf16, #tpu.memory_space<vmem>>, vector<32x128xbf16>
    %c0_7 = arith.constant 0 : index
    %c0_8 = arith.constant 0 : index
    %12 = vector.load %arg5[%c0_7, %c0_8] : memref<32x128xbf16, #tpu.memory_space<vmem>>, vector<32x128xbf16>
    %c0_9 = arith.constant 0 : index
    %c0_10 = arith.constant 0 : index
    %13 = vector.load %arg3[%c0_9, %c0_10] : memref<32x128xbf16, #tpu.memory_space<vmem>>, vector<32x128xbf16>
    %c0_11 = arith.constant 0 : index
    %c0_12 = arith.constant 0 : index
    %14 = vector.load %arg4[%c0_11, %c0_12] : memref<1x128xf32, #tpu.memory_space<vmem>>, vector<1x128xf32>
    %c0_13 = arith.constant 0 : index
    %c0_14 = arith.constant 0 : index
    %15 = vector.load %arg6[%c0_13, %c0_14] : memref<32x128xbf16, #tpu.memory_space<vmem>>, vector<32x128xbf16>
    %c0_15 = arith.constant 0 : index
    %c0_16 = arith.constant 0 : index
    %16 = vector.load %arg7[%c0_15, %c0_16] : memref<1x128xf32, #tpu.memory_space<vmem>>, vector<1x128xf32>
    %cst_17 = arith.constant 0.000000e+00 : f32
    %17 = vector.broadcast %cst_17 : f32 to vector<8x32xf32>
    %cst_18 = arith.constant dense<0.000000e+00> : vector<64x128xf32>
    %18 = tpu.matmul %10, %11, %cst_18 {dimension_numbers = #tpu.dot_dimension_numbers<[1], [0], [0], [1], [0, 0, 1, 1], [], []>} : vector<64x32xbf16>, vector<32x128xbf16>, vector<64x128xf32> -> vector<64x128xf32>
    %19 = vector.broadcast %14 : vector<1x128xf32> to vector<64x128xf32>
    %20 = arith.addf %18, %19 : vector<64x128xf32>
    %cst_19 = arith.constant dense<0.000000e+00> : vector<64x128xf32>
    %21 = tpu.matmul %10, %12, %cst_19 {dimension_numbers = #tpu.dot_dimension_numbers<[1], [0], [0], [1], [0, 0, 1, 1], [], []>} : vector<64x32xbf16>, vector<32x128xbf16>, vector<64x128xf32> -> vector<64x128xf32>
    %22 = vector.broadcast %16 : vector<1x128xf32> to vector<64x128xf32>
    %23 = arith.addf %21, %22 : vector<64x128xf32>
    %24 = vector.extract_strided_slice %20 {offsets = [0, 0], sizes = [8, 128], strides = [1, 1]} : vector<64x128xf32> to vector<8x128xf32>
    %25 = arith.truncf %17 : vector<8x32xf32> to vector<8x32xbf16>
    %cst_20 = arith.constant dense<0.000000e+00> : vector<8x128xf32>
    %26 = tpu.matmul %25, %13, %cst_20 {dimension_numbers = #tpu.dot_dimension_numbers<[1], [0], [0], [1], [0, 0, 1, 1], [], []>} : vector<8x32xbf16>, vector<32x128xbf16>, vector<8x128xf32> -> vector<8x128xf32>
    %27 = arith.addf %24, %26 : vector<8x128xf32>
    %28 = arith.negf %27 : vector<8x128xf32>
    %29 = math.exp %28 : vector<8x128xf32>
    %cst_21 = arith.constant 1.000000e+00 : f32
    %30 = vector.broadcast %cst_21 : f32 to vector<8x128xf32>
    %31 = arith.addf %30, %29 : vector<8x128xf32>
    %32 = arith.divf %30, %31 : vector<8x128xf32>
    %33 = math.tanh %27 : vector<8x128xf32>
    %34 = vector.extract_strided_slice %32 {offsets = [0, 0], sizes = [8, 32], strides = [1, 1]} : vector<8x128xf32> to vector<8x32xf32>
    %35 = vector.extract_strided_slice %32 {offsets = [0, 32], sizes = [8, 32], strides = [1, 1]} : vector<8x128xf32> to vector<8x32xf32>
    %36 = vector.extract_strided_slice %32 {offsets = [0, 96], sizes = [8, 32], strides = [1, 1]} : vector<8x128xf32> to vector<8x32xf32>
    %37 = vector.extract_strided_slice %33 {offsets = [0, 64], sizes = [8, 32], strides = [1, 1]} : vector<8x128xf32> to vector<8x32xf32>
    %38 = arith.mulf %35, %17 : vector<8x32xf32>
    %39 = arith.mulf %34, %37 : vector<8x32xf32>
    %40 = arith.addf %38, %39 : vector<8x32xf32>
    %41 = math.tanh %40 : vector<8x32xf32>
    %42 = arith.mulf %36, %41 : vector<8x32xf32>
    %43 = vector.extract_strided_slice %23 {offsets = [56, 0], sizes = [8, 128], strides = [1, 1]} : vector<64x128xf32> to vector<8x128xf32>
    %44 = arith.truncf %17 : vector<8x32xf32> to vector<8x32xbf16>
    %cst_22 = arith.constant dense<0.000000e+00> : vector<8x128xf32>
    %45 = tpu.matmul %44, %15, %cst_22 {dimension_numbers = #tpu.dot_dimension_numbers<[1], [0], [0], [1], [0, 0, 1, 1], [], []>} : vector<8x32xbf16>, vector<32x128xbf16>, vector<8x128xf32> -> vector<8x128xf32>
    %46 = arith.addf %43, %45 : vector<8x128xf32>
    %47 = arith.negf %46 : vector<8x128xf32>
    %48 = math.exp %47 : vector<8x128xf32>
    %cst_23 = arith.constant 1.000000e+00 : f32
    %49 = vector.broadcast %cst_23 : f32 to vector<8x128xf32>
    %50 = arith.addf %49, %48 : vector<8x128xf32>
    %51 = arith.divf %49, %50 : vector<8x128xf32>
    %52 = math.tanh %46 : vector<8x128xf32>
    %53 = vector.extract_strided_slice %51 {offsets = [0, 0], sizes = [8, 32], strides = [1, 1]} : vector<8x128xf32> to vector<8x32xf32>
    %54 = vector.extract_strided_slice %51 {offsets = [0, 32], sizes = [8, 32], strides = [1, 1]} : vector<8x128xf32> to vector<8x32xf32>
    %55 = vector.extract_strided_slice %51 {offsets = [0, 96], sizes = [8, 32], strides = [1, 1]} : vector<8x128xf32> to vector<8x32xf32>
    %56 = vector.extract_strided_slice %52 {offsets = [0, 64], sizes = [8, 32], strides = [1, 1]} : vector<8x128xf32> to vector<8x32xf32>
    %57 = arith.mulf %54, %17 : vector<8x32xf32>
    %58 = arith.mulf %53, %56 : vector<8x32xf32>
    %59 = arith.addf %57, %58 : vector<8x32xf32>
    %60 = math.tanh %59 : vector<8x32xf32>
    %61 = arith.mulf %55, %60 : vector<8x32xf32>
    %62 = vector.extract_strided_slice %20 {offsets = [8, 0], sizes = [8, 128], strides = [1, 1]} : vector<64x128xf32> to vector<8x128xf32>
    %63 = arith.truncf %42 : vector<8x32xf32> to vector<8x32xbf16>
    %cst_24 = arith.constant dense<0.000000e+00> : vector<8x128xf32>
    %64 = tpu.matmul %63, %13, %cst_24 {dimension_numbers = #tpu.dot_dimension_numbers<[1], [0], [0], [1], [0, 0, 1, 1], [], []>} : vector<8x32xbf16>, vector<32x128xbf16>, vector<8x128xf32> -> vector<8x128xf32>
    %65 = arith.addf %62, %64 : vector<8x128xf32>
    %66 = arith.negf %65 : vector<8x128xf32>
    %67 = math.exp %66 : vector<8x128xf32>
    %cst_25 = arith.constant 1.000000e+00 : f32
    %68 = vector.broadcast %cst_25 : f32 to vector<8x128xf32>
    %69 = arith.addf %68, %67 : vector<8x128xf32>
    %70 = arith.divf %68, %69 : vector<8x128xf32>
    %71 = math.tanh %65 : vector<8x128xf32>
    %72 = vector.extract_strided_slice %70 {offsets = [0, 0], sizes = [8, 32], strides = [1, 1]} : vector<8x128xf32> to vector<8x32xf32>
    %73 = vector.extract_strided_slice %70 {offsets = [0, 32], sizes = [8, 32], strides = [1, 1]} : vector<8x128xf32> to vector<8x32xf32>
    %74 = vector.extract_strided_slice %70 {offsets = [0, 96], sizes = [8, 32], strides = [1, 1]} : vector<8x128xf32> to vector<8x32xf32>
    %75 = vector.extract_strided_slice %71 {offsets = [0, 64], sizes = [8, 32], strides = [1, 1]} : vector<8x128xf32> to vector<8x32xf32>
    %76 = arith.mulf %73, %40 : vector<8x32xf32>
    %77 = arith.mulf %72, %75 : vector<8x32xf32>
    %78 = arith.addf %76, %77 : vector<8x32xf32>
    %79 = math.tanh %78 : vector<8x32xf32>
    %80 = arith.mulf %74, %79 : vector<8x32xf32>
    %81 = vector.extract_strided_slice %23 {offsets = [48, 0], sizes = [8, 128], strides = [1, 1]} : vector<64x128xf32> to vector<8x128xf32>
    %82 = arith.truncf %61 : vector<8x32xf32> to vector<8x32xbf16>
    %cst_26 = arith.constant dense<0.000000e+00> : vector<8x128xf32>
    %83 = tpu.matmul %82, %15, %cst_26 {dimension_numbers = #tpu.dot_dimension_numbers<[1], [0], [0], [1], [0, 0, 1, 1], [], []>} : vector<8x32xbf16>, vector<32x128xbf16>, vector<8x128xf32> -> vector<8x128xf32>
    %84 = arith.addf %81, %83 : vector<8x128xf32>
    %85 = arith.negf %84 : vector<8x128xf32>
    %86 = math.exp %85 : vector<8x128xf32>
    %cst_27 = arith.constant 1.000000e+00 : f32
    %87 = vector.broadcast %cst_27 : f32 to vector<8x128xf32>
    %88 = arith.addf %87, %86 : vector<8x128xf32>
    %89 = arith.divf %87, %88 : vector<8x128xf32>
    %90 = math.tanh %84 : vector<8x128xf32>
    %91 = vector.extract_strided_slice %89 {offsets = [0, 0], sizes = [8, 32], strides = [1, 1]} : vector<8x128xf32> to vector<8x32xf32>
    %92 = vector.extract_strided_slice %89 {offsets = [0, 32], sizes = [8, 32], strides = [1, 1]} : vector<8x128xf32> to vector<8x32xf32>
    %93 = vector.extract_strided_slice %89 {offsets = [0, 96], sizes = [8, 32], strides = [1, 1]} : vector<8x128xf32> to vector<8x32xf32>
    %94 = vector.extract_strided_slice %90 {offsets = [0, 64], sizes = [8, 32], strides = [1, 1]} : vector<8x128xf32> to vector<8x32xf32>
    %95 = arith.mulf %92, %59 : vector<8x32xf32>
    %96 = arith.mulf %91, %94 : vector<8x32xf32>
    %97 = arith.addf %95, %96 : vector<8x32xf32>
    %98 = math.tanh %97 : vector<8x32xf32>
    %99 = arith.mulf %93, %98 : vector<8x32xf32>
    %100 = vector.extract_strided_slice %20 {offsets = [16, 0], sizes = [8, 128], strides = [1, 1]} : vector<64x128xf32> to vector<8x128xf32>
    %101 = arith.truncf %80 : vector<8x32xf32> to vector<8x32xbf16>
    %cst_28 = arith.constant dense<0.000000e+00> : vector<8x128xf32>
    %102 = tpu.matmul %101, %13, %cst_28 {dimension_numbers = #tpu.dot_dimension_numbers<[1], [0], [0], [1], [0, 0, 1, 1], [], []>} : vector<8x32xbf16>, vector<32x128xbf16>, vector<8x128xf32> -> vector<8x128xf32>
    %103 = arith.addf %100, %102 : vector<8x128xf32>
    %104 = arith.negf %103 : vector<8x128xf32>
    %105 = math.exp %104 : vector<8x128xf32>
    %cst_29 = arith.constant 1.000000e+00 : f32
    %106 = vector.broadcast %cst_29 : f32 to vector<8x128xf32>
    %107 = arith.addf %106, %105 : vector<8x128xf32>
    %108 = arith.divf %106, %107 : vector<8x128xf32>
    %109 = math.tanh %103 : vector<8x128xf32>
    %110 = vector.extract_strided_slice %108 {offsets = [0, 0], sizes = [8, 32], strides = [1, 1]} : vector<8x128xf32> to vector<8x32xf32>
    %111 = vector.extract_strided_slice %108 {offsets = [0, 32], sizes = [8, 32], strides = [1, 1]} : vector<8x128xf32> to vector<8x32xf32>
    %112 = vector.extract_strided_slice %108 {offsets = [0, 96], sizes = [8, 32], strides = [1, 1]} : vector<8x128xf32> to vector<8x32xf32>
    %113 = vector.extract_strided_slice %109 {offsets = [0, 64], sizes = [8, 32], strides = [1, 1]} : vector<8x128xf32> to vector<8x32xf32>
    %114 = arith.mulf %111, %78 : vector<8x32xf32>
    %115 = arith.mulf %110, %113 : vector<8x32xf32>
    %116 = arith.addf %114, %115 : vector<8x32xf32>
    %117 = math.tanh %116 : vector<8x32xf32>
    %118 = arith.mulf %112, %117 : vector<8x32xf32>
    %119 = vector.extract_strided_slice %23 {offsets = [40, 0], sizes = [8, 128], strides = [1, 1]} : vector<64x128xf32> to vector<8x128xf32>
    %120 = arith.truncf %99 : vector<8x32xf32> to vector<8x32xbf16>
    %cst_30 = arith.constant dense<0.000000e+00> : vector<8x128xf32>
    %121 = tpu.matmul %120, %15, %cst_30 {dimension_numbers = #tpu.dot_dimension_numbers<[1], [0], [0], [1], [0, 0, 1, 1], [], []>} : vector<8x32xbf16>, vector<32x128xbf16>, vector<8x128xf32> -> vector<8x128xf32>
    %122 = arith.addf %119, %121 : vector<8x128xf32>
    %123 = arith.negf %122 : vector<8x128xf32>
    %124 = math.exp %123 : vector<8x128xf32>
    %cst_31 = arith.constant 1.000000e+00 : f32
    %125 = vector.broadcast %cst_31 : f32 to vector<8x128xf32>
    %126 = arith.addf %125, %124 : vector<8x128xf32>
    %127 = arith.divf %125, %126 : vector<8x128xf32>
    %128 = math.tanh %122 : vector<8x128xf32>
    %129 = vector.extract_strided_slice %127 {offsets = [0, 0], sizes = [8, 32], strides = [1, 1]} : vector<8x128xf32> to vector<8x32xf32>
    %130 = vector.extract_strided_slice %127 {offsets = [0, 32], sizes = [8, 32], strides = [1, 1]} : vector<8x128xf32> to vector<8x32xf32>
    %131 = vector.extract_strided_slice %127 {offsets = [0, 96], sizes = [8, 32], strides = [1, 1]} : vector<8x128xf32> to vector<8x32xf32>
    %132 = vector.extract_strided_slice %128 {offsets = [0, 64], sizes = [8, 32], strides = [1, 1]} : vector<8x128xf32> to vector<8x32xf32>
    %133 = arith.mulf %130, %97 : vector<8x32xf32>
    %134 = arith.mulf %129, %132 : vector<8x32xf32>
    %135 = arith.addf %133, %134 : vector<8x32xf32>
    %136 = math.tanh %135 : vector<8x32xf32>
    %137 = arith.mulf %131, %136 : vector<8x32xf32>
    %138 = vector.extract_strided_slice %20 {offsets = [24, 0], sizes = [8, 128], strides = [1, 1]} : vector<64x128xf32> to vector<8x128xf32>
    %139 = arith.truncf %118 : vector<8x32xf32> to vector<8x32xbf16>
    %cst_32 = arith.constant dense<0.000000e+00> : vector<8x128xf32>
    %140 = tpu.matmul %139, %13, %cst_32 {dimension_numbers = #tpu.dot_dimension_numbers<[1], [0], [0], [1], [0, 0, 1, 1], [], []>} : vector<8x32xbf16>, vector<32x128xbf16>, vector<8x128xf32> -> vector<8x128xf32>
    %141 = arith.addf %138, %140 : vector<8x128xf32>
    %142 = arith.negf %141 : vector<8x128xf32>
    %143 = math.exp %142 : vector<8x128xf32>
    %cst_33 = arith.constant 1.000000e+00 : f32
    %144 = vector.broadcast %cst_33 : f32 to vector<8x128xf32>
    %145 = arith.addf %144, %143 : vector<8x128xf32>
    %146 = arith.divf %144, %145 : vector<8x128xf32>
    %147 = math.tanh %141 : vector<8x128xf32>
    %148 = vector.extract_strided_slice %146 {offsets = [0, 0], sizes = [8, 32], strides = [1, 1]} : vector<8x128xf32> to vector<8x32xf32>
    %149 = vector.extract_strided_slice %146 {offsets = [0, 32], sizes = [8, 32], strides = [1, 1]} : vector<8x128xf32> to vector<8x32xf32>
    %150 = vector.extract_strided_slice %146 {offsets = [0, 96], sizes = [8, 32], strides = [1, 1]} : vector<8x128xf32> to vector<8x32xf32>
    %151 = vector.extract_strided_slice %147 {offsets = [0, 64], sizes = [8, 32], strides = [1, 1]} : vector<8x128xf32> to vector<8x32xf32>
    %152 = arith.mulf %149, %116 : vector<8x32xf32>
    %153 = arith.mulf %148, %151 : vector<8x32xf32>
    %154 = arith.addf %152, %153 : vector<8x32xf32>
    %155 = math.tanh %154 : vector<8x32xf32>
    %156 = arith.mulf %150, %155 : vector<8x32xf32>
    %157 = vector.extract_strided_slice %23 {offsets = [32, 0], sizes = [8, 128], strides = [1, 1]} : vector<64x128xf32> to vector<8x128xf32>
    %158 = arith.truncf %137 : vector<8x32xf32> to vector<8x32xbf16>
    %cst_34 = arith.constant dense<0.000000e+00> : vector<8x128xf32>
    %159 = tpu.matmul %158, %15, %cst_34 {dimension_numbers = #tpu.dot_dimension_numbers<[1], [0], [0], [1], [0, 0, 1, 1], [], []>} : vector<8x32xbf16>, vector<32x128xbf16>, vector<8x128xf32> -> vector<8x128xf32>
    %160 = arith.addf %157, %159 : vector<8x128xf32>
    %161 = arith.negf %160 : vector<8x128xf32>
    %162 = math.exp %161 : vector<8x128xf32>
    %cst_35 = arith.constant 1.000000e+00 : f32
    %163 = vector.broadcast %cst_35 : f32 to vector<8x128xf32>
    %164 = arith.addf %163, %162 : vector<8x128xf32>
    %165 = arith.divf %163, %164 : vector<8x128xf32>
    %166 = math.tanh %160 : vector<8x128xf32>
    %167 = vector.extract_strided_slice %165 {offsets = [0, 0], sizes = [8, 32], strides = [1, 1]} : vector<8x128xf32> to vector<8x32xf32>
    %168 = vector.extract_strided_slice %165 {offsets = [0, 32], sizes = [8, 32], strides = [1, 1]} : vector<8x128xf32> to vector<8x32xf32>
    %169 = vector.extract_strided_slice %165 {offsets = [0, 96], sizes = [8, 32], strides = [1, 1]} : vector<8x128xf32> to vector<8x32xf32>
    %170 = vector.extract_strided_slice %166 {offsets = [0, 64], sizes = [8, 32], strides = [1, 1]} : vector<8x128xf32> to vector<8x32xf32>
    %171 = arith.mulf %168, %135 : vector<8x32xf32>
    %172 = arith.mulf %167, %170 : vector<8x32xf32>
    %173 = arith.addf %171, %172 : vector<8x32xf32>
    %174 = math.tanh %173 : vector<8x32xf32>
    %175 = arith.mulf %169, %174 : vector<8x32xf32>
    %176 = vector.extract_strided_slice %20 {offsets = [32, 0], sizes = [8, 128], strides = [1, 1]} : vector<64x128xf32> to vector<8x128xf32>
    %177 = arith.truncf %156 : vector<8x32xf32> to vector<8x32xbf16>
    %cst_36 = arith.constant dense<0.000000e+00> : vector<8x128xf32>
    %178 = tpu.matmul %177, %13, %cst_36 {dimension_numbers = #tpu.dot_dimension_numbers<[1], [0], [0], [1], [0, 0, 1, 1], [], []>} : vector<8x32xbf16>, vector<32x128xbf16>, vector<8x128xf32> -> vector<8x128xf32>
    %179 = arith.addf %176, %178 : vector<8x128xf32>
    %180 = arith.negf %179 : vector<8x128xf32>
    %181 = math.exp %180 : vector<8x128xf32>
    %cst_37 = arith.constant 1.000000e+00 : f32
    %182 = vector.broadcast %cst_37 : f32 to vector<8x128xf32>
    %183 = arith.addf %182, %181 : vector<8x128xf32>
    %184 = arith.divf %182, %183 : vector<8x128xf32>
    %185 = math.tanh %179 : vector<8x128xf32>
    %186 = vector.extract_strided_slice %184 {offsets = [0, 0], sizes = [8, 32], strides = [1, 1]} : vector<8x128xf32> to vector<8x32xf32>
    %187 = vector.extract_strided_slice %184 {offsets = [0, 32], sizes = [8, 32], strides = [1, 1]} : vector<8x128xf32> to vector<8x32xf32>
    %188 = vector.extract_strided_slice %184 {offsets = [0, 96], sizes = [8, 32], strides = [1, 1]} : vector<8x128xf32> to vector<8x32xf32>
    %189 = vector.extract_strided_slice %185 {offsets = [0, 64], sizes = [8, 32], strides = [1, 1]} : vector<8x128xf32> to vector<8x32xf32>
    %190 = arith.mulf %187, %154 : vector<8x32xf32>
    %191 = arith.mulf %186, %189 : vector<8x32xf32>
    %192 = arith.addf %190, %191 : vector<8x32xf32>
    %193 = math.tanh %192 : vector<8x32xf32>
    %194 = arith.mulf %188, %193 : vector<8x32xf32>
    %195 = vector.extract_strided_slice %23 {offsets = [24, 0], sizes = [8, 128], strides = [1, 1]} : vector<64x128xf32> to vector<8x128xf32>
    %196 = arith.truncf %175 : vector<8x32xf32> to vector<8x32xbf16>
    %cst_38 = arith.constant dense<0.000000e+00> : vector<8x128xf32>
    %197 = tpu.matmul %196, %15, %cst_38 {dimension_numbers = #tpu.dot_dimension_numbers<[1], [0], [0], [1], [0, 0, 1, 1], [], []>} : vector<8x32xbf16>, vector<32x128xbf16>, vector<8x128xf32> -> vector<8x128xf32>
    %198 = arith.addf %195, %197 : vector<8x128xf32>
    %199 = arith.negf %198 : vector<8x128xf32>
    %200 = math.exp %199 : vector<8x128xf32>
    %cst_39 = arith.constant 1.000000e+00 : f32
    %201 = vector.broadcast %cst_39 : f32 to vector<8x128xf32>
    %202 = arith.addf %201, %200 : vector<8x128xf32>
    %203 = arith.divf %201, %202 : vector<8x128xf32>
    %204 = math.tanh %198 : vector<8x128xf32>
    %205 = vector.extract_strided_slice %203 {offsets = [0, 0], sizes = [8, 32], strides = [1, 1]} : vector<8x128xf32> to vector<8x32xf32>
    %206 = vector.extract_strided_slice %203 {offsets = [0, 32], sizes = [8, 32], strides = [1, 1]} : vector<8x128xf32> to vector<8x32xf32>
    %207 = vector.extract_strided_slice %203 {offsets = [0, 96], sizes = [8, 32], strides = [1, 1]} : vector<8x128xf32> to vector<8x32xf32>
    %208 = vector.extract_strided_slice %204 {offsets = [0, 64], sizes = [8, 32], strides = [1, 1]} : vector<8x128xf32> to vector<8x32xf32>
    %209 = arith.mulf %206, %173 : vector<8x32xf32>
    %210 = arith.mulf %205, %208 : vector<8x32xf32>
    %211 = arith.addf %209, %210 : vector<8x32xf32>
    %212 = math.tanh %211 : vector<8x32xf32>
    %213 = arith.mulf %207, %212 : vector<8x32xf32>
    %214 = vector.extract_strided_slice %20 {offsets = [40, 0], sizes = [8, 128], strides = [1, 1]} : vector<64x128xf32> to vector<8x128xf32>
    %215 = arith.truncf %194 : vector<8x32xf32> to vector<8x32xbf16>
    %cst_40 = arith.constant dense<0.000000e+00> : vector<8x128xf32>
    %216 = tpu.matmul %215, %13, %cst_40 {dimension_numbers = #tpu.dot_dimension_numbers<[1], [0], [0], [1], [0, 0, 1, 1], [], []>} : vector<8x32xbf16>, vector<32x128xbf16>, vector<8x128xf32> -> vector<8x128xf32>
    %217 = arith.addf %214, %216 : vector<8x128xf32>
    %218 = arith.negf %217 : vector<8x128xf32>
    %219 = math.exp %218 : vector<8x128xf32>
    %cst_41 = arith.constant 1.000000e+00 : f32
    %220 = vector.broadcast %cst_41 : f32 to vector<8x128xf32>
    %221 = arith.addf %220, %219 : vector<8x128xf32>
    %222 = arith.divf %220, %221 : vector<8x128xf32>
    %223 = math.tanh %217 : vector<8x128xf32>
    %224 = vector.extract_strided_slice %222 {offsets = [0, 0], sizes = [8, 32], strides = [1, 1]} : vector<8x128xf32> to vector<8x32xf32>
    %225 = vector.extract_strided_slice %222 {offsets = [0, 32], sizes = [8, 32], strides = [1, 1]} : vector<8x128xf32> to vector<8x32xf32>
    %226 = vector.extract_strided_slice %222 {offsets = [0, 96], sizes = [8, 32], strides = [1, 1]} : vector<8x128xf32> to vector<8x32xf32>
    %227 = vector.extract_strided_slice %223 {offsets = [0, 64], sizes = [8, 32], strides = [1, 1]} : vector<8x128xf32> to vector<8x32xf32>
    %228 = arith.mulf %225, %192 : vector<8x32xf32>
    %229 = arith.mulf %224, %227 : vector<8x32xf32>
    %230 = arith.addf %228, %229 : vector<8x32xf32>
    %231 = math.tanh %230 : vector<8x32xf32>
    %232 = arith.mulf %226, %231 : vector<8x32xf32>
    %233 = vector.extract_strided_slice %23 {offsets = [16, 0], sizes = [8, 128], strides = [1, 1]} : vector<64x128xf32> to vector<8x128xf32>
    %234 = arith.truncf %213 : vector<8x32xf32> to vector<8x32xbf16>
    %cst_42 = arith.constant dense<0.000000e+00> : vector<8x128xf32>
    %235 = tpu.matmul %234, %15, %cst_42 {dimension_numbers = #tpu.dot_dimension_numbers<[1], [0], [0], [1], [0, 0, 1, 1], [], []>} : vector<8x32xbf16>, vector<32x128xbf16>, vector<8x128xf32> -> vector<8x128xf32>
    %236 = arith.addf %233, %235 : vector<8x128xf32>
    %237 = arith.negf %236 : vector<8x128xf32>
    %238 = math.exp %237 : vector<8x128xf32>
    %cst_43 = arith.constant 1.000000e+00 : f32
    %239 = vector.broadcast %cst_43 : f32 to vector<8x128xf32>
    %240 = arith.addf %239, %238 : vector<8x128xf32>
    %241 = arith.divf %239, %240 : vector<8x128xf32>
    %242 = math.tanh %236 : vector<8x128xf32>
    %243 = vector.extract_strided_slice %241 {offsets = [0, 0], sizes = [8, 32], strides = [1, 1]} : vector<8x128xf32> to vector<8x32xf32>
    %244 = vector.extract_strided_slice %241 {offsets = [0, 32], sizes = [8, 32], strides = [1, 1]} : vector<8x128xf32> to vector<8x32xf32>
    %245 = vector.extract_strided_slice %241 {offsets = [0, 96], sizes = [8, 32], strides = [1, 1]} : vector<8x128xf32> to vector<8x32xf32>
    %246 = vector.extract_strided_slice %242 {offsets = [0, 64], sizes = [8, 32], strides = [1, 1]} : vector<8x128xf32> to vector<8x32xf32>
    %247 = arith.mulf %244, %211 : vector<8x32xf32>
    %248 = arith.mulf %243, %246 : vector<8x32xf32>
    %249 = arith.addf %247, %248 : vector<8x32xf32>
    %250 = math.tanh %249 : vector<8x32xf32>
    %251 = arith.mulf %245, %250 : vector<8x32xf32>
    %252 = vector.extract_strided_slice %20 {offsets = [48, 0], sizes = [8, 128], strides = [1, 1]} : vector<64x128xf32> to vector<8x128xf32>
    %253 = arith.truncf %232 : vector<8x32xf32> to vector<8x32xbf16>
    %cst_44 = arith.constant dense<0.000000e+00> : vector<8x128xf32>
    %254 = tpu.matmul %253, %13, %cst_44 {dimension_numbers = #tpu.dot_dimension_numbers<[1], [0], [0], [1], [0, 0, 1, 1], [], []>} : vector<8x32xbf16>, vector<32x128xbf16>, vector<8x128xf32> -> vector<8x128xf32>
    %255 = arith.addf %252, %254 : vector<8x128xf32>
    %256 = arith.negf %255 : vector<8x128xf32>
    %257 = math.exp %256 : vector<8x128xf32>
    %cst_45 = arith.constant 1.000000e+00 : f32
    %258 = vector.broadcast %cst_45 : f32 to vector<8x128xf32>
    %259 = arith.addf %258, %257 : vector<8x128xf32>
    %260 = arith.divf %258, %259 : vector<8x128xf32>
    %261 = math.tanh %255 : vector<8x128xf32>
    %262 = vector.extract_strided_slice %260 {offsets = [0, 0], sizes = [8, 32], strides = [1, 1]} : vector<8x128xf32> to vector<8x32xf32>
    %263 = vector.extract_strided_slice %260 {offsets = [0, 32], sizes = [8, 32], strides = [1, 1]} : vector<8x128xf32> to vector<8x32xf32>
    %264 = vector.extract_strided_slice %260 {offsets = [0, 96], sizes = [8, 32], strides = [1, 1]} : vector<8x128xf32> to vector<8x32xf32>
    %265 = vector.extract_strided_slice %261 {offsets = [0, 64], sizes = [8, 32], strides = [1, 1]} : vector<8x128xf32> to vector<8x32xf32>
    %266 = arith.mulf %263, %230 : vector<8x32xf32>
    %267 = arith.mulf %262, %265 : vector<8x32xf32>
    %268 = arith.addf %266, %267 : vector<8x32xf32>
    %269 = math.tanh %268 : vector<8x32xf32>
    %270 = arith.mulf %264, %269 : vector<8x32xf32>
    %271 = vector.extract_strided_slice %23 {offsets = [8, 0], sizes = [8, 128], strides = [1, 1]} : vector<64x128xf32> to vector<8x128xf32>
    %272 = arith.truncf %251 : vector<8x32xf32> to vector<8x32xbf16>
    %cst_46 = arith.constant dense<0.000000e+00> : vector<8x128xf32>
    %273 = tpu.matmul %272, %15, %cst_46 {dimension_numbers = #tpu.dot_dimension_numbers<[1], [0], [0], [1], [0, 0, 1, 1], [], []>} : vector<8x32xbf16>, vector<32x128xbf16>, vector<8x128xf32> -> vector<8x128xf32>
    %274 = arith.addf %271, %273 : vector<8x128xf32>
    %275 = arith.negf %274 : vector<8x128xf32>
    %276 = math.exp %275 : vector<8x128xf32>
    %cst_47 = arith.constant 1.000000e+00 : f32
    %277 = vector.broadcast %cst_47 : f32 to vector<8x128xf32>
    %278 = arith.addf %277, %276 : vector<8x128xf32>
    %279 = arith.divf %277, %278 : vector<8x128xf32>
    %280 = math.tanh %274 : vector<8x128xf32>
    %281 = vector.extract_strided_slice %279 {offsets = [0, 0], sizes = [8, 32], strides = [1, 1]} : vector<8x128xf32> to vector<8x32xf32>
    %282 = vector.extract_strided_slice %279 {offsets = [0, 32], sizes = [8, 32], strides = [1, 1]} : vector<8x128xf32> to vector<8x32xf32>
    %283 = vector.extract_strided_slice %279 {offsets = [0, 96], sizes = [8, 32], strides = [1, 1]} : vector<8x128xf32> to vector<8x32xf32>
    %284 = vector.extract_strided_slice %280 {offsets = [0, 64], sizes = [8, 32], strides = [1, 1]} : vector<8x128xf32> to vector<8x32xf32>
    %285 = arith.mulf %282, %249 : vector<8x32xf32>
    %286 = arith.mulf %281, %284 : vector<8x32xf32>
    %287 = arith.addf %285, %286 : vector<8x32xf32>
    %288 = math.tanh %287 : vector<8x32xf32>
    %289 = arith.mulf %283, %288 : vector<8x32xf32>
    %290 = vector.extract_strided_slice %20 {offsets = [56, 0], sizes = [8, 128], strides = [1, 1]} : vector<64x128xf32> to vector<8x128xf32>
    %291 = arith.truncf %270 : vector<8x32xf32> to vector<8x32xbf16>
    %cst_48 = arith.constant dense<0.000000e+00> : vector<8x128xf32>
    %292 = tpu.matmul %291, %13, %cst_48 {dimension_numbers = #tpu.dot_dimension_numbers<[1], [0], [0], [1], [0, 0, 1, 1], [], []>} : vector<8x32xbf16>, vector<32x128xbf16>, vector<8x128xf32> -> vector<8x128xf32>
    %293 = arith.addf %290, %292 : vector<8x128xf32>
    %294 = arith.negf %293 : vector<8x128xf32>
    %295 = math.exp %294 : vector<8x128xf32>
    %cst_49 = arith.constant 1.000000e+00 : f32
    %296 = vector.broadcast %cst_49 : f32 to vector<8x128xf32>
    %297 = arith.addf %296, %295 : vector<8x128xf32>
    %298 = arith.divf %296, %297 : vector<8x128xf32>
    %299 = math.tanh %293 : vector<8x128xf32>
    %300 = vector.extract_strided_slice %298 {offsets = [0, 0], sizes = [8, 32], strides = [1, 1]} : vector<8x128xf32> to vector<8x32xf32>
    %301 = vector.extract_strided_slice %298 {offsets = [0, 32], sizes = [8, 32], strides = [1, 1]} : vector<8x128xf32> to vector<8x32xf32>
    %302 = vector.extract_strided_slice %298 {offsets = [0, 96], sizes = [8, 32], strides = [1, 1]} : vector<8x128xf32> to vector<8x32xf32>
    %303 = vector.extract_strided_slice %299 {offsets = [0, 64], sizes = [8, 32], strides = [1, 1]} : vector<8x128xf32> to vector<8x32xf32>
    %304 = arith.mulf %301, %268 : vector<8x32xf32>
    %305 = arith.mulf %300, %303 : vector<8x32xf32>
    %306 = arith.addf %304, %305 : vector<8x32xf32>
    %307 = math.tanh %306 : vector<8x32xf32>
    %308 = arith.mulf %302, %307 : vector<8x32xf32>
    %309 = vector.extract_strided_slice %23 {offsets = [0, 0], sizes = [8, 128], strides = [1, 1]} : vector<64x128xf32> to vector<8x128xf32>
    %310 = arith.truncf %289 : vector<8x32xf32> to vector<8x32xbf16>
    %cst_50 = arith.constant dense<0.000000e+00> : vector<8x128xf32>
    %311 = tpu.matmul %310, %15, %cst_50 {dimension_numbers = #tpu.dot_dimension_numbers<[1], [0], [0], [1], [0, 0, 1, 1], [], []>} : vector<8x32xbf16>, vector<32x128xbf16>, vector<8x128xf32> -> vector<8x128xf32>
    %312 = arith.addf %309, %311 : vector<8x128xf32>
    %313 = arith.negf %312 : vector<8x128xf32>
    %314 = math.exp %313 : vector<8x128xf32>
    %cst_51 = arith.constant 1.000000e+00 : f32
    %315 = vector.broadcast %cst_51 : f32 to vector<8x128xf32>
    %316 = arith.addf %315, %314 : vector<8x128xf32>
    %317 = arith.divf %315, %316 : vector<8x128xf32>
    %318 = math.tanh %312 : vector<8x128xf32>
    %319 = vector.extract_strided_slice %317 {offsets = [0, 0], sizes = [8, 32], strides = [1, 1]} : vector<8x128xf32> to vector<8x32xf32>
    %320 = vector.extract_strided_slice %317 {offsets = [0, 32], sizes = [8, 32], strides = [1, 1]} : vector<8x128xf32> to vector<8x32xf32>
    %321 = vector.extract_strided_slice %317 {offsets = [0, 96], sizes = [8, 32], strides = [1, 1]} : vector<8x128xf32> to vector<8x32xf32>
    %322 = vector.extract_strided_slice %318 {offsets = [0, 64], sizes = [8, 32], strides = [1, 1]} : vector<8x128xf32> to vector<8x32xf32>
    %323 = arith.mulf %320, %287 : vector<8x32xf32>
    %324 = arith.mulf %319, %322 : vector<8x32xf32>
    %325 = arith.addf %323, %324 : vector<8x32xf32>
    %326 = math.tanh %325 : vector<8x32xf32>
    %327 = arith.mulf %321, %326 : vector<8x32xf32>
    %328 = tpu.concatenate %42, %80, %118, %156, %194, %232, %270, %308 in 0 : vector<8x32xf32>, vector<8x32xf32>, vector<8x32xf32>, vector<8x32xf32>, vector<8x32xf32>, vector<8x32xf32>, vector<8x32xf32>, vector<8x32xf32> -> vector<64x32xf32>
    %329 = arith.truncf %328 : vector<64x32xf32> to vector<64x32xbf16>
    %330 = tpu.concatenate %327, %289, %251, %213, %175, %137, %99, %61 in 0 : vector<8x32xf32>, vector<8x32xf32>, vector<8x32xf32>, vector<8x32xf32>, vector<8x32xf32>, vector<8x32xf32>, vector<8x32xf32>, vector<8x32xf32> -> vector<64x32xf32>
    %331 = arith.truncf %330 : vector<64x32xf32> to vector<64x32xbf16>
    %332 = arith.truncf %308 : vector<8x32xf32> to vector<8x32xbf16>
    %333 = arith.truncf %61 : vector<8x32xf32> to vector<8x32xbf16>
    %c0_52 = arith.constant 0 : index
    %c0_53 = arith.constant 0 : index
    %334 = vector.load %arg8[%c0_52, %c0_53] : memref<32x128xbf16, #tpu.memory_space<vmem>>, vector<32x128xbf16>
    %c0_54 = arith.constant 0 : index
    %c0_55 = arith.constant 0 : index
    %335 = vector.load %arg9[%c0_54, %c0_55] : memref<32x128xbf16, #tpu.memory_space<vmem>>, vector<32x128xbf16>
    %c0_56 = arith.constant 0 : index
    %c0_57 = arith.constant 0 : index
    %336 = vector.load %arg12[%c0_56, %c0_57] : memref<32x128xbf16, #tpu.memory_space<vmem>>, vector<32x128xbf16>
    %c0_58 = arith.constant 0 : index
    %c0_59 = arith.constant 0 : index
    %337 = vector.load %arg13[%c0_58, %c0_59] : memref<32x128xbf16, #tpu.memory_space<vmem>>, vector<32x128xbf16>
    %c0_60 = arith.constant 0 : index
    %c0_61 = arith.constant 0 : index
    %338 = vector.load %arg10[%c0_60, %c0_61] : memref<32x128xbf16, #tpu.memory_space<vmem>>, vector<32x128xbf16>
    %c0_62 = arith.constant 0 : index
    %c0_63 = arith.constant 0 : index
    %339 = vector.load %arg11[%c0_62, %c0_63] : memref<1x128xf32, #tpu.memory_space<vmem>>, vector<1x128xf32>
    %c0_64 = arith.constant 0 : index
    %c0_65 = arith.constant 0 : index
    %340 = vector.load %arg14[%c0_64, %c0_65] : memref<32x128xbf16, #tpu.memory_space<vmem>>, vector<32x128xbf16>
    %c0_66 = arith.constant 0 : index
    %c0_67 = arith.constant 0 : index
    %341 = vector.load %arg15[%c0_66, %c0_67] : memref<1x128xf32, #tpu.memory_space<vmem>>, vector<1x128xf32>
    %cst_68 = arith.constant 0.000000e+00 : f32
    %342 = vector.broadcast %cst_68 : f32 to vector<8x32xf32>
    %cst_69 = arith.constant dense<0.000000e+00> : vector<64x128xf32>
    %343 = tpu.matmul %329, %334, %cst_69 {dimension_numbers = #tpu.dot_dimension_numbers<[1], [0], [0], [1], [0, 0, 1, 1], [], []>} : vector<64x32xbf16>, vector<32x128xbf16>, vector<64x128xf32> -> vector<64x128xf32>
    %cst_70 = arith.constant dense<0.000000e+00> : vector<64x128xf32>
    %344 = tpu.matmul %331, %335, %cst_70 {dimension_numbers = #tpu.dot_dimension_numbers<[1], [0], [0], [1], [0, 0, 1, 1], [], []>} : vector<64x32xbf16>, vector<32x128xbf16>, vector<64x128xf32> -> vector<64x128xf32>
    %345 = arith.addf %343, %344 : vector<64x128xf32>
    %346 = vector.broadcast %339 : vector<1x128xf32> to vector<64x128xf32>
    %347 = arith.addf %345, %346 : vector<64x128xf32>
    %cst_71 = arith.constant dense<0.000000e+00> : vector<8x128xf32>
    %348 = tpu.matmul %332, %336, %cst_71 {dimension_numbers = #tpu.dot_dimension_numbers<[1], [0], [0], [1], [0, 0, 1, 1], [], []>} : vector<8x32xbf16>, vector<32x128xbf16>, vector<8x128xf32> -> vector<8x128xf32>
    %cst_72 = arith.constant dense<0.000000e+00> : vector<8x128xf32>
    %349 = tpu.matmul %333, %337, %cst_72 {dimension_numbers = #tpu.dot_dimension_numbers<[1], [0], [0], [1], [0, 0, 1, 1], [], []>} : vector<8x32xbf16>, vector<32x128xbf16>, vector<8x128xf32> -> vector<8x128xf32>
    %350 = arith.addf %348, %349 : vector<8x128xf32>
    %351 = vector.broadcast %341 : vector<1x128xf32> to vector<8x128xf32>
    %352 = arith.addf %350, %351 : vector<8x128xf32>
    %353 = arith.truncf %342 : vector<8x32xf32> to vector<8x32xbf16>
    %cst_73 = arith.constant dense<0.000000e+00> : vector<8x128xf32>
    %354 = tpu.matmul %353, %340, %cst_73 {dimension_numbers = #tpu.dot_dimension_numbers<[1], [0], [0], [1], [0, 0, 1, 1], [], []>} : vector<8x32xbf16>, vector<32x128xbf16>, vector<8x128xf32> -> vector<8x128xf32>
    %355 = arith.addf %352, %354 : vector<8x128xf32>
    %356 = arith.negf %355 : vector<8x128xf32>
    %357 = math.exp %356 : vector<8x128xf32>
    %cst_74 = arith.constant 1.000000e+00 : f32
    %358 = vector.broadcast %cst_74 : f32 to vector<8x128xf32>
    %359 = arith.addf %358, %357 : vector<8x128xf32>
    %360 = arith.divf %358, %359 : vector<8x128xf32>
    %361 = math.tanh %355 : vector<8x128xf32>
    %362 = vector.extract_strided_slice %360 {offsets = [0, 0], sizes = [8, 32], strides = [1, 1]} : vector<8x128xf32> to vector<8x32xf32>
    %363 = vector.extract_strided_slice %360 {offsets = [0, 32], sizes = [8, 32], strides = [1, 1]} : vector<8x128xf32> to vector<8x32xf32>
    %364 = vector.extract_strided_slice %360 {offsets = [0, 96], sizes = [8, 32], strides = [1, 1]} : vector<8x128xf32> to vector<8x32xf32>
    %365 = vector.extract_strided_slice %361 {offsets = [0, 64], sizes = [8, 32], strides = [1, 1]} : vector<8x128xf32> to vector<8x32xf32>
    %366 = arith.mulf %363, %342 : vector<8x32xf32>
    %367 = arith.mulf %362, %365 : vector<8x32xf32>
    %368 = arith.addf %366, %367 : vector<8x32xf32>
    %369 = math.tanh %368 : vector<8x32xf32>
    %370 = arith.mulf %364, %369 : vector<8x32xf32>
    %371 = vector.extract_strided_slice %347 {offsets = [0, 0], sizes = [8, 128], strides = [1, 1]} : vector<64x128xf32> to vector<8x128xf32>
    %372 = arith.truncf %342 : vector<8x32xf32> to vector<8x32xbf16>
    %cst_75 = arith.constant dense<0.000000e+00> : vector<8x128xf32>
    %373 = tpu.matmul %372, %338, %cst_75 {dimension_numbers = #tpu.dot_dimension_numbers<[1], [0], [0], [1], [0, 0, 1, 1], [], []>} : vector<8x32xbf16>, vector<32x128xbf16>, vector<8x128xf32> -> vector<8x128xf32>
    %374 = arith.addf %371, %373 : vector<8x128xf32>
    %375 = arith.negf %374 : vector<8x128xf32>
    %376 = math.exp %375 : vector<8x128xf32>
    %cst_76 = arith.constant 1.000000e+00 : f32
    %377 = vector.broadcast %cst_76 : f32 to vector<8x128xf32>
    %378 = arith.addf %377, %376 : vector<8x128xf32>
    %379 = arith.divf %377, %378 : vector<8x128xf32>
    %380 = math.tanh %374 : vector<8x128xf32>
    %381 = vector.extract_strided_slice %379 {offsets = [0, 0], sizes = [8, 32], strides = [1, 1]} : vector<8x128xf32> to vector<8x32xf32>
    %382 = vector.extract_strided_slice %379 {offsets = [0, 32], sizes = [8, 32], strides = [1, 1]} : vector<8x128xf32> to vector<8x32xf32>
    %383 = vector.extract_strided_slice %379 {offsets = [0, 96], sizes = [8, 32], strides = [1, 1]} : vector<8x128xf32> to vector<8x32xf32>
    %384 = vector.extract_strided_slice %380 {offsets = [0, 64], sizes = [8, 32], strides = [1, 1]} : vector<8x128xf32> to vector<8x32xf32>
    %385 = arith.mulf %382, %342 : vector<8x32xf32>
    %386 = arith.mulf %381, %384 : vector<8x32xf32>
    %387 = arith.addf %385, %386 : vector<8x32xf32>
    %388 = math.tanh %387 : vector<8x32xf32>
    %389 = arith.mulf %383, %388 : vector<8x32xf32>
    %390 = vector.extract_strided_slice %347 {offsets = [8, 0], sizes = [8, 128], strides = [1, 1]} : vector<64x128xf32> to vector<8x128xf32>
    %391 = arith.truncf %389 : vector<8x32xf32> to vector<8x32xbf16>
    %cst_77 = arith.constant dense<0.000000e+00> : vector<8x128xf32>
    %392 = tpu.matmul %391, %338, %cst_77 {dimension_numbers = #tpu.dot_dimension_numbers<[1], [0], [0], [1], [0, 0, 1, 1], [], []>} : vector<8x32xbf16>, vector<32x128xbf16>, vector<8x128xf32> -> vector<8x128xf32>
    %393 = arith.addf %390, %392 : vector<8x128xf32>
    %394 = arith.negf %393 : vector<8x128xf32>
    %395 = math.exp %394 : vector<8x128xf32>
    %cst_78 = arith.constant 1.000000e+00 : f32
    %396 = vector.broadcast %cst_78 : f32 to vector<8x128xf32>
    %397 = arith.addf %396, %395 : vector<8x128xf32>
    %398 = arith.divf %396, %397 : vector<8x128xf32>
    %399 = math.tanh %393 : vector<8x128xf32>
    %400 = vector.extract_strided_slice %398 {offsets = [0, 0], sizes = [8, 32], strides = [1, 1]} : vector<8x128xf32> to vector<8x32xf32>
    %401 = vector.extract_strided_slice %398 {offsets = [0, 32], sizes = [8, 32], strides = [1, 1]} : vector<8x128xf32> to vector<8x32xf32>
    %402 = vector.extract_strided_slice %398 {offsets = [0, 96], sizes = [8, 32], strides = [1, 1]} : vector<8x128xf32> to vector<8x32xf32>
    %403 = vector.extract_strided_slice %399 {offsets = [0, 64], sizes = [8, 32], strides = [1, 1]} : vector<8x128xf32> to vector<8x32xf32>
    %404 = arith.mulf %401, %387 : vector<8x32xf32>
    %405 = arith.mulf %400, %403 : vector<8x32xf32>
    %406 = arith.addf %404, %405 : vector<8x32xf32>
    %407 = math.tanh %406 : vector<8x32xf32>
    %408 = arith.mulf %402, %407 : vector<8x32xf32>
    %409 = vector.extract_strided_slice %347 {offsets = [16, 0], sizes = [8, 128], strides = [1, 1]} : vector<64x128xf32> to vector<8x128xf32>
    %410 = arith.truncf %408 : vector<8x32xf32> to vector<8x32xbf16>
    %cst_79 = arith.constant dense<0.000000e+00> : vector<8x128xf32>
    %411 = tpu.matmul %410, %338, %cst_79 {dimension_numbers = #tpu.dot_dimension_numbers<[1], [0], [0], [1], [0, 0, 1, 1], [], []>} : vector<8x32xbf16>, vector<32x128xbf16>, vector<8x128xf32> -> vector<8x128xf32>
    %412 = arith.addf %409, %411 : vector<8x128xf32>
    %413 = arith.negf %412 : vector<8x128xf32>
    %414 = math.exp %413 : vector<8x128xf32>
    %cst_80 = arith.constant 1.000000e+00 : f32
    %415 = vector.broadcast %cst_80 : f32 to vector<8x128xf32>
    %416 = arith.addf %415, %414 : vector<8x128xf32>
    %417 = arith.divf %415, %416 : vector<8x128xf32>
    %418 = math.tanh %412 : vector<8x128xf32>
    %419 = vector.extract_strided_slice %417 {offsets = [0, 0], sizes = [8, 32], strides = [1, 1]} : vector<8x128xf32> to vector<8x32xf32>
    %420 = vector.extract_strided_slice %417 {offsets = [0, 32], sizes = [8, 32], strides = [1, 1]} : vector<8x128xf32> to vector<8x32xf32>
    %421 = vector.extract_strided_slice %417 {offsets = [0, 96], sizes = [8, 32], strides = [1, 1]} : vector<8x128xf32> to vector<8x32xf32>
    %422 = vector.extract_strided_slice %418 {offsets = [0, 64], sizes = [8, 32], strides = [1, 1]} : vector<8x128xf32> to vector<8x32xf32>
    %423 = arith.mulf %420, %406 : vector<8x32xf32>
    %424 = arith.mulf %419, %422 : vector<8x32xf32>
    %425 = arith.addf %423, %424 : vector<8x32xf32>
    %426 = math.tanh %425 : vector<8x32xf32>
    %427 = arith.mulf %421, %426 : vector<8x32xf32>
    %428 = vector.extract_strided_slice %347 {offsets = [24, 0], sizes = [8, 128], strides = [1, 1]} : vector<64x128xf32> to vector<8x128xf32>
    %429 = arith.truncf %427 : vector<8x32xf32> to vector<8x32xbf16>
    %cst_81 = arith.constant dense<0.000000e+00> : vector<8x128xf32>
    %430 = tpu.matmul %429, %338, %cst_81 {dimension_numbers = #tpu.dot_dimension_numbers<[1], [0], [0], [1], [0, 0, 1, 1], [], []>} : vector<8x32xbf16>, vector<32x128xbf16>, vector<8x128xf32> -> vector<8x128xf32>
    %431 = arith.addf %428, %430 : vector<8x128xf32>
    %432 = arith.negf %431 : vector<8x128xf32>
    %433 = math.exp %432 : vector<8x128xf32>
    %cst_82 = arith.constant 1.000000e+00 : f32
    %434 = vector.broadcast %cst_82 : f32 to vector<8x128xf32>
    %435 = arith.addf %434, %433 : vector<8x128xf32>
    %436 = arith.divf %434, %435 : vector<8x128xf32>
    %437 = math.tanh %431 : vector<8x128xf32>
    %438 = vector.extract_strided_slice %436 {offsets = [0, 0], sizes = [8, 32], strides = [1, 1]} : vector<8x128xf32> to vector<8x32xf32>
    %439 = vector.extract_strided_slice %436 {offsets = [0, 32], sizes = [8, 32], strides = [1, 1]} : vector<8x128xf32> to vector<8x32xf32>
    %440 = vector.extract_strided_slice %436 {offsets = [0, 96], sizes = [8, 32], strides = [1, 1]} : vector<8x128xf32> to vector<8x32xf32>
    %441 = vector.extract_strided_slice %437 {offsets = [0, 64], sizes = [8, 32], strides = [1, 1]} : vector<8x128xf32> to vector<8x32xf32>
    %442 = arith.mulf %439, %425 : vector<8x32xf32>
    %443 = arith.mulf %438, %441 : vector<8x32xf32>
    %444 = arith.addf %442, %443 : vector<8x32xf32>
    %445 = math.tanh %444 : vector<8x32xf32>
    %446 = arith.mulf %440, %445 : vector<8x32xf32>
    %447 = vector.extract_strided_slice %347 {offsets = [32, 0], sizes = [8, 128], strides = [1, 1]} : vector<64x128xf32> to vector<8x128xf32>
    %448 = arith.truncf %446 : vector<8x32xf32> to vector<8x32xbf16>
    %cst_83 = arith.constant dense<0.000000e+00> : vector<8x128xf32>
    %449 = tpu.matmul %448, %338, %cst_83 {dimension_numbers = #tpu.dot_dimension_numbers<[1], [0], [0], [1], [0, 0, 1, 1], [], []>} : vector<8x32xbf16>, vector<32x128xbf16>, vector<8x128xf32> -> vector<8x128xf32>
    %450 = arith.addf %447, %449 : vector<8x128xf32>
    %451 = arith.negf %450 : vector<8x128xf32>
    %452 = math.exp %451 : vector<8x128xf32>
    %cst_84 = arith.constant 1.000000e+00 : f32
    %453 = vector.broadcast %cst_84 : f32 to vector<8x128xf32>
    %454 = arith.addf %453, %452 : vector<8x128xf32>
    %455 = arith.divf %453, %454 : vector<8x128xf32>
    %456 = math.tanh %450 : vector<8x128xf32>
    %457 = vector.extract_strided_slice %455 {offsets = [0, 0], sizes = [8, 32], strides = [1, 1]} : vector<8x128xf32> to vector<8x32xf32>
    %458 = vector.extract_strided_slice %455 {offsets = [0, 32], sizes = [8, 32], strides = [1, 1]} : vector<8x128xf32> to vector<8x32xf32>
    %459 = vector.extract_strided_slice %455 {offsets = [0, 96], sizes = [8, 32], strides = [1, 1]} : vector<8x128xf32> to vector<8x32xf32>
    %460 = vector.extract_strided_slice %456 {offsets = [0, 64], sizes = [8, 32], strides = [1, 1]} : vector<8x128xf32> to vector<8x32xf32>
    %461 = arith.mulf %458, %444 : vector<8x32xf32>
    %462 = arith.mulf %457, %460 : vector<8x32xf32>
    %463 = arith.addf %461, %462 : vector<8x32xf32>
    %464 = math.tanh %463 : vector<8x32xf32>
    %465 = arith.mulf %459, %464 : vector<8x32xf32>
    %466 = vector.extract_strided_slice %347 {offsets = [40, 0], sizes = [8, 128], strides = [1, 1]} : vector<64x128xf32> to vector<8x128xf32>
    %467 = arith.truncf %465 : vector<8x32xf32> to vector<8x32xbf16>
    %cst_85 = arith.constant dense<0.000000e+00> : vector<8x128xf32>
    %468 = tpu.matmul %467, %338, %cst_85 {dimension_numbers = #tpu.dot_dimension_numbers<[1], [0], [0], [1], [0, 0, 1, 1], [], []>} : vector<8x32xbf16>, vector<32x128xbf16>, vector<8x128xf32> -> vector<8x128xf32>
    %469 = arith.addf %466, %468 : vector<8x128xf32>
    %470 = arith.negf %469 : vector<8x128xf32>
    %471 = math.exp %470 : vector<8x128xf32>
    %cst_86 = arith.constant 1.000000e+00 : f32
    %472 = vector.broadcast %cst_86 : f32 to vector<8x128xf32>
    %473 = arith.addf %472, %471 : vector<8x128xf32>
    %474 = arith.divf %472, %473 : vector<8x128xf32>
    %475 = math.tanh %469 : vector<8x128xf32>
    %476 = vector.extract_strided_slice %474 {offsets = [0, 0], sizes = [8, 32], strides = [1, 1]} : vector<8x128xf32> to vector<8x32xf32>
    %477 = vector.extract_strided_slice %474 {offsets = [0, 32], sizes = [8, 32], strides = [1, 1]} : vector<8x128xf32> to vector<8x32xf32>
    %478 = vector.extract_strided_slice %474 {offsets = [0, 96], sizes = [8, 32], strides = [1, 1]} : vector<8x128xf32> to vector<8x32xf32>
    %479 = vector.extract_strided_slice %475 {offsets = [0, 64], sizes = [8, 32], strides = [1, 1]} : vector<8x128xf32> to vector<8x32xf32>
    %480 = arith.mulf %477, %463 : vector<8x32xf32>
    %481 = arith.mulf %476, %479 : vector<8x32xf32>
    %482 = arith.addf %480, %481 : vector<8x32xf32>
    %483 = math.tanh %482 : vector<8x32xf32>
    %484 = arith.mulf %478, %483 : vector<8x32xf32>
    %485 = vector.extract_strided_slice %347 {offsets = [48, 0], sizes = [8, 128], strides = [1, 1]} : vector<64x128xf32> to vector<8x128xf32>
    %486 = arith.truncf %484 : vector<8x32xf32> to vector<8x32xbf16>
    %cst_87 = arith.constant dense<0.000000e+00> : vector<8x128xf32>
    %487 = tpu.matmul %486, %338, %cst_87 {dimension_numbers = #tpu.dot_dimension_numbers<[1], [0], [0], [1], [0, 0, 1, 1], [], []>} : vector<8x32xbf16>, vector<32x128xbf16>, vector<8x128xf32> -> vector<8x128xf32>
    %488 = arith.addf %485, %487 : vector<8x128xf32>
    %489 = arith.negf %488 : vector<8x128xf32>
    %490 = math.exp %489 : vector<8x128xf32>
    %cst_88 = arith.constant 1.000000e+00 : f32
    %491 = vector.broadcast %cst_88 : f32 to vector<8x128xf32>
    %492 = arith.addf %491, %490 : vector<8x128xf32>
    %493 = arith.divf %491, %492 : vector<8x128xf32>
    %494 = math.tanh %488 : vector<8x128xf32>
    %495 = vector.extract_strided_slice %493 {offsets = [0, 0], sizes = [8, 32], strides = [1, 1]} : vector<8x128xf32> to vector<8x32xf32>
    %496 = vector.extract_strided_slice %493 {offsets = [0, 32], sizes = [8, 32], strides = [1, 1]} : vector<8x128xf32> to vector<8x32xf32>
    %497 = vector.extract_strided_slice %493 {offsets = [0, 96], sizes = [8, 32], strides = [1, 1]} : vector<8x128xf32> to vector<8x32xf32>
    %498 = vector.extract_strided_slice %494 {offsets = [0, 64], sizes = [8, 32], strides = [1, 1]} : vector<8x128xf32> to vector<8x32xf32>
    %499 = arith.mulf %496, %482 : vector<8x32xf32>
    %500 = arith.mulf %495, %498 : vector<8x32xf32>
    %501 = arith.addf %499, %500 : vector<8x32xf32>
    %502 = math.tanh %501 : vector<8x32xf32>
    %503 = arith.mulf %497, %502 : vector<8x32xf32>
    %504 = vector.extract_strided_slice %347 {offsets = [56, 0], sizes = [8, 128], strides = [1, 1]} : vector<64x128xf32> to vector<8x128xf32>
    %505 = arith.truncf %503 : vector<8x32xf32> to vector<8x32xbf16>
    %cst_89 = arith.constant dense<0.000000e+00> : vector<8x128xf32>
    %506 = tpu.matmul %505, %338, %cst_89 {dimension_numbers = #tpu.dot_dimension_numbers<[1], [0], [0], [1], [0, 0, 1, 1], [], []>} : vector<8x32xbf16>, vector<32x128xbf16>, vector<8x128xf32> -> vector<8x128xf32>
    %507 = arith.addf %504, %506 : vector<8x128xf32>
    %508 = arith.negf %507 : vector<8x128xf32>
    %509 = math.exp %508 : vector<8x128xf32>
    %cst_90 = arith.constant 1.000000e+00 : f32
    %510 = vector.broadcast %cst_90 : f32 to vector<8x128xf32>
    %511 = arith.addf %510, %509 : vector<8x128xf32>
    %512 = arith.divf %510, %511 : vector<8x128xf32>
    %513 = math.tanh %507 : vector<8x128xf32>
    %514 = vector.extract_strided_slice %512 {offsets = [0, 0], sizes = [8, 32], strides = [1, 1]} : vector<8x128xf32> to vector<8x32xf32>
    %515 = vector.extract_strided_slice %512 {offsets = [0, 32], sizes = [8, 32], strides = [1, 1]} : vector<8x128xf32> to vector<8x32xf32>
    %516 = vector.extract_strided_slice %512 {offsets = [0, 96], sizes = [8, 32], strides = [1, 1]} : vector<8x128xf32> to vector<8x32xf32>
    %517 = vector.extract_strided_slice %513 {offsets = [0, 64], sizes = [8, 32], strides = [1, 1]} : vector<8x128xf32> to vector<8x32xf32>
    %518 = arith.mulf %515, %501 : vector<8x32xf32>
    %519 = arith.mulf %514, %517 : vector<8x32xf32>
    %520 = arith.addf %518, %519 : vector<8x32xf32>
    %521 = math.tanh %520 : vector<8x32xf32>
    %522 = arith.mulf %516, %521 : vector<8x32xf32>
    %523 = arith.truncf %522 : vector<8x32xf32> to vector<8x32xbf16>
    %c0_91 = arith.constant 0 : index
    %c0_92 = arith.constant 0 : index
    %524 = vector.load %arg16[%c0_91, %c0_92] : memref<32x128xbf16, #tpu.memory_space<vmem>>, vector<32x128xbf16>
    %cst_93 = arith.constant dense<0.000000e+00> : vector<8x128xf32>
    %525 = tpu.matmul %523, %524, %cst_93 {dimension_numbers = #tpu.dot_dimension_numbers<[1], [0], [0], [1], [0, 0, 1, 1], [], []>} : vector<8x32xbf16>, vector<32x128xbf16>, vector<8x128xf32> -> vector<8x128xf32>
    %526 = arith.truncf %370 : vector<8x32xf32> to vector<8x32xbf16>
    %c0_94 = arith.constant 0 : index
    %c0_95 = arith.constant 0 : index
    %527 = vector.load %arg17[%c0_94, %c0_95] : memref<32x128xbf16, #tpu.memory_space<vmem>>, vector<32x128xbf16>
    %cst_96 = arith.constant dense<0.000000e+00> : vector<8x128xf32>
    %528 = tpu.matmul %526, %527, %cst_96 {dimension_numbers = #tpu.dot_dimension_numbers<[1], [0], [0], [1], [0, 0, 1, 1], [], []>} : vector<8x32xbf16>, vector<32x128xbf16>, vector<8x128xf32> -> vector<8x128xf32>
    %529 = arith.addf %525, %528 : vector<8x128xf32>
    %c0_97 = arith.constant 0 : index
    %c0_98 = arith.constant 0 : index
    %530 = vector.load %arg18[%c0_97, %c0_98] : memref<1x128xf32, #tpu.memory_space<vmem>>, vector<1x128xf32>
    %531 = vector.broadcast %530 : vector<1x128xf32> to vector<8x128xf32>
    %532 = arith.addf %529, %531 : vector<8x128xf32>
    %533 = tpu.iota {dimensions = array<i32: 1>} : vector<8x128xi32>
    %c16_i32 = arith.constant 16 : i32
    %534 = vector.broadcast %c16_i32 : i32 to vector<8x128xi32>
    %535 = arith.cmpi slt, %533, %534 : vector<8x128xi32>
    %cst_99 = arith.constant -1.000000e+30 : f32
    %536 = vector.broadcast %cst_99 : f32 to vector<8x128xf32>
    %537 = arith.select %535, %532, %536 : vector<8x128xi1>, vector<8x128xf32>
    %cst_100 = arith.constant dense<0xFF800000> : vector<8xf32>
    %538 = vector.multi_reduction <maximumf>, %537, %cst_100 [1] : vector<8x128xf32> to vector<8xf32>
    %539 = vector.shape_cast %538 : vector<8xf32> to vector<8x1xf32>
    %540 = vector.broadcast %539 : vector<8x1xf32> to vector<8x128xf32>
    %541 = arith.subf %537, %540 : vector<8x128xf32>
    %542 = math.exp %541 : vector<8x128xf32>
    %cst_101 = arith.constant dense<0.000000e+00> : vector<8xf32>
    %543 = vector.multi_reduction <add>, %542, %cst_101 [1] : vector<8x128xf32> to vector<8xf32>
    %544 = vector.shape_cast %543 : vector<8xf32> to vector<8x1xf32>
    %545 = math.log %544 : vector<8x1xf32>
    %546 = vector.broadcast %545 : vector<8x1xf32> to vector<8x128xf32>
    %547 = arith.subf %541, %546 : vector<8x128xf32>
    %c0_102 = arith.constant 0 : index
    %c0_103 = arith.constant 0 : index
    %548 = vector.load %arg19[%c0_102, %c0_103] : memref<8x128xf32, #tpu.memory_space<vmem>>, vector<8x128xf32>
    tpu.vector_store %arg19[%c0_102, %c0_103], %547 {strides = array<i32>} : memref<8x128xf32, #tpu.memory_space<vmem>>, vector<8x128xf32>,
    return
  }
}

</mosaic_0001>

<bundles_post_ra>
// kernel: net_forward.1
= control target key start
LH: loop header
LB: loop body
LE: loop exit
PB: predicated region body
PF: predicated region fallthrough
CT: control target
= control target key end

     0   :  { %s4682_s0 = inlined_call_operand.vmem [shape: s32[64,1], index: 0, kind: input, shape index: {}]   ;;  %s4683_s1 = inlined_call_operand.vmem [shape: bf16[64,32], index: 1, kind: input, shape index: {}]   ;;  %s4684_s2 = inlined_call_operand.vmem [shape: bf16[32,128], index: 2, kind: input, shape index: {}]   ;;  %s4685_s3 = inlined_call_operand.vmem [shape: bf16[32,128], index: 3, kind: input, shape index: {}]   ;;  %s4686_s4 = inlined_call_operand.hbm [shape: f32[1,128], index: 4, kind: input, shape index: {}]   ;;  %s4687_s5 = inlined_call_operand.vmem [shape: bf16[32,128], index: 5, kind: input, shape index: {}]   ;;  %s4688_s6 = inlined_call_operand.vmem [shape: bf16[32,128], index: 6, kind: input, shape index: {}]   ;;  %s4689_s7 = inlined_call_operand.hbm [shape: f32[1,128], index: 7, kind: input, shape index: {}]   ;;  %s4690_s8 = inlined_call_operand.vmem [shape: bf16[32,128], index: 8, kind: input, shape index: {}]   ;;  %s4691_s9 = inlined_call_operand.vmem [shape: bf16[32,128], index: 9, kind: input, shape index: {}]   ;;  %s4692_s10 = inlined_call_operand.vmem [shape: bf16[32,128], index: 10, kind: input, shape index: {}]   ;;  %s4693_s11 = inlined_call_operand.hbm [shape: f32[1,128], index: 11, kind: input, shape index: {}]   ;;  %s4694_s12 = inlined_call_operand.hbm [shape: bf16[32,128], index: 12, kind: input, shape index: {}]   ;;  %s4695_s13 = inlined_call_operand.hbm [shape: bf16[32,128], index: 13, kind: input, shape index: {}]   ;;  %s4696_s14 = inlined_call_operand.hbm [shape: bf16[32,128], index: 14, kind: input, shape index: {}]   ;;  %s4697_s15 = inlined_call_operand.hbm [shape: f32[1,128], index: 15, kind: input, shape index: {}]   ;;  %s4698_s16 = inlined_call_operand.vmem [shape: bf16[32,128], index: 16, kind: input, shape index: {}]   ;;  %s4699_s17 = inlined_call_operand.vmem [shape: bf16[32,128], index: 17, kind: input, shape index: {}]   ;;  %s4700_s18 = inlined_call_operand.vmem [shape: f32[1,128], index: 18, kind: input, shape index: {}]   ;;  %s4701_s19 = inlined_call_operand.vmem [shape: f32[8,128], index: 19, kind: output, shape index: {}]  }
   0x1   :  { %4706 = sst [smem:[#allocation17_spill]] %s4682_s0 }
   0x2   :  { %4707 = sst [smem:[#allocation18_spill]] %s4683_s1 }
   0x3   :  { %4708 = sst [smem:[#allocation19_spill]] %s4684_s2 }
   0x4   :  { %4709 = sst [smem:[#allocation20_spill]] %s4685_s3 }
   0x5   :  { %24 = vsyncpa [#allocation3], 0 }
   0x6   :  { %25 = vsyncpa [#allocation5], 0 }
   0x7   :  { %26 = vsyncpa [#allocation8], 0 }
   0x8   :  { %27 = vsyncpa [#allocation11], 0  ;;  %s3805_s0 = smov [#allocation4]   ;;  %s3806_s20 = smov [#allocation7]  }
   0x9   :  { %s56_s30 = sshll.u32 %s3805_s0, 4  ;;  %s81_s21 = sshll.u32 %s3806_s20, 4  ;;  %s57_s30 = int_to_ptr.vmem [resolvable:$true] %s56_s30  ;;  %s3918_s21 = int_to_ptr.vmem [resolvable:$true] %s81_s21 }
   0xa   :  { %s3643_s2 = scalar_lea.hbm %s4689_s7, 16 }
   0xb   :  { %p3644_p0 = scmp.ne.s32.totalorder %s4689_s7, %s3643_s2  ;;  %p3647_p1 = scmp.lt.u32.totalorder %s3643_s2, %s4689_s7 }
   0xd   :  { %p3649_p2 = pnand %p3647_p1, %p3644_p0 }
   0xf   :  { %3652 = shalt.err (!%p3649_p2)
}
  0x10   :  { %s3653_s26 = scalar_lea.vmem %s57_s30, 16  ;;  %s3657_s27 = scalar_lea.vmem %s57_s30, 32 }
  0x11   :  { %p3654_p3 = scmp.ne.s32.totalorder %s57_s30, %s3653_s26  ;;  %p3658_p4 = scmp.lt.s32.totalorder %s57_s30, %s57_s30 }
  0x12   :  { %p3659_p5 = scmp.lt.s32.totalorder %s3657_s27, %s3653_s26 }
  0x14   :  { %p3660_p6 = por %p3659_p5, %p3658_p4 }
  0x16   :  { %p3661_p7 = pnand %p3660_p6, %p3654_p3 }
  0x18   :  { %3664 = shalt.err (!%p3661_p7)
}
  0x19   :  { %59 = dma.hbm_to_vmem [thread:$0]  %s4689_s7, 16, %s57_s30, [#allocation5]  }
  0x1a   :  { %s3665_s1 = scalar_lea.hbm %s4694_s12, 256 }
  0x1b   :  { %p3666_p8 = scmp.ne.s32.totalorder %s4694_s12, %s3665_s1  ;;  %p3669_p9 = scmp.lt.u32.totalorder %s3665_s1, %s4694_s12 }
  0x1d   :  { %p3671_p10 = pnand %p3669_p9, %p3666_p8 }
  0x1f   :  { %3674 = shalt.err (!%p3671_p10)
}
  0x20   :  { %s3675_s25 = scalar_lea.vmem %s3918_s21, 256  ;;  %p3680_p12 = scmp.lt.s32.totalorder %s3918_s21, %s3918_s21 }
  0x21   :  { %p3676_p11 = scmp.ne.s32.totalorder %s3918_s21, %s3675_s25  ;;  %p3681_p13 = scmp.lt.s32.totalorder %s3675_s25, %s3675_s25 }
  0x23   :  { %p3682_p0 = por %p3681_p13, %p3680_p12 }
  0x25   :  { %p3683_p1 = pnand %p3682_p0, %p3676_p11 }
  0x27   :  { %3686 = shalt.err (!%p3683_p1)
}
  0x28   :  { %s3807_s7 = smov 64   ;;  %s3808_s30 = smov 4  }
  0x29   :  { %87 = dma.hbm_to_vmem [thread:$0]  %s4694_s12, 256, %s3918_s21, [#allocation8], %s3807_s7, %s3807_s7, %s3808_s30  }
  0x2a   :  { %s3809_s27 = smov [#allocation10]   ;;  %s3810_s29 = smov [#allocation2]  }
  0x2b   :  { %s105_s28 = sshll.u32 %s3809_s27, 4  ;;  %s42_s0 = sshll.u32 %s3810_s29, 4  ;;  %s106_s28 = int_to_ptr.vmem [resolvable:$true] %s105_s28  ;;  %s43_s0 = int_to_ptr.vmem [resolvable:$true] %s42_s0 }
  0x2c   :  { %s3687_s22 = scalar_lea.hbm %s4696_s14, 256 }
  0x2d   :  { %p3688_p2 = scmp.ne.s32.totalorder %s4696_s14, %s3687_s22  ;;  %p3691_p3 = scmp.lt.u32.totalorder %s3687_s22, %s4696_s14 }
  0x2f   :  { %p3693_p4 = pnand %p3691_p3, %p3688_p2 }
  0x31   :  { %3696 = shalt.err (!%p3693_p4)
}
  0x32   :  { %s3697_s12 = scalar_lea.vmem %s106_s28, 256  ;;  %p3702_p6 = scmp.lt.s32.totalorder %s106_s28, %s106_s28 }
  0x33   :  { %p3698_p5 = scmp.ne.s32.totalorder %s106_s28, %s3697_s12  ;;  %p3703_p7 = scmp.lt.s32.totalorder %s3697_s12, %s3697_s12 }
  0x35   :  { %p3704_p8 = por %p3703_p7, %p3702_p6 }
  0x37   :  { %p3705_p9 = pnand %p3704_p8, %p3698_p5 }
  0x39   :  { %3708 = shalt.err (!%p3705_p9)
}
  0x3a   :  { %111 = dma.hbm_to_vmem [thread:$0]  %s4696_s14, 256, %s106_s28, [#allocation11], %s3807_s7, %s3807_s7, %s3808_s30  }
  0x3b   :  { %s3709_s29 = scalar_lea.hbm %s4686_s4, 16 }
  0x3c   :  { %p3710_p10 = scmp.ne.s32.totalorder %s4686_s4, %s3709_s29  ;;  %p3713_p11 = scmp.lt.u32.totalorder %s3709_s29, %s4686_s4 }
  0x3e   :  { %p3715_p12 = pnand %p3713_p11, %p3710_p10 }
  0x40   :  { %3718 = shalt.err (!%p3715_p12)
}
  0x41   :  { %s3719_s23 = scalar_lea.vmem %s43_s0, 16  ;;  %s3723_s24 = scalar_lea.vmem %s43_s0, 32 }
  0x42   :  { %p3720_p13 = scmp.ne.s32.totalorder %s43_s0, %s3719_s23  ;;  %p3724_p0 = scmp.lt.s32.totalorder %s43_s0, %s43_s0 }
  0x43   :  { %p3725_p1 = scmp.lt.s32.totalorder %s3723_s24, %s3719_s23 }
  0x45   :  { %p3726_p2 = por %p3725_p1, %p3724_p0 }
  0x47   :  { %p3727_p3 = pnand %p3726_p2, %p3720_p13 }
  0x49   :  { %3730 = shalt.err (!%p3727_p3)
}
  0x4a   :  { %45 = dma.hbm_to_vmem [thread:$0]  %s4686_s4, 16, %s43_s0, [#allocation3]  }
  0x4b   :  { %s3811_s25 = smov [#allocation6]   ;;  %s3812_s21 = smov [#allocation9]  }
  0x4c   :  { %s72_s12 = sshll.u32 %s3811_s25, 4  ;;  %s93_s3 = sshll.u32 %s3812_s21, 4  ;;  %s73_s12 = int_to_ptr.vmem [resolvable:$true] %s72_s12  ;;  %s3979_s3 = int_to_ptr.vmem [resolvable:$true] %s93_s3 }
  0x4d   :  { %s3731_s29 = scalar_lea.hbm %s4693_s11, 16 }
  0x4e   :  { %p3732_p4 = scmp.ne.s32.totalorder %s4693_s11, %s3731_s29  ;;  %p3735_p5 = scmp.lt.u32.totalorder %s3731_s29, %s4693_s11 }
  0x50   :  { %p3737_p6 = pnand %p3735_p5, %p3732_p4 }
  0x52   :  { %3740 = shalt.err (!%p3737_p6)
}
  0x53   :  { %s3741_s4 = scalar_lea.vmem %s73_s12, 16  ;;  %s3745_s0 = scalar_lea.vmem %s73_s12, 32 }
  0x54   :  { %p3742_p7 = scmp.ne.s32.totalorder %s73_s12, %s3741_s4  ;;  %p3746_p8 = scmp.lt.s32.totalorder %s73_s12, %s73_s12 }
  0x55   :  { %p3747_p9 = scmp.lt.s32.totalorder %s3745_s0, %s3741_s4 }
  0x57   :  { %p3748_p10 = por %p3747_p9, %p3746_p8 }
  0x59   :  { %p3749_p11 = pnand %p3748_p10, %p3742_p7 }
  0x5b   :  { %3752 = shalt.err (!%p3749_p11)
}
  0x5c   :  { %75 = dma.hbm_to_vmem [thread:$0]  %s4693_s11, 16, %s73_s12, [#allocation5]  }
  0x5d   :  { %s3753_s25 = scalar_lea.hbm %s4695_s13, 256 }
  0x5e   :  { %p3754_p12 = scmp.ne.s32.totalorder %s4695_s13, %s3753_s25  ;;  %p3757_p13 = scmp.lt.u32.totalorder %s3753_s25, %s4695_s13 }
  0x60   :  { %p3759_p0 = pnand %p3757_p13, %p3754_p12 }
  0x62   :  { %3762 = shalt.err (!%p3759_p0)
}
  0x63   :  { %s3763_s20 = scalar_lea.vmem %s3979_s3, 256  ;;  %p3768_p2 = scmp.lt.s32.totalorder %s3979_s3, %s3979_s3 }
  0x64   :  { %p3764_p1 = scmp.ne.s32.totalorder %s3979_s3, %s3763_s20  ;;  %p3769_p3 = scmp.lt.s32.totalorder %s3763_s20, %s3763_s20 }
  0x66   :  { %p3770_p4 = por %p3769_p3, %p3768_p2 }
  0x68   :  { %p3771_p5 = pnand %p3770_p4, %p3764_p1 }
  0x6a   :  { %3774 = shalt.err (!%p3771_p5)
}
  0x6b   :  { %99 = dma.hbm_to_vmem [thread:$0]  %s4695_s13, 256, %s3979_s3, [#allocation8], %s3807_s7, %s3807_s7, %s3808_s30  }
  0x6c   :  { %s3813_s1 = smov [#allocation12]   ;;  %s3775_s0 = scalar_lea.hbm %s4697_s15, 16 }
  0x6d   :  { %s118_s22 = sshll.u32 %s3813_s1, 4  ;;  %p3776_p6 = scmp.ne.s32.totalorder %s4697_s15, %s3775_s0  ;;  %s119_s22 = int_to_ptr.vmem [resolvable:$true] %s118_s22 }
  0x6e   :  { %p3779_p7 = scmp.lt.u32.totalorder %s3775_s0, %s4697_s15 }
  0x70   :  { %p3781_p8 = pnand %p3779_p7, %p3776_p6 }
  0x72   :  { %3784 = shalt.err (!%p3781_p8)
}
  0x73   :  { %s3785_s25 = scalar_lea.vmem %s119_s22, 16  ;;  %s3789_s13 = scalar_lea.vmem %s119_s22, 32 }
  0x74   :  { %p3786_p9 = scmp.ne.s32.totalorder %s119_s22, %s3785_s25  ;;  %p3790_p10 = scmp.lt.s32.totalorder %s119_s22, %s119_s22 }
  0x75   :  { %p3791_p11 = scmp.lt.s32.totalorder %s3789_s13, %s3785_s25 }
  0x77   :  { %p3792_p12 = por %p3791_p11, %p3790_p10 }
  0x79   :  { %p3793_p13 = pnand %p3792_p12, %p3786_p9 }
  0x7b   :  { %3796 = shalt.err (!%p3793_p13)
}
  0x7c   :  { %121 = dma.hbm_to_vmem [thread:$0]  %s4697_s15, 16, %s119_s22, [#allocation11]  }
  0x7d   :  { %3797 = dma.done.wait [#allocation3], 16  }
  0x7e   :  { %3798 = vsyncadd [#allocation3], 4294967280 }
  0x7f   :  { %3799 = dma.done.wait [#allocation5], 32  }
  0x80   :  { %3800 = vsyncadd [#allocation5], 4294967264 }
  0x81   :  { %3801 = dma.done.wait [#allocation8], 512  }
  0x82   :  { %3802 = vsyncadd [#allocation8], 4294966784 }
  0x83   :  { %3803 = dma.done.wait [#allocation11], 272  }
  0x84   :  { %3804 = vsyncadd [#allocation11], 4294967024  ;;  %v3814_v0 = vmov 0   ;;  %s4710_s27 = sld [smem:[#allocation17_spill]]  ;;  %s4711_s4 = sld [smem:[#allocation18_spill]]  ;;  %v3815_v14 = vmov 0.0   ;;  %v158_v15 = vlaneseq }
  0x85   :  { %3410 = vset.pattern.permute.xlu1 %v3814_v0  ;;  %3409 = vset.pattern.permute.xlu0 %v3814_v0  ;;  %vm236_vm4 = vcmask 523264   ;;  %s4713_s0 = sld [smem:[#allocation20_spill]]  ;;  %v3418_v40 = vld [vmem:[%s4687_s5] sm:$0xff]   ;;  %vm3816_vm9 = vmmov 0   ;;  %v4123_v42 = vld [vmem:[%s4688_s6 + $0x8] sm:$0xff]   ;;  %vm354_vm10 = vcmask 261120  }
  0x86   :  { %v4067_v16 = vand.u32 127, %v158_v15  ;;  %v4117_v41 = vld [vmem:[%s4688_s6] sm:$0xff]   ;;  %v3420_v49 = vld [vmem:[%s4687_s5 + $0x8] sm:$0xff]   ;;  %s3817_s5 = smov 32  }
  0x88   :  { %vm2840_vm11 = vcmp.lt.s32.totalorder %v4067_v16, 16 }
  0x8a   :  { %v152_v1 = vld [vmem:[%s4710_s27 + $0x10] sm:$0xff]  ;;  %v150_v2 = vld [vmem:[%s4710_s27] sm:$0xff]  ;;  %v153_v3 = vld [vmem:[%s4710_s27 + $0x18] sm:$0xff] }
  0x8b   :  { %167 = vperm.xlu1 %3410, %v152_v1   ;;  %161 = vperm.xlu0 %3409, %v150_v2   ;;  %v151_v4 = vld [vmem:[%s4710_s27 + $0x8] sm:$0xff]  ;;  %v3411_v5 = vld [vmem:[%s4711_s4] sm:$0xff]   ;;  %v157_v9 = vld [vmem:[%s4710_s27 + $0x38] sm:$0xff] }
  0x8c   :  { %v3412_v6 = vld [vmem:[%s4711_s4 + $0x8] sm:$0xff]   ;;  %v154_v8 = vld [vmem:[%s4710_s27 + $0x20] sm:$0xff]  ;;  %3083 = vmatprep.subr.bf16.mxu0 %v3411_v5  ;;  %v156_v10 = vld [vmem:[%s4710_s27 + $0x30] sm:$0xff] }
  0x8d   :  { %v155_v7 = vld [vmem:[%s4710_s27 + $0x28] sm:$0xff]  ;;  %3084 = vmatpush3.bf16.msra.mxu0 %v3411_v5  ;;  %v3413_v11 = vld [vmem:[%s4711_s4 + $0x10] sm:$0xff]   ;;  %v3414_v12 = vld [vmem:[%s4711_s4 + $0x18] sm:$0xff]   ;;  %s4712_s27 = sld [smem:[#allocation19_spill]] }
  0x8e   :  { %3085 = vmatprep.subr.bf16.mxu0 %v3412_v6  ;;  %v4095_v38 = vld [vmem:[%s4713_s0] sm:$0xff]   ;;  %v4102_v39 = vld [vmem:[%s4713_s0 + $0x8] sm:$0xff]  }
  0x8f   :  { %170 = vperm.xlu1 %3410, %v153_v3   ;;  %164 = vperm.xlu0 %3409, %v151_v4   ;;  %v2869_v1 = vld [vmem:[#allocation2] ss:$0 sm:$0xff] }
  0x91   :  { %3086 = vmatpush3.bf16.msra.mxu0 %v3412_v6 }
  0x92   :  { %3087 = vmatprep.subr.bf16.mxu0 %v3413_v11 }
  0x93   :  { %176 = vperm.xlu1 %3410, %v155_v7   ;;  %173 = vperm.xlu0 %3409, %v154_v8   ;;  %v3415_v13 = vld [vmem:[%s4712_s27] sm:$0xff]   ;;  %v3416_v37 = vld [vmem:[%s4712_s27 + $0x8] sm:$0xff]  }
  0x94   :  { %3099 = vmatprep.subr.bf16.mxu1 %v3415_v13 }
  0x95   :  { %3088 = vmatpush3.bf16.msra.mxu0 %v3413_v11  ;;  %3100 = vmatpush3.bf16.msra.mxu1 %v3415_v13 }
  0x96   :  { %3089 = vmatprep.subr.bf16.mxu0 %v3414_v12  ;;  %3101 = vmatprep.subr.bf16.mxu1 %v3416_v37 }
  0x97   :  { %182 = vperm.xlu1 %3410, %v157_v9   ;;  %179 = vperm.xlu0 %3409, %v156_v10  }
  0x99   :  { %3090 = vmatpush3.bf16.msra.mxu0 %v3414_v12  ;;  %3102 = vmatpush3.bf16.msra.mxu1 %v3416_v37 }
  0x9a   :  { %3123 = vmatprep.subr.bf16.mxu0 %v3815_v14  ;;  %3111 = vmatprep.subr.bf16.mxu1 %v3418_v40 }
 0x10a   :  { %v168_v17 = vpop.permute.xlu1 %167  ;;  %v162_v18 = vpop.permute.xlu0 %161 }
 0x10b   :  { %vm186_vm0 = vcmp.eq.s32.totalorder %v4067_v16, %v168_v17  ;;  %vm184_vm1 = vcmp.eq.s32.totalorder %v4067_v16, %v162_v18 }
 0x10c   :  { %v194_v21 = vsel %vm186_vm0, 1.0, %v3815_v14  ;;  %v192_v23 = vsel %vm184_vm1, 1.0, %v3815_v14 }
 0x10e   :  { %v171_v19 = vpop.permute.xlu1 %170  ;;  %v165_v20 = vpop.permute.xlu0 %164 }
 0x10f   :  { %vm187_vm2 = vcmp.eq.s32.totalorder %v4067_v16, %v171_v19  ;;  %vm185_vm3 = vcmp.eq.s32.totalorder %v4067_v16, %v165_v20 }
 0x110   :  { %v195_v22 = vsel %vm187_vm2, 1.0, %v3815_v14  ;;  %v193_v24 = vsel %vm185_vm3, 1.0, %v3815_v14 }
 0x111   :  { %v201_v25 = vpack.c.bf16 %v195_v22, %v194_v21  ;;  %v200_v26 = vpack.c.bf16 %v193_v24, %v192_v23  ;;  %v2876_v21 = vld [vmem:[#allocation4] ss:$0 sm:$0xff] }
 0x112   :  { %v177_v27 = vpop.permute.xlu1 %176  ;;  %v174_v28 = vpop.permute.xlu0 %173 }
 0x113   :  { %vm189_vm5 = vcmp.eq.s32.totalorder %v4067_v16, %v177_v27  ;;  %vm188_vm6 = vcmp.eq.s32.totalorder %v4067_v16, %v174_v28  ;;  %3091 = vmatprep.mubr.msk.bf16.mxu0 %vm236_vm4, %v200_v26 }
 0x114   :  { %v197_v29 = vsel %vm189_vm5, 1.0, %v3815_v14  ;;  %v196_v30 = vsel %vm188_vm6, 1.0, %v3815_v14  ;;  %3092 = vmatmul.mubr.msk.bf16.vlgmr.msra.gmra.mrb[0].mxu0 %vm236_vm4, %v201_v25 }
 0x115   :  { %v202_v31 = vpack.c.bf16 %v197_v29, %v196_v30  ;;  %3124 = vmatpush3.bf16.msra.mxu0 %v4095_v38 }
 0x116   :  { %v183_v32 = vpop.permute.xlu1 %182  ;;  %v180_v33 = vpop.permute.xlu0 %179  ;;  %3125 = vmatprep.subr.bf16.mxu0 %v3815_v14 }
 0x117   :  { %vm191_vm7 = vcmp.eq.s32.totalorder %v4067_v16, %v183_v32  ;;  %vm190_vm8 = vcmp.eq.s32.totalorder %v4067_v16, %v180_v33  ;;  %3095 = vmatprep.mubr.msk.bf16.mxu0 %vm236_vm4, %v202_v31 }
 0x118   :  { %v199_v34 = vsel %vm191_vm7, 1.0, %v3815_v14  ;;  %v198_v35 = vsel %vm190_vm8, 1.0, %v3815_v14 }
 0x119   :  { %v203_v36 = vpack.c.bf16 %v199_v34, %v198_v35  ;;  %3126 = vmatpush3.bf16.msra.mxu0 %v4102_v39 }
 0x11a   :  { %3131 = vmatprep.subr.bf16.mxu0 %v3815_v14 }
 0x11c   :  { %3096 = vmatmul.mubr.msk.bf16.gmra.mrb[4].mxu0 %vm236_vm4, %v203_v36 }
 0x11d   :  { %3127 = vmatprep.mubr.msk.bf16.mxu0 %vm3816_vm9, %v3815_v14 }
 0x124   :  { %3128 = vmatmul.mubr.bf16.vlgmr.msra.gmra.mrb[8].mxu0 %v3814_v0 }
 0x125   :  { %3135 = vmatprep.mubr.msk.bf16.mxu0 %vm3816_vm9, %v3815_v14  ;;  %3132 = vmatpush3.bf16.msra.mxu0 %v4117_v41 }
 0x126   :  { %3133 = vmatprep.subr.bf16.mxu0 %v3815_v14 }
 0x129   :  { %3134 = vmatpush3.bf16.msra.mxu0 %v4123_v42 }
 0x12a   :  { %3147 = vmatprep.subr.bf16.mxu0 %v3815_v14 }
 0x12c   :  { %3136 = vmatmul.mubr.bf16.vlgmr.msra.gmra.mrb[12].mxu0 %v3814_v0 }
 0x12d   :  { %3148 = vmatpush3.bf16.msra.mxu0 %v4117_v41  ;;  %3151 = vmatprep.mubr.msk.bf16.mxu0 %vm3816_vm9, %v3815_v14 }
 0x12e   :  { %3149 = vmatprep.subr.bf16.mxu0 %v3815_v14 }
 0x131   :  { %3150 = vmatpush3.bf16.msra.mxu0 %v4123_v42 }
 0x132   :  { %3163 = vmatprep.subr.bf16.mxu0 %v3815_v14 }
 0x1e7   :  { %v3093_v43 = vpop.f32.mrb[0].mxu0 }
 0x1e8   :  { %v283_v44 = vpop.f32.mrb[1].mxu0 }
 0x1e9   :  { %v3094_v45 = vpop.f32.mrb[2].mxu0 }
 0x1ea   :  { %v315_v46 = vpack.c.bf16 %v3094_v45, %v3093_v43  ;;  %v286_v47 = vpop.f32.mrb[3].mxu0 }
 0x1eb   :  { %v314_v48 = vpack.c.bf16 %v286_v47, %v283_v44 }
 0x1ed   :  { %3103 = vmatprep.mubr.msk.bf16.mxu1 %vm354_vm10, %v314_v48 }
 0x1ee   :  { %3104 = vmatmul.mubr.msk.bf16.vlgmr.msra.gmra.mrb[0].mxu1 %vm354_vm10, %v315_v46 }
 0x1ef   :  { %3112 = vmatpush3.bf16.msra.mxu1 %v3418_v40  ;;  %v3097_v50 = vpop.f32.mrb[4].mxu0 }
 0x1f0   :  { %v299_v51 = vpop.f32.mrb[5].mxu0  ;;  %3113 = vmatprep.subr.bf16.mxu1 %v3420_v49 }
 0x1f1   :  { %v3098_v52 = vpop.f32.mrb[6].mxu0 }
 0x1f2   :  { %v317_v53 = vpack.c.bf16 %v3098_v52, %v3097_v50  ;;  %v302_v54 = vpop.f32.mrb[7].mxu0 }
 0x1f3   :  { %v316_v55 = vpack.c.bf16 %v302_v54, %v299_v51  ;;  %3114 = vmatpush3.bf16.msra.mxu1 %v3420_v49 }
 0x1f4   :  { %3139 = vmatprep.subr.bf16.mxu1 %v3815_v14 }
 0x1f5   :  { %3107 = vmatprep.mubr.msk.bf16.mxu1 %vm354_vm10, %v316_v55 }
 0x1f6   :  { %3108 = vmatmul.mubr.msk.bf16.gmra.mrb[4].mxu1 %vm354_vm10, %v317_v53 }
 0x1f7   :  { %3115 = vmatprep.mubr.msk.bf16.mxu1 %vm354_vm10, %v314_v48  ;;  %v564_v56 = vpop.f32.mrb[8].mxu0 }
 0x1f8   :  { %v3129_v57 = vpop.f32.mrb[9].mxu0 }
 0x1f9   :  { %v567_v58 = vpop.f32.mrb[10].mxu0 }
 0x1fa   :  { %v3130_v59 = vpop.f32.mrb[11].mxu0 }
 0x1fe   :  { %3116 = vmatmul.mubr.msk.bf16.vlgmr.msra.gmra.mrb[8].mxu1 %vm354_vm10, %v315_v46 }
 0x1ff   :  { %3119 = vmatprep.mubr.msk.bf16.mxu1 %vm354_vm10, %v316_v55  ;;  %3140 = vmatpush3.bf16.msra.mxu1 %v4095_v38  ;;  %v641_v60 = vpop.f32.mrb[12].mxu0 }
 0x200   :  { %3141 = vmatprep.subr.bf16.mxu1 %v3815_v14  ;;  %v3137_v61 = vpop.f32.mrb[13].mxu0 }
 0x201   :  { %v644_v62 = vpop.f32.mrb[14].mxu0 }
 0x202   :  { %v3138_v63 = vpop.f32.mrb[15].mxu0 }
 0x203   :  { %3142 = vmatpush3.bf16.msra.mxu1 %v4102_v39 }
 0x204   :  { %3155 = vmatprep.subr.bf16.mxu1 %v3815_v14 }
 0x206   :  { %3120 = vmatmul.mubr.msk.bf16.gmra.mrb[12].mxu1 %vm354_vm10, %v317_v53 }
 0x207   :  { %3143 = vmatprep.mubr.msk.bf16.mxu1 %vm3816_vm9, %v3815_v14 }
 0x2c1   :  { %v3105_v2 = vpop.f32.mrb[0].mxu1 }
 0x2c2   :  { %v4153_v3 = vadd.f32 %v3105_v2, %v2869_v1  ;;  %v401_v4 = vpop.f32.mrb[1].mxu1 }
 0x2c3   :  { %v402_v5 = vadd.f32 %v2869_v1, %v401_v4  ;;  %v3106_v6 = vpop.f32.mrb[2].mxu1 }
 0x2c4   :  { %v4155_v7 = vadd.f32 %v3106_v6, %v2869_v1  ;;  %v404_v8 = vpop.f32.mrb[3].mxu1 }
 0x2c5   :  { %v4157_v9 = vadd.f32 %v2869_v1, %v404_v8  ;;  %v570_v10 = vadd.f32 %v564_v56, %v402_v5 }
 0x2c7   :  { %3439 = vtanh.f32 %v570_v10  ;;  %v2885_v45 = vmul.f32 -1.442695, %v570_v10 }
 0x2c9   :  { %v3109_v11 = vpop.f32.mrb[4].mxu1 }
 0x2ca   :  { %v4159_v12 = vadd.f32 %v3109_v11, %v2869_v1  ;;  %v417_v13 = vpop.f32.mrb[5].mxu1 }
 0x2cb   :  { %v4161_v15 = vadd.f32 %v2869_v1, %v417_v13  ;;  %v3110_v17 = vpop.f32.mrb[6].mxu1 }
 0x2cc   :  { %v4163_v18 = vadd.f32 %v3110_v17, %v2869_v1  ;;  %v420_v19 = vpop.f32.mrb[7].mxu1 }
 0x2cd   :  { %v4165_v20 = vadd.f32 %v2869_v1, %v420_v19 }
 0x2d1   :  { %v3440_v22 = vpop.eup %3439  ;;  %v3117_v23 = vpop.f32.mrb[8].mxu1 }
 0x2d2   :  { %v4167_v24 = vadd.f32 %v3117_v23, %v2876_v21  ;;  %580 = vrot.lane.b32.xlu0 %v3440_v22, %s3807_s7  ;;  %v484_v25 = vpop.f32.mrb[9].mxu1 }
 0x2d3   :  { %v4170_v26 = vadd.f32 %v2876_v21, %v484_v25  ;;  %v3118_v27 = vpop.f32.mrb[10].mxu1 }
 0x2d4   :  { %v4172_v28 = vadd.f32 %v3118_v27, %v2876_v21  ;;  %v487_v29 = vpop.f32.mrb[11].mxu1 }
 0x2d5   :  { %v4174_v30 = vadd.f32 %v2876_v21, %v487_v29 }
 0x2d9   :  { %v3121_v31 = vpop.f32.mrb[12].mxu1 }
 0x2da   :  { %v4176_v32 = vadd.f32 %v3121_v31, %v2876_v21  ;;  %v500_v33 = vpop.f32.mrb[13].mxu1 }
 0x2db   :  { %v4178_v34 = vadd.f32 %v2876_v21, %v500_v33  ;;  %v3122_v35 = vpop.f32.mrb[14].mxu1 }
 0x2dc   :  { %v512_v36 = vadd.f32 %v3122_v35, %v2876_v21  ;;  %v503_v37 = vpop.f32.mrb[15].mxu1 }
 0x2dd   :  { %v4180_v40 = vadd.f32 %v2876_v21, %v503_v37 }
 0x2de   :  { %v647_v43 = vadd.f32 %v641_v60, %v512_v36 }
 0x2e0   :  { %3441 = vtanh.f32 %v647_v43  ;;  %v2888_v48 = vmul.f32 -1.442695, %v647_v43 }
 0x2e1   :  { %3443 = vpow2.f32 %v2885_v45 }
 0x2ea   :  { %v3442_v44 = vpop.eup %3441 }
 0x2eb   :  { %657 = vrot.lane.b32.xlu1 %v3442_v44, %s3807_s7  ;;  %v3444_v46 = vpop.eup %3443 }
 0x2ec   :  { %v574_v47 = vadd.f32 1.0, %v3444_v46 }
 0x2ee   :  { %3445 = vrcp.f32 %v574_v47 }
 0x2ef   :  { %3447 = vpow2.f32 %v2888_v48 }
 0x2f8   :  { %v3446_v49 = vpop.eup %3445 }
 0x2f9   :  { %v3448_v52 = vpop.eup %3447  ;;  %v578_v57 = vmul.f32 0.0, %v3446_v49 }
 0x2fa   :  { %v651_v53 = vadd.f32 1.0, %v3448_v52 }
 0x2fc   :  { %3449 = vrcp.f32 %v651_v53 }
 0x306   :  { %v3450_v54 = vpop.eup %3449 }
 0x307   :  { %v655_v61 = vmul.f32 0.0, %v3450_v54 }
 0x344   :  { %v581_v50 = vpop.permute.xlu0 %580 }
 0x345   :  { %v583_v51 = vmul.f32 %v3446_v49, %v581_v50 }
 0x347   :  { %585 = vrot.lane.b32.xlu0 %v583_v51, %s3817_s5 }
 0x35d   :  { %v658_v55 = vpop.permute.xlu1 %657 }
 0x35e   :  { %v660_v56 = vmul.f32 %v3450_v54, %v658_v55 }
 0x360   :  { %662 = vrot.lane.b32.xlu1 %v660_v56, %s3817_s5 }
 0x3b9   :  { %v586_v58 = vpop.permute.xlu0 %585 }
 0x3ba   :  { %v4185_v59 = vadd.f32 %v586_v58, %v578_v57 }
 0x3bc   :  { %3451 = vtanh.f32 %v4185_v59 }
 0x3c6   :  { %v3452_v60 = vpop.eup %3451 }
 0x3c7   :  { %591 = vrot.lane.b32.xlu0 %v3452_v60, %s3807_s7 }
 0x3d2   :  { %v663_v62 = vpop.permute.xlu1 %662 }
 0x3d3   :  { %v4189_v63 = vadd.f32 %v663_v62, %v655_v61 }
 0x3d5   :  { %3453 = vtanh.f32 %v4189_v63 }
 0x3df   :  { %v3454_v1 = vpop.eup %3453 }
 0x3e0   :  { %668 = vrot.lane.b32.xlu1 %v3454_v1, %s3807_s7 }
 0x439   :  { %v592_v2 = vpop.permute.xlu0 %591 }
 0x43a   :  { %v4193_v4 = vmul.f32 %v3446_v49, %v592_v2 }
 0x43c   :  { %v672_v5 = vpack.c.bf16 %v4193_v4, %v4193_v4 }
 0x43e   :  { %674 = vrot.lane.b32.xlu0 %v672_v5, %s3817_s5 }
 0x452   :  { %v669_v6 = vpop.permute.xlu1 %668 }
 0x453   :  { %v4198_v8 = vmul.f32 %v3450_v54, %v669_v6 }
 0x455   :  { %v744_v10 = vpack.c.bf16 %v4198_v8, %v4198_v8 }
 0x457   :  { %746 = vrot.lane.b32.xlu1 %v744_v10, %s3817_s5 }
 0x4b0   :  { %v675_v11 = vpop.permute.xlu0 %674 }
 0x4b1   :  { %3144 = vmatmul.mubr.msk.bf16.vlgmr.msra.gmra.mrb[16].mxu1 %vm354_vm10, %v675_v11 }
 0x4b2   :  { %3156 = vmatpush3.bf16.msra.mxu1 %v4095_v38  ;;  %3159 = vmatprep.mubr.msk.bf16.mxu1 %vm3816_vm9, %v3815_v14 }
 0x4b3   :  { %3157 = vmatprep.subr.bf16.mxu1 %v3815_v14 }
 0x4b6   :  { %3158 = vmatpush3.bf16.msra.mxu1 %v4102_v39 }
 0x4b7   :  { %3171 = vmatprep.subr.bf16.mxu1 %v3815_v14 }
 0x4c9   :  { %v4210_v13 = vpop.permute.xlu1 %746 }
 0x4ca   :  { %3152 = vmatmul.mubr.msk.bf16.vlgmr.msra.gmra.mrb[16].mxu0 %vm354_vm10, %v4210_v13 }
 0x4cb   :  { %3164 = vmatpush3.bf16.msra.mxu0 %v4117_v41  ;;  %3167 = vmatprep.mubr.msk.bf16.mxu0 %vm3816_vm9, %v3815_v14 }
 0x4cc   :  { %3165 = vmatprep.subr.bf16.mxu0 %v3815_v14 }
 0x4cf   :  { %3166 = vmatpush3.bf16.msra.mxu0 %v4123_v42 }
 0x4d0   :  { %3179 = vmatprep.subr.bf16.mxu0 %v3815_v14 }
 0x584   :  { %v713_v17 = vpop.f32.mrb[16].mxu1 }
 0x585   :  { %v719_v19 = vadd.f32 %v713_v17, %v4157_v9  ;;  %v3145_v21 = vpop.f32.mrb[17].mxu1 }
 0x586   :  { %v716_v22 = vpop.f32.mrb[18].mxu1 }
 0x587   :  { %3455 = vtanh.f32 %v719_v19  ;;  %v3146_v23 = vpop.f32.mrb[19].mxu1  ;;  %v2890_v37 = vmul.f32 -1.442695, %v719_v19 }
 0x591   :  { %v3456_v25 = vpop.eup %3455 }
 0x592   :  { %729 = vrot.lane.b32.xlu0 %v3456_v25, %s3807_s7 }
 0x59d   :  { %v785_v27 = vpop.f32.mrb[16].mxu0 }
 0x59e   :  { %v791_v29 = vadd.f32 %v785_v27, %v4176_v32  ;;  %v3153_v31 = vpop.f32.mrb[17].mxu0 }
 0x59f   :  { %v788_v33 = vpop.f32.mrb[18].mxu0 }
 0x5a0   :  { %3457 = vtanh.f32 %v791_v29  ;;  %v3154_v35 = vpop.f32.mrb[19].mxu0  ;;  %v2892_v44 = vmul.f32 -1.442695, %v791_v29 }
 0x5a1   :  { %3459 = vpow2.f32 %v2890_v37 }
 0x5aa   :  { %v3458_v36 = vpop.eup %3457 }
 0x5ab   :  { %801 = vrot.lane.b32.xlu1 %v3458_v36, %s3807_s7  ;;  %v3460_v9 = vpop.eup %3459 }
 0x5ac   :  { %v723_v43 = vadd.f32 1.0, %v3460_v9 }
 0x5ae   :  { %3461 = vrcp.f32 %v723_v43 }
 0x5af   :  { %3463 = vpow2.f32 %v2892_v44 }
 0x5b8   :  { %v3462_v45 = vpop.eup %3461 }
 0x5b9   :  { %v3464_v32 = vpop.eup %3463  ;;  %v727_v52 = vmul.f32 %v3462_v45, %v4185_v59 }
 0x5ba   :  { %v795_v48 = vadd.f32 1.0, %v3464_v32 }
 0x5bc   :  { %3465 = vrcp.f32 %v795_v48 }
 0x5c6   :  { %v3466_v49 = vpop.eup %3465 }
 0x5c7   :  { %v799_v56 = vmul.f32 %v3466_v49, %v4189_v63 }
 0x604   :  { %v730_v46 = vpop.permute.xlu0 %729 }
 0x605   :  { %v732_v47 = vmul.f32 %v3462_v45, %v730_v46 }
 0x607   :  { %734 = vrot.lane.b32.xlu0 %v732_v47, %s3817_s5 }
 0x61d   :  { %v802_v50 = vpop.permute.xlu1 %801 }
 0x61e   :  { %v804_v51 = vmul.f32 %v3466_v49, %v802_v50 }
 0x620   :  { %806 = vrot.lane.b32.xlu1 %v804_v51, %s3817_s5 }
 0x679   :  { %v735_v53 = vpop.permute.xlu0 %734 }
 0x67a   :  { %v4227_v54 = vadd.f32 %v735_v53, %v727_v52 }
 0x67c   :  { %3467 = vtanh.f32 %v4227_v54 }
 0x686   :  { %v3468_v55 = vpop.eup %3467 }
 0x687   :  { %740 = vrot.lane.b32.xlu0 %v3468_v55, %s3807_s7 }
 0x692   :  { %v807_v57 = vpop.permute.xlu1 %806 }
 0x693   :  { %v4232_v58 = vadd.f32 %v807_v57, %v799_v56 }
 0x695   :  { %3469 = vtanh.f32 %v4232_v58 }
 0x69f   :  { %v3470_v60 = vpop.eup %3469 }
 0x6a0   :  { %812 = vrot.lane.b32.xlu1 %v3470_v60, %s3807_s7 }
 0x6f9   :  { %v741_v61 = vpop.permute.xlu0 %740 }
 0x6fa   :  { %v4236_v59 = vmul.f32 %v3462_v45, %v741_v61 }
 0x6fc   :  { %v816_v62 = vpack.c.bf16 %v4236_v59, %v4236_v59 }
 0x6fe   :  { %818 = vrot.lane.b32.xlu0 %v816_v62, %s3817_s5 }
 0x712   :  { %v813_v1 = vpop.permute.xlu1 %812 }
 0x713   :  { %v4241_v2 = vmul.f32 %v3466_v49, %v813_v1 }
 0x715   :  { %v888_v63 = vpack.c.bf16 %v4241_v2, %v4241_v2 }
 0x717   :  { %890 = vrot.lane.b32.xlu1 %v888_v63, %s3817_s5 }
 0x770   :  { %v819_v5 = vpop.permute.xlu0 %818 }
 0x771   :  { %3160 = vmatmul.mubr.msk.bf16.vlgmr.msra.gmra.mrb[20].mxu1 %vm354_vm10, %v819_v5 }
 0x772   :  { %3172 = vmatpush3.bf16.msra.mxu1 %v4095_v38  ;;  %3175 = vmatprep.mubr.msk.bf16.mxu1 %vm3816_vm9, %v3815_v14 }
 0x773   :  { %3173 = vmatprep.subr.bf16.mxu1 %v3815_v14 }
 0x776   :  { %3174 = vmatpush3.bf16.msra.mxu1 %v4102_v39 }
 0x777   :  { %3187 = vmatprep.subr.bf16.mxu1 %v3815_v14 }
 0x789   :  { %v891_v6 = vpop.permute.xlu1 %890 }
 0x78a   :  { %3168 = vmatmul.mubr.msk.bf16.vlgmr.msra.gmra.mrb[20].mxu0 %vm354_vm10, %v891_v6 }
 0x78b   :  { %3180 = vmatpush3.bf16.msra.mxu0 %v4117_v41  ;;  %3183 = vmatprep.mubr.msk.bf16.mxu0 %vm3816_vm9, %v3815_v14 }
 0x78c   :  { %3181 = vmatprep.subr.bf16.mxu0 %v3815_v14 }
 0x78f   :  { %3182 = vmatpush3.bf16.msra.mxu0 %v4123_v42 }
 0x790   :  { %3195 = vmatprep.subr.bf16.mxu0 %v3815_v14 }
 0x844   :  { %v857_v10 = vpop.f32.mrb[20].mxu1 }
 0x845   :  { %v863_v11 = vadd.f32 %v857_v10, %v4153_v3  ;;  %v3161_v17 = vpop.f32.mrb[21].mxu1 }
 0x846   :  { %v860_v19 = vpop.f32.mrb[22].mxu1 }
 0x847   :  { %3471 = vtanh.f32 %v863_v11  ;;  %v3162_v21 = vpop.f32.mrb[23].mxu1  ;;  %v2894_v35 = vmul.f32 -1.442695, %v863_v11 }
 0x851   :  { %v3472_v22 = vpop.eup %3471 }
 0x852   :  { %873 = vrot.lane.b32.xlu0 %v3472_v22, %s3807_s7 }
 0x85d   :  { %v929_v23 = vpop.f32.mrb[20].mxu0 }
 0x85e   :  { %v935_v25 = vadd.f32 %v929_v23, %v4180_v40  ;;  %v3169_v27 = vpop.f32.mrb[21].mxu0 }
 0x85f   :  { %v932_v29 = vpop.f32.mrb[22].mxu0 }
 0x860   :  { %3473 = vtanh.f32 %v935_v25  ;;  %v3170_v31 = vpop.f32.mrb[23].mxu0  ;;  %v2896_v37 = vmul.f32 -1.442695, %v935_v25 }
 0x861   :  { %3475 = vpow2.f32 %v2894_v35 }
 0x86a   :  { %v3474_v33 = vpop.eup %3473 }
 0x86b   :  { %945 = vrot.lane.b32.xlu1 %v3474_v33, %s3807_s7  ;;  %v3476_v3 = vpop.eup %3475 }
 0x86c   :  { %v867_v36 = vadd.f32 1.0, %v3476_v3 }
 0x86e   :  { %3477 = vrcp.f32 %v867_v36 }
 0x86f   :  { %3479 = vpow2.f32 %v2896_v37 }
 0x878   :  { %v3478_v9 = vpop.eup %3477 }
 0x879   :  { %v3480_v40 = vpop.eup %3479  ;;  %v871_v48 = vmul.f32 %v3478_v9, %v4227_v54 }
 0x87a   :  { %v939_v45 = vadd.f32 1.0, %v3480_v40 }
 0x87c   :  { %3481 = vrcp.f32 %v939_v45 }
 0x886   :  { %v3482_v46 = vpop.eup %3481 }
 0x887   :  { %v943_v52 = vmul.f32 %v3482_v46, %v4232_v58 }
 0x8c4   :  { %v874_v43 = vpop.permute.xlu0 %873 }
 0x8c5   :  { %v876_v44 = vmul.f32 %v3478_v9, %v874_v43 }
 0x8c7   :  { %878 = vrot.lane.b32.xlu0 %v876_v44, %s3817_s5 }
 0x8dd   :  { %v946_v47 = vpop.permute.xlu1 %945 }
 0x8de   :  { %v948_v32 = vmul.f32 %v3482_v46, %v946_v47 }
 0x8e0   :  { %950 = vrot.lane.b32.xlu1 %v948_v32, %s3817_s5 }
 0x939   :  { %v879_v49 = vpop.permute.xlu0 %878 }
 0x93a   :  { %v4267_v50 = vadd.f32 %v879_v49, %v871_v48 }
 0x93c   :  { %3483 = vtanh.f32 %v4267_v50 }
 0x946   :  { %v3484_v51 = vpop.eup %3483 }
 0x947   :  { %884 = vrot.lane.b32.xlu0 %v3484_v51, %s3807_s7 }
 0x952   :  { %v951_v53 = vpop.permute.xlu1 %950 }
 0x953   :  { %v4272_v55 = vadd.f32 %v951_v53, %v943_v52 }
 0x955   :  { %3485 = vtanh.f32 %v4272_v55 }
 0x95f   :  { %v3486_v56 = vpop.eup %3485 }
 0x960   :  { %956 = vrot.lane.b32.xlu1 %v3486_v56, %s3807_s7 }
 0x9b9   :  { %v885_v57 = vpop.permute.xlu0 %884 }
 0x9ba   :  { %v4276_v54 = vmul.f32 %v3478_v9, %v885_v57 }
 0x9bc   :  { %v960_v60 = vpack.c.bf16 %v4276_v54, %v4276_v54 }
 0x9be   :  { %962 = vrot.lane.b32.xlu0 %v960_v60, %s3817_s5 }
 0x9d2   :  { %v957_v61 = vpop.permute.xlu1 %956 }
 0x9d3   :  { %v4281_v62 = vmul.f32 %v3482_v46, %v957_v61 }
 0x9d5   :  { %v1032_v58 = vpack.c.bf16 %v4281_v62, %v4281_v62 }
 0x9d7   :  { %1034 = vrot.lane.b32.xlu1 %v1032_v58, %s3817_s5 }
 0xa30   :  { %v963_v1 = vpop.permute.xlu0 %962 }
 0xa31   :  { %3176 = vmatmul.mubr.msk.bf16.vlgmr.msra.gmra.mrb[24].mxu1 %vm354_vm10, %v963_v1 }
 0xa32   :  { %3188 = vmatpush3.bf16.msra.mxu1 %v4095_v38  ;;  %3191 = vmatprep.mubr.msk.bf16.mxu1 %vm3816_vm9, %v3815_v14 }
 0xa33   :  { %3189 = vmatprep.subr.bf16.mxu1 %v3815_v14 }
 0xa36   :  { %3190 = vmatpush3.bf16.msra.mxu1 %v4102_v39 }
 0xa37   :  { %3203 = vmatprep.subr.bf16.mxu1 %v3815_v14 }
 0xa49   :  { %v1035_v63 = vpop.permute.xlu1 %1034 }
 0xa4a   :  { %3184 = vmatmul.mubr.msk.bf16.vlgmr.msra.gmra.mrb[24].mxu0 %vm354_vm10, %v1035_v63 }
 0xa4b   :  { %3196 = vmatpush3.bf16.msra.mxu0 %v4117_v41  ;;  %3199 = vmatprep.mubr.msk.bf16.mxu0 %vm3816_vm9, %v3815_v14 }
 0xa4c   :  { %3197 = vmatprep.subr.bf16.mxu0 %v3815_v14 }
 0xa4f   :  { %3198 = vmatpush3.bf16.msra.mxu0 %v4123_v42 }
 0xa50   :  { %3211 = vmatprep.subr.bf16.mxu0 %v3815_v14 }
 0xb04   :  { %v1001_v5 = vpop.f32.mrb[24].mxu1 }
 0xb05   :  { %v1007_v6 = vadd.f32 %v1001_v5, %v4155_v7  ;;  %v3177_v10 = vpop.f32.mrb[25].mxu1 }
 0xb06   :  { %v1004_v11 = vpop.f32.mrb[26].mxu1 }
 0xb07   :  { %3487 = vtanh.f32 %v1007_v6  ;;  %v3178_v17 = vpop.f32.mrb[27].mxu1  ;;  %v2898_v31 = vmul.f32 -1.442695, %v1007_v6 }
 0xb11   :  { %v3488_v19 = vpop.eup %3487 }
 0xb12   :  { %1017 = vrot.lane.b32.xlu0 %v3488_v19, %s3807_s7 }
 0xb1d   :  { %v1073_v21 = vpop.f32.mrb[24].mxu0 }
 0xb1e   :  { %v1079_v22 = vadd.f32 %v1073_v21, %v4178_v34  ;;  %v3185_v23 = vpop.f32.mrb[25].mxu0 }
 0xb1f   :  { %v1076_v25 = vpop.f32.mrb[26].mxu0 }
 0xb20   :  { %3489 = vtanh.f32 %v1079_v22  ;;  %v3186_v27 = vpop.f32.mrb[27].mxu0  ;;  %v2900_v35 = vmul.f32 -1.442695, %v1079_v22 }
 0xb21   :  { %3491 = vpow2.f32 %v2898_v31 }
 0xb2a   :  { %v3490_v29 = vpop.eup %3489 }
 0xb2b   :  { %1089 = vrot.lane.b32.xlu1 %v3490_v29, %s3807_s7  ;;  %v3492_v7 = vpop.eup %3491 }
 0xb2c   :  { %v1011_v33 = vadd.f32 1.0, %v3492_v7 }
 0xb2e   :  { %3493 = vrcp.f32 %v1011_v33 }
 0xb2f   :  { %3495 = vpow2.f32 %v2900_v35 }
 0xb38   :  { %v3494_v3 = vpop.eup %3493 }
 0xb39   :  { %v3496_v34 = vpop.eup %3495  ;;  %v1015_v45 = vmul.f32 %v3494_v3, %v4267_v50 }
 0xb3a   :  { %v1083_v9 = vadd.f32 1.0, %v3496_v34 }
 0xb3c   :  { %3497 = vrcp.f32 %v1083_v9 }
 0xb46   :  { %v3498_v43 = vpop.eup %3497 }
 0xb47   :  { %v1087_v48 = vmul.f32 %v3498_v43, %v4272_v55 }
 0xb84   :  { %v1018_v36 = vpop.permute.xlu0 %1017 }
 0xb85   :  { %v1020_v37 = vmul.f32 %v3494_v3, %v1018_v36 }
 0xb87   :  { %1022 = vrot.lane.b32.xlu0 %v1020_v37, %s3817_s5 }
 0xb9d   :  { %v1090_v44 = vpop.permute.xlu1 %1089 }
 0xb9e   :  { %v1092_v40 = vmul.f32 %v3498_v43, %v1090_v44 }
 0xba0   :  { %1094 = vrot.lane.b32.xlu1 %v1092_v40, %s3817_s5 }
 0xbf9   :  { %v1023_v46 = vpop.permute.xlu0 %1022 }
 0xbfa   :  { %v4307_v47 = vadd.f32 %v1023_v46, %v1015_v45 }
 0xbfc   :  { %3499 = vtanh.f32 %v4307_v47 }
 0xc06   :  { %v3500_v32 = vpop.eup %3499 }
 0xc07   :  { %1028 = vrot.lane.b32.xlu0 %v3500_v32, %s3807_s7 }
 0xc12   :  { %v1095_v49 = vpop.permute.xlu1 %1094 }
 0xc13   :  { %v4312_v51 = vadd.f32 %v1095_v49, %v1087_v48 }
 0xc15   :  { %3501 = vtanh.f32 %v4312_v51 }
 0xc1f   :  { %v3502_v52 = vpop.eup %3501 }
 0xc20   :  { %1100 = vrot.lane.b32.xlu1 %v3502_v52, %s3807_s7 }
 0xc79   :  { %v1029_v53 = vpop.permute.xlu0 %1028 }
 0xc7a   :  { %v4316_v50 = vmul.f32 %v3494_v3, %v1029_v53 }
 0xc7c   :  { %v1104_v56 = vpack.c.bf16 %v4316_v50, %v4316_v50 }
 0xc7e   :  { %1106 = vrot.lane.b32.xlu0 %v1104_v56, %s3817_s5 }
 0xc92   :  { %v1101_v57 = vpop.permute.xlu1 %1100 }
 0xc93   :  { %v4321_v60 = vmul.f32 %v3498_v43, %v1101_v57 }
 0xc95   :  { %v1176_v55 = vpack.c.bf16 %v4321_v60, %v4321_v60 }
 0xc97   :  { %1178 = vrot.lane.b32.xlu1 %v1176_v55, %s3817_s5 }
 0xcf0   :  { %v1107_v61 = vpop.permute.xlu0 %1106 }
 0xcf1   :  { %3192 = vmatmul.mubr.msk.bf16.vlgmr.msra.gmra.mrb[28].mxu1 %vm354_vm10, %v1107_v61 }
 0xcf2   :  { %3204 = vmatpush3.bf16.msra.mxu1 %v4095_v38  ;;  %3207 = vmatprep.mubr.msk.bf16.mxu1 %vm3816_vm9, %v3815_v14 }
 0xcf3   :  { %3205 = vmatprep.subr.bf16.mxu1 %v3815_v14 }
 0xcf6   :  { %3206 = vmatpush3.bf16.msra.mxu1 %v4102_v39 }
 0xcf7   :  { %3219 = vmatprep.subr.bf16.mxu1 %v3815_v14 }
 0xd09   :  { %v1179_v58 = vpop.permute.xlu1 %1178 }
 0xd0a   :  { %3200 = vmatmul.mubr.msk.bf16.vlgmr.msra.gmra.mrb[28].mxu0 %vm354_vm10, %v1179_v58 }
 0xd0b   :  { %3212 = vmatpush3.bf16.msra.mxu0 %v4117_v41  ;;  %3215 = vmatprep.mubr.msk.bf16.mxu0 %vm3816_vm9, %v3815_v14 }
 0xd0c   :  { %3213 = vmatprep.subr.bf16.mxu0 %v3815_v14 }
 0xd0f   :  { %3214 = vmatpush3.bf16.msra.mxu0 %v4123_v42 }
 0xd10   :  { %3227 = vmatprep.subr.bf16.mxu0 %v3815_v14 }
 0xdc4   :  { %v1145_v1 = vpop.f32.mrb[28].mxu1 }
 0xdc5   :  { %v1151_v63 = vadd.f32 %v1145_v1, %v4161_v15  ;;  %v3193_v5 = vpop.f32.mrb[29].mxu1 }
 0xdc6   :  { %v1148_v6 = vpop.f32.mrb[30].mxu1 }
 0xdc7   :  { %3503 = vtanh.f32 %v1151_v63  ;;  %v3194_v10 = vpop.f32.mrb[31].mxu1  ;;  %v2902_v27 = vmul.f32 -1.442695, %v1151_v63 }
 0xdd1   :  { %v3504_v11 = vpop.eup %3503 }
 0xdd2   :  { %1161 = vrot.lane.b32.xlu0 %v3504_v11, %s3807_s7 }
 0xddd   :  { %v1217_v17 = vpop.f32.mrb[28].mxu0 }
 0xdde   :  { %v1223_v19 = vadd.f32 %v1217_v17, %v4172_v28  ;;  %v3201_v21 = vpop.f32.mrb[29].mxu0 }
 0xddf   :  { %v1220_v22 = vpop.f32.mrb[30].mxu0 }
 0xde0   :  { %3505 = vtanh.f32 %v1223_v19  ;;  %v3202_v23 = vpop.f32.mrb[31].mxu0  ;;  %v2904_v31 = vmul.f32 -1.442695, %v1223_v19 }
 0xde1   :  { %3507 = vpow2.f32 %v2902_v27 }
 0xdea   :  { %v3506_v25 = vpop.eup %3505 }
 0xdeb   :  { %1233 = vrot.lane.b32.xlu1 %v3506_v25, %s3807_s7  ;;  %v3508_v15 = vpop.eup %3507 }
 0xdec   :  { %v1155_v29 = vadd.f32 1.0, %v3508_v15 }
 0xdee   :  { %3509 = vrcp.f32 %v1155_v29 }
 0xdef   :  { %3511 = vpow2.f32 %v2904_v31 }
 0xdf8   :  { %v3510_v7 = vpop.eup %3509 }
 0xdf9   :  { %v3512_v28 = vpop.eup %3511  ;;  %v1159_v9 = vmul.f32 %v3510_v7, %v4307_v47 }
 0xdfa   :  { %v1227_v3 = vadd.f32 1.0, %v3512_v28 }
 0xdfc   :  { %3513 = vrcp.f32 %v1227_v3 }
 0xe06   :  { %v3514_v36 = vpop.eup %3513 }
 0xe07   :  { %v1231_v45 = vmul.f32 %v3514_v36, %v4312_v51 }
 0xe44   :  { %v1162_v33 = vpop.permute.xlu0 %1161 }
 0xe45   :  { %v1164_v35 = vmul.f32 %v3510_v7, %v1162_v33 }
 0xe47   :  { %1166 = vrot.lane.b32.xlu0 %v1164_v35, %s3817_s5 }
 0xe5d   :  { %v1234_v37 = vpop.permute.xlu1 %1233 }
 0xe5e   :  { %v1236_v34 = vmul.f32 %v3514_v36, %v1234_v37 }
 0xe60   :  { %1238 = vrot.lane.b32.xlu1 %v1236_v34, %s3817_s5 }
 0xeb9   :  { %v1167_v43 = vpop.permute.xlu0 %1166 }
 0xeba   :  { %v4347_v44 = vadd.f32 %v1167_v43, %v1159_v9 }
 0xebc   :  { %3515 = vtanh.f32 %v4347_v44 }
 0xec6   :  { %v3516_v40 = vpop.eup %3515 }
 0xec7   :  { %1172 = vrot.lane.b32.xlu0 %v3516_v40, %s3807_s7 }
 0xed2   :  { %v1239_v46 = vpop.permute.xlu1 %1238 }
 0xed3   :  { %v4352_v32 = vadd.f32 %v1239_v46, %v1231_v45 }
 0xed5   :  { %3517 = vtanh.f32 %v4352_v32 }
 0xedf   :  { %v3518_v48 = vpop.eup %3517 }
 0xee0   :  { %1244 = vrot.lane.b32.xlu1 %v3518_v48, %s3807_s7 }
 0xf39   :  { %v1173_v49 = vpop.permute.xlu0 %1172 }
 0xf3a   :  { %v4356_v47 = vmul.f32 %v3510_v7, %v1173_v49 }
 0xf3c   :  { %v1248_v52 = vpack.c.bf16 %v4356_v47, %v4356_v47 }
 0xf3e   :  { %1250 = vrot.lane.b32.xlu0 %v1248_v52, %s3817_s5 }
 0xf52   :  { %v1245_v53 = vpop.permute.xlu1 %1244 }
 0xf53   :  { %v4361_v56 = vmul.f32 %v3514_v36, %v1245_v53 }
 0xf55   :  { %v1320_v51 = vpack.c.bf16 %v4361_v56, %v4361_v56 }
 0xf57   :  { %1322 = vrot.lane.b32.xlu1 %v1320_v51, %s3817_s5 }
 0xfb0   :  { %v1251_v57 = vpop.permute.xlu0 %1250 }
 0xfb1   :  { %3208 = vmatmul.mubr.msk.bf16.vlgmr.msra.gmra.mrb[32].mxu1 %vm354_vm10, %v1251_v57 }
 0xfb2   :  { %3220 = vmatpush3.bf16.msra.mxu1 %v4095_v38  ;;  %3223 = vmatprep.mubr.msk.bf16.mxu1 %vm3816_vm9, %v3815_v14 }
 0xfb3   :  { %3221 = vmatprep.subr.bf16.mxu1 %v3815_v14 }
 0xfb6   :  { %3222 = vmatpush3.bf16.msra.mxu1 %v4102_v39 }
 0xfb7   :  { %3235 = vmatprep.subr.bf16.mxu1 %v3815_v14 }
 0xfc9   :  { %v1323_v55 = vpop.permute.xlu1 %1322 }
 0xfca   :  { %3216 = vmatmul.mubr.msk.bf16.vlgmr.msra.gmra.mrb[32].mxu0 %vm354_vm10, %v1323_v55 }
 0xfcb   :  { %3228 = vmatpush3.bf16.msra.mxu0 %v4117_v41  ;;  %3231 = vmatprep.mubr.msk.bf16.mxu0 %vm3816_vm9, %v3815_v14 }
 0xfcc   :  { %3229 = vmatprep.subr.bf16.mxu0 %v3815_v14 }
 0xfcf   :  { %3230 = vmatpush3.bf16.msra.mxu0 %v4123_v42 }
 0xfd0   :  { %3243 = vmatprep.subr.bf16.mxu0 %v3815_v14 }
0x1084   :  { %v1289_v61 = vpop.f32.mrb[32].mxu1 }
0x1085   :  { %v1295_v58 = vadd.f32 %v1289_v61, %v4165_v20  ;;  %v3209_v1 = vpop.f32.mrb[33].mxu1 }
0x1086   :  { %v1292_v63 = vpop.f32.mrb[34].mxu1 }
0x1087   :  { %3519 = vtanh.f32 %v1295_v58  ;;  %v3210_v5 = vpop.f32.mrb[35].mxu1  ;;  %v2906_v23 = vmul.f32 -1.442695, %v1295_v58 }
0x1091   :  { %v3520_v6 = vpop.eup %3519 }
0x1092   :  { %1305 = vrot.lane.b32.xlu0 %v3520_v6, %s3807_s7 }
0x109d   :  { %v1361_v10 = vpop.f32.mrb[32].mxu0 }
0x109e   :  { %v1367_v11 = vadd.f32 %v1361_v10, %v4167_v24  ;;  %v3217_v17 = vpop.f32.mrb[33].mxu0 }
0x109f   :  { %v1364_v19 = vpop.f32.mrb[34].mxu0 }
0x10a0   :  { %3521 = vtanh.f32 %v1367_v11  ;;  %v3218_v21 = vpop.f32.mrb[35].mxu0  ;;  %v2908_v27 = vmul.f32 -1.442695, %v1367_v11 }
0x10a1   :  { %3523 = vpow2.f32 %v2906_v23 }
0x10aa   :  { %v3522_v22 = vpop.eup %3521 }
0x10ab   :  { %1377 = vrot.lane.b32.xlu1 %v3522_v22, %s3807_s7  ;;  %v3524_v20 = vpop.eup %3523 }
0x10ac   :  { %v1299_v25 = vadd.f32 1.0, %v3524_v20 }
0x10ae   :  { %3525 = vrcp.f32 %v1299_v25 }
0x10af   :  { %3527 = vpow2.f32 %v2908_v27 }
0x10b8   :  { %v3526_v15 = vpop.eup %3525 }
0x10b9   :  { %v3528_v24 = vpop.eup %3527  ;;  %v1303_v3 = vmul.f32 %v3526_v15, %v4347_v44 }
0x10ba   :  { %v1371_v7 = vadd.f32 1.0, %v3528_v24 }
0x10bc   :  { %3529 = vrcp.f32 %v1371_v7 }
0x10c6   :  { %v3530_v33 = vpop.eup %3529 }
0x10c7   :  { %v1375_v9 = vmul.f32 %v3530_v33, %v4352_v32 }
0x1104   :  { %v1306_v29 = vpop.permute.xlu0 %1305 }
0x1105   :  { %v1308_v31 = vmul.f32 %v3526_v15, %v1306_v29 }
0x1107   :  { %1310 = vrot.lane.b32.xlu0 %v1308_v31, %s3817_s5 }
0x111d   :  { %v1378_v35 = vpop.permute.xlu1 %1377 }
0x111e   :  { %v1380_v28 = vmul.f32 %v3530_v33, %v1378_v35 }
0x1120   :  { %1382 = vrot.lane.b32.xlu1 %v1380_v28, %s3817_s5 }
0x1179   :  { %v1311_v36 = vpop.permute.xlu0 %1310 }
0x117a   :  { %v4387_v37 = vadd.f32 %v1311_v36, %v1303_v3 }
0x117c   :  { %3531 = vtanh.f32 %v4387_v37 }
0x1186   :  { %v3532_v34 = vpop.eup %3531 }
0x1187   :  { %1316 = vrot.lane.b32.xlu0 %v3532_v34, %s3807_s7 }
0x1192   :  { %v1383_v43 = vpop.permute.xlu1 %1382 }
0x1193   :  { %v4392_v40 = vadd.f32 %v1383_v43, %v1375_v9 }
0x1195   :  { %3533 = vtanh.f32 %v4392_v40 }
0x119f   :  { %v3534_v45 = vpop.eup %3533 }
0x11a0   :  { %1388 = vrot.lane.b32.xlu1 %v3534_v45, %s3807_s7  ;;  %v3423_v45 = vld [vmem:[#allocation9] sm:$0xff]  }
0x11f9   :  { %v1317_v46 = vpop.permute.xlu0 %1316 }
0x11fa   :  { %v4396_v44 = vmul.f32 %v3526_v15, %v1317_v46 }
0x11fc   :  { %v1392_v48 = vpack.c.bf16 %v4396_v44, %v4396_v44 }
0x11fe   :  { %1394 = vrot.lane.b32.xlu0 %v1392_v48, %s3817_s5  ;;  %v3424_v48 = vld [vmem:[#allocation9 + $0x8] sm:$0xff]  }
0x1212   :  { %v1389_v49 = vpop.permute.xlu1 %1388 }
0x1213   :  { %v4401_v52 = vmul.f32 %v3530_v33, %v1389_v49 }
0x1215   :  { %v1464_v32 = vpack.c.bf16 %v4401_v52, %v4401_v52 }
0x1217   :  { %1466 = vrot.lane.b32.xlu1 %v1464_v32, %s3817_s5 }
0x1270   :  { %v1395_v53 = vpop.permute.xlu0 %1394 }
0x1271   :  { %3224 = vmatmul.mubr.msk.bf16.vlgmr.msra.gmra.mrb[36].mxu1 %vm354_vm10, %v1395_v53 }
0x1272   :  { %3236 = vmatpush3.bf16.msra.mxu1 %v4095_v38  ;;  %3239 = vmatprep.mubr.msk.bf16.mxu1 %vm3816_vm9, %v3815_v14 }
0x1273   :  { %3237 = vmatprep.subr.bf16.mxu1 %v3815_v14 }
0x1276   :  { %3238 = vmatpush3.bf16.msra.mxu1 %v4102_v39 }
0x1289   :  { %v1467_v51 = vpop.permute.xlu1 %1466 }
0x128a   :  { %3232 = vmatmul.mubr.msk.bf16.vlgmr.msra.gmra.mrb[36].mxu0 %vm354_vm10, %v1467_v51 }
0x128b   :  { %3244 = vmatpush3.bf16.msra.mxu0 %v4117_v41  ;;  %3247 = vmatprep.mubr.msk.bf16.mxu0 %vm3816_vm9, %v3815_v14 }
0x128c   :  { %3245 = vmatprep.subr.bf16.mxu0 %v3815_v14 }
0x128f   :  { %3246 = vmatpush3.bf16.msra.mxu0 %v4123_v42 }
0x1290   :  { %3275 = vmatprep.subr.bf16.mxu0 %v3815_v14 }
0x1344   :  { %v1433_v38 = vpop.f32.mrb[36].mxu1 }
0x1345   :  { %v1439_v57 = vadd.f32 %v1433_v38, %v4159_v12  ;;  %v3225_v55 = vpop.f32.mrb[37].mxu1 }
0x1346   :  { %v1436_v61 = vpop.f32.mrb[38].mxu1 }
0x1347   :  { %3535 = vtanh.f32 %v1439_v57  ;;  %v3226_v39 = vpop.f32.mrb[39].mxu1  ;;  %v2910_v10 = vmul.f32 -1.442695, %v1439_v57 }
0x1351   :  { %v3536_v58 = vpop.eup %3535 }
0x1352   :  { %1449 = vrot.lane.b32.xlu0 %v3536_v58, %s3807_s7 }
0x135d   :  { %v1505_v41 = vpop.f32.mrb[36].mxu0 }
0x135e   :  { %v1511_v1 = vadd.f32 %v1505_v41, %v4174_v30  ;;  %v3233_v63 = vpop.f32.mrb[37].mxu0 }
0x135f   :  { %v1508_v5 = vpop.f32.mrb[38].mxu0 }
0x1360   :  { %3537 = vtanh.f32 %v1511_v1  ;;  %v3234_v6 = vpop.f32.mrb[39].mxu0  ;;  %v2912_v17 = vmul.f32 -1.442695, %v1511_v1 }
0x1361   :  { %3539 = vpow2.f32 %v2910_v10 }
0x136a   :  { %v3538_v42 = vpop.eup %3537 }
0x136b   :  { %1521 = vrot.lane.b32.xlu1 %v3538_v42, %s3807_s7  ;;  %v3540_v12 = vpop.eup %3539 }
0x136c   :  { %v1443_v11 = vadd.f32 1.0, %v3540_v12 }
0x136e   :  { %3541 = vrcp.f32 %v1443_v11 }
0x136f   :  { %3543 = vpow2.f32 %v2912_v17 }
0x1378   :  { %v3542_v19 = vpop.eup %3541 }
0x1379   :  { %v3544_v30 = vpop.eup %3543  ;;  %v1447_v15 = vmul.f32 %v3542_v19, %v4387_v37 }
0x137a   :  { %v1515_v23 = vadd.f32 1.0, %v3544_v30 }
0x137c   :  { %3545 = vrcp.f32 %v1515_v23 }
0x1386   :  { %v3546_v20 = vpop.eup %3545 }
0x1387   :  { %v1519_v7 = vmul.f32 %v3546_v20, %v4392_v40 }
0x13c4   :  { %v1450_v21 = vpop.permute.xlu0 %1449 }
0x13c5   :  { %v1452_v22 = vmul.f32 %v3542_v19, %v1450_v21 }
0x13c7   :  { %1454 = vrot.lane.b32.xlu0 %v1452_v22, %s3817_s5 }
0x13dd   :  { %v1522_v25 = vpop.permute.xlu1 %1521 }
0x13de   :  { %v1524_v27 = vmul.f32 %v3546_v20, %v1522_v25 }
0x13e0   :  { %1526 = vrot.lane.b32.xlu1 %v1524_v27, %s3817_s5 }
0x1439   :  { %v1455_v29 = vpop.permute.xlu0 %1454 }
0x143a   :  { %v4426_v31 = vadd.f32 %v1455_v29, %v1447_v15  ;;  %v3425_v29 = vld [vmem:[#allocation7] sm:$0xff]  }
0x143c   :  { %3547 = vtanh.f32 %v4426_v31 }
0x1446   :  { %v3548_v24 = vpop.eup %3547 }
0x1447   :  { %1460 = vrot.lane.b32.xlu0 %v3548_v24, %s3807_s7  ;;  %v3426_v24 = vld [vmem:[#allocation7 + $0x8] sm:$0xff]  }
0x1452   :  { %v1527_v33 = vpop.permute.xlu1 %1526 }
0x1453   :  { %v4431_v35 = vadd.f32 %v1527_v33, %v1519_v7 }
0x1455   :  { %3549 = vtanh.f32 %v4431_v35 }
0x145f   :  { %v3550_v28 = vpop.eup %3549 }
0x1460   :  { %1532 = vrot.lane.b32.xlu1 %v3550_v28, %s3807_s7  ;;  %v3430_v28 = vld [vmem:[%s4691_s9 + $0x8] sm:$0xff]  }
0x14b9   :  { %v1461_v3 = vpop.permute.xlu0 %1460 }
0x14ba   :  { %v4435_v36 = vmul.f32 %v3542_v19, %v1461_v3  ;;  %v1686_v3 = vpack.c.bf16 %v4281_v62, %v4321_v60  ;;  %v1685_v62 = vpack.c.bf16 %v4361_v56, %v4401_v52  ;;  %v3427_v60 = vld [vmem:[#allocation10] sm:$0xff]  }
0x14bc   :  { %v1536_v37 = vpack.c.bf16 %v4435_v36, %v4435_v36 }
0x14be   :  { %1538 = vrot.lane.b32.xlu0 %v1536_v37, %s3817_s5  ;;  %v1680_v37 = vpack.c.bf16 %v4236_v59, %v4193_v4  ;;  %v1687_v4 = vpack.c.bf16 %v4198_v8, %v4241_v2  ;;  %v1681_v59 = vpack.c.bf16 %v4316_v50, %v4276_v54  ;;  %v4506_v8 = vld [vmem:[%s4692_s10] sm:$0xff]   ;;  %v4513_v2 = vld [vmem:[%s4692_s10 + $0x8] sm:$0xff]  }
0x14bf   :  { %v3432_v50 = vld [vmem:[%s4690_s8 + $0x8] sm:$0xff]  }
0x14d2   :  { %v1533_v34 = vpop.permute.xlu1 %1532 }
0x14d3   :  { %v4440_v9 = vmul.f32 %v3546_v20, %v1533_v34  ;;  %v3431_v34 = vld [vmem:[%s4690_s8] sm:$0xff]  }
0x14d5   :  { %v1608_v43 = vpack.c.bf16 %v4440_v9, %v4440_v9 }
0x14d7   :  { %1610 = vrot.lane.b32.xlu1 %v1608_v43, %s3817_s5 }
0x1530   :  { %v1539_v40 = vpop.permute.xlu0 %1538 }
0x1531   :  { %3240 = vmatmul.mubr.msk.bf16.vlgmr.msra.gmra.mrb[40].mxu1 %vm354_vm10, %v1539_v40 }
0x1549   :  { %v1611_v46 = vpop.permute.xlu1 %1610 }
0x154a   :  { %3248 = vmatmul.mubr.msk.bf16.vlgmr.msra.gmra.mrb[40].mxu0 %vm354_vm10, %v1611_v46 }
0x154b   :  { %3276 = vmatpush3.bf16.msra.mxu0 %v3423_v45  ;;  %3279 = vmatprep.mubr.msk.bf16.mxu0 %vm3816_vm9, %v3815_v14 }
0x154c   :  { %3277 = vmatprep.subr.bf16.mxu0 %v3815_v14 }
0x154f   :  { %3278 = vmatpush3.bf16.msra.mxu0 %v3424_v48 }
0x1550   :  { %3283 = vmatprep.subr.bf16.mxu0 %v3815_v14 }
0x1552   :  { %3280 = vmatmul.mubr.msk.bf16.vlgmr.msra.gmra.mrb[44].mxu0 %vm354_vm10, %v4210_v13 }
0x1553   :  { %3287 = vmatprep.mubr.msk.bf16.mxu0 %vm3816_vm9, %v3815_v14  ;;  %3284 = vmatpush3.bf16.msra.mxu0 %v3425_v29 }
0x1554   :  { %3285 = vmatprep.subr.bf16.mxu0 %v3815_v14 }
0x1557   :  { %3286 = vmatpush3.bf16.msra.mxu0 %v3426_v24 }
0x1558   :  { %3291 = vmatprep.subr.bf16.mxu0 %v3815_v14 }
0x1604   :  { %v1577_v49 = vpop.f32.mrb[40].mxu1 }
0x1605   :  { %v1583_v32 = vadd.f32 %v1577_v49, %v4163_v18  ;;  %v3241_v53 = vpop.f32.mrb[41].mxu1 }
0x1606   :  { %v1580_v51 = vpop.f32.mrb[42].mxu1 }
0x1607   :  { %3551 = vtanh.f32 %v1583_v32  ;;  %v3242_v38 = vpop.f32.mrb[43].mxu1  ;;  %v2914_v1 = vmul.f32 -1.442695, %v1583_v32 }
0x1611   :  { %v3552_v57 = vpop.eup %3551 }
0x1612   :  { %1593 = vrot.lane.b32.xlu0 %v3552_v57, %s3807_s7 }
0x161d   :  { %v1649_v55 = vpop.f32.mrb[40].mxu0 }
0x161e   :  { %v1655_v61 = vadd.f32 %v1649_v55, %v4170_v26  ;;  %v3249_v39 = vpop.f32.mrb[41].mxu0 }
0x161f   :  { %v1652_v58 = vpop.f32.mrb[42].mxu0 }
0x1620   :  { %3553 = vtanh.f32 %v1655_v61  ;;  %v3250_v13 = vpop.f32.mrb[43].mxu0  ;;  %v2916_v5 = vmul.f32 -1.442695, %v1655_v61  ;;  %v4543_v58 = vld [vmem:[#allocation6] ss:$0 sm:$0xff] }
0x1621   :  { %3555 = vpow2.f32 %v2914_v1 }
0x162a   :  { %v3554_v41 = vpop.eup %3553 }
0x162b   :  { %1665 = vrot.lane.b32.xlu1 %v3554_v41, %s3807_s7  ;;  %v3556_v18 = vpop.eup %3555 }
0x162c   :  { %v1587_v63 = vadd.f32 1.0, %v3556_v18 }
0x162e   :  { %3557 = vrcp.f32 %v1587_v63 }
0x162f   :  { %3559 = vpow2.f32 %v2916_v5 }
0x1638   :  { %v3558_v6 = vpop.eup %3557 }
0x1639   :  { %v3560_v26 = vpop.eup %3559  ;;  %v1591_v21 = vmul.f32 %v3558_v6, %v4426_v31 }
0x163a   :  { %v1659_v12 = vadd.f32 1.0, %v3560_v26 }
0x163c   :  { %3561 = vrcp.f32 %v1659_v12 }
0x1646   :  { %v3562_v11 = vpop.eup %3561 }
0x1647   :  { %v1663_v20 = vmul.f32 %v3562_v11, %v4431_v35  ;;  %v3429_v35 = vld [vmem:[%s4691_s9] sm:$0xff]  }
0x1648   :  { %3251 = vmatprep.subr.bf16.mxu1 %v3429_v35 }
0x1649   :  { %3252 = vmatpush3.bf16.msra.mxu1 %v3429_v35 }
0x164a   :  { %3253 = vmatprep.subr.bf16.mxu1 %v3430_v28 }
0x164d   :  { %3254 = vmatpush3.bf16.msra.mxu1 %v3430_v28 }
0x164e   :  { %3263 = vmatprep.subr.bf16.mxu1 %v3431_v34 }
0x1684   :  { %v1594_v42 = vpop.permute.xlu0 %1593 }
0x1685   :  { %v1596_v10 = vmul.f32 %v3558_v6, %v1594_v42 }
0x1687   :  { %1598 = vrot.lane.b32.xlu0 %v1596_v10, %s3817_s5 }
0x169d   :  { %v1666_v17 = vpop.permute.xlu1 %1665 }
0x169e   :  { %v1668_v19 = vmul.f32 %v3562_v11, %v1666_v17 }
0x16a0   :  { %1670 = vrot.lane.b32.xlu1 %v1668_v19, %s3817_s5  ;;  %v1682_v19 = vpack.c.bf16 %v4396_v44, %v4356_v47 }
0x16f9   :  { %v1599_v22 = vpop.permute.xlu0 %1598 }
0x16fa   :  { %v1601_v30 = vadd.f32 %v1599_v22, %v1591_v21 }
0x16fc   :  { %3563 = vtanh.f32 %v1601_v30 }
0x1706   :  { %v3564_v23 = vpop.eup %3563 }
0x1707   :  { %1604 = vrot.lane.b32.xlu0 %v3564_v23, %s3807_s7 }
0x1712   :  { %v1671_v25 = vpop.permute.xlu1 %1670 }
0x1713   :  { %v1673_v27 = vadd.f32 %v1671_v25, %v1663_v20 }
0x1715   :  { %3565 = vtanh.f32 %v1673_v27 }
0x171f   :  { %v3566_v15 = vpop.eup %3565 }
0x1720   :  { %1676 = vrot.lane.b32.xlu1 %v3566_v15, %s3807_s7 }
0x1779   :  { %v1605_v31 = vpop.permute.xlu0 %1604 }
0x177a   :  { %v4467_v7 = vmul.f32 %v3558_v6, %v1605_v31 }
0x177c   :  { %v1688_v33 = vpack.c.bf16 %v4467_v7, %v4467_v7  ;;  %v1683_v25 = vpack.c.bf16 %v4467_v7, %v4435_v36 }
0x177e   :  { %1984 = vrot.lane.b32.xlu1 %v1688_v33, %s3817_s5 }
0x1782   :  { %1723 = vrot.lane.b32.xlu1 %v1686_v3, %s3817_s5 }
0x1786   :  { %1820 = vrot.lane.b32.xlu1 %v1680_v37, %s3817_s5 }
0x1792   :  { %v1677_v43 = vpop.permute.xlu1 %1676 }
0x1793   :  { %v1679_v40 = vmul.f32 %v3562_v11, %v1677_v43 }
0x1795   :  { %v1684_v45 = vpack.c.bf16 %v4440_v9, %v1679_v40  ;;  %v3428_v9 = vld [vmem:[#allocation10 + $0x8] sm:$0xff]  }
0x1797   :  { %1719 = vrot.lane.b32.xlu0 %v1684_v45, %s3817_s5 }
0x179b   :  { %1721 = vrot.lane.b32.xlu0 %v1685_v62, %s3817_s5 }
0x179f   :  { %1725 = vrot.lane.b32.xlu0 %v1687_v4, %s3817_s5 }
0x17a3   :  { %1822 = vrot.lane.b32.xlu0 %v1681_v59, %s3817_s5 }
0x17f0   :  { %v1985_v46 = vpop.permute.xlu1 %1984 }
0x17f1   :  { %3288 = vmatmul.mubr.msk.bf16.vlgmr.msra.gmra.mrb[44].mxu0 %vm354_vm10, %v1985_v46 }
0x17f2   :  { %3292 = vmatpush3.bf16.msra.mxu0 %v3427_v60  ;;  %3295 = vmatprep.mubr.msk.bf16.mxu0 %vm3816_vm9, %v3815_v14 }
0x17f3   :  { %3293 = vmatprep.subr.bf16.mxu0 %v3815_v14 }
0x17f6   :  { %3294 = vmatpush3.bf16.msra.mxu0 %v3428_v9 }
0x17f7   :  { %3299 = vmatprep.subr.bf16.mxu0 %v3815_v14 }
0x17fd   :  { %3296 = vmatmul.mubr.bf16.vlgmr.msra.gmra.mrb[44].mxu0 %v3814_v0 }
0x17fe   :  { %3300 = vmatpush3.bf16.msra.mxu0 %v4506_v8  ;;  %3303 = vmatprep.mubr.msk.bf16.mxu0 %vm3816_vm9, %v3815_v14 }
0x17ff   :  { %3301 = vmatprep.subr.bf16.mxu0 %v3815_v14 }
0x1802   :  { %3302 = vmatpush3.bf16.msra.mxu0 %v4513_v2 }
0x1803   :  { %3315 = vmatprep.subr.bf16.mxu0 %v3815_v14 }
0x1805   :  { %3304 = vmatmul.mubr.bf16.vlgmr.msra.gmra.mrb[48].mxu0 %v3814_v0  ;;  %v1724_v0 = vpop.permute.xlu1 %1723 }
0x1806   :  { %3316 = vmatpush3.bf16.msra.mxu0 %v4506_v8  ;;  %3319 = vmatprep.mubr.msk.bf16.mxu0 %vm3816_vm9, %v3815_v14 }
0x1807   :  { %3317 = vmatprep.subr.bf16.mxu0 %v3815_v14 }
0x1809   :  { %v1720_v54 = vpop.permute.xlu0 %1719  ;;  %v1821_v48 = vpop.permute.xlu1 %1820 }
0x180a   :  { %3255 = vmatprep.mubr.msk.bf16.mxu1 %vm354_vm10, %v1720_v54  ;;  %3318 = vmatpush3.bf16.msra.mxu0 %v4513_v2 }
0x180b   :  { %3331 = vmatprep.subr.bf16.mxu0 %v3815_v14 }
0x180d   :  { %v1722_v56 = vpop.permute.xlu0 %1721 }
0x180e   :  { %3256 = vmatmul.mubr.msk.bf16.vlgmr.msra.gmra.mrb[44].mxu1 %vm354_vm10, %v1722_v56 }
0x180f   :  { %3264 = vmatpush3.bf16.msra.mxu1 %v3431_v34  ;;  %3259 = vmatprep.mubr.msk.bf16.mxu1 %vm354_vm10, %v1724_v0 }
0x1810   :  { %3265 = vmatprep.subr.bf16.mxu1 %v3432_v50 }
0x1811   :  { %v1726_v52 = vpop.permute.xlu0 %1725 }
0x1813   :  { %3266 = vmatpush3.bf16.msra.mxu1 %v3432_v50 }
0x1814   :  { %3307 = vmatprep.subr.bf16.mxu1 %v3815_v14 }
0x1815   :  { %v1823_v49 = vpop.permute.xlu0 %1822 }
0x1816   :  { %3260 = vmatmul.mubr.msk.bf16.gmra.mrb[48].mxu1 %vm354_vm10, %v1726_v52 }
0x1817   :  { %3267 = vmatprep.mubr.msk.bf16.mxu1 %vm354_vm10, %v1821_v48 }
0x181e   :  { %3268 = vmatmul.mubr.msk.bf16.vlgmr.msra.gmra.mrb[44].mxu1 %vm354_vm10, %v1823_v49 }
0x181f   :  { %3308 = vmatpush3.bf16.msra.mxu1 %v4506_v8 }
0x1820   :  { %3309 = vmatprep.subr.bf16.mxu1 %v3815_v14 }
0x1823   :  { %3310 = vmatpush3.bf16.msra.mxu1 %v4513_v2 }
0x1824   :  { %3323 = vmatprep.subr.bf16.mxu1 %v3815_v14 }
0x18d0   :  { %v4541_v32 = vpop.f32.mrb[44].mxu0 }
0x18d1   :  { %v3297_v53 = vpop.f32.mrb[45].mxu0 }
0x18d2   :  { %v2097_v51 = vpop.f32.mrb[46].mxu0 }
0x18d3   :  { %v3298_v38 = vpop.f32.mrb[47].mxu0 }
0x18d8   :  { %v2171_v57 = vpop.f32.mrb[48].mxu0 }
0x18d9   :  { %v3305_v55 = vpop.f32.mrb[49].mxu0 }
0x18da   :  { %v2174_v61 = vpop.f32.mrb[50].mxu0 }
0x18db   :  { %v3306_v39 = vpop.f32.mrb[51].mxu0 }
0x18f1   :  { %v4545_v13 = vpop.f32.mrb[44].mxu1 }
0x18f2   :  { %v1886_v41 = vpop.f32.mrb[45].mxu1  ;;  %v1925_v49 = vadd.f32 %v4545_v13, %v4543_v58 }
0x18f3   :  { %v1923_v1 = vadd.f32 %v4543_v58, %v1886_v41  ;;  %v4548_v18 = vpop.f32.mrb[46].mxu1 }
0x18f4   :  { %v1889_v63 = vpop.f32.mrb[47].mxu1 }
0x18f5   :  { %v2177_v5 = vadd.f32 %v2171_v57, %v1923_v1  ;;  %v1924_v33 = vadd.f32 %v4543_v58, %v1889_v63 }
0x18f7   :  { %3567 = vtanh.f32 %v2177_v5  ;;  %v2942_v42 = vmul.f32 -1.442695, %v2177_v5 }
0x18f9   :  { %3569 = vpow2.f32 %v2942_v42 }
0x1901   :  { %v3568_v6 = vpop.eup %3567 }
0x1902   :  { %2187 = vrot.lane.b32.xlu1 %v3568_v6, %s3807_s7 }
0x1903   :  { %v3570_v10 = vpop.eup %3569 }
0x1904   :  { %v2181_v26 = vadd.f32 1.0, %v3570_v10 }
0x1906   :  { %3571 = vrcp.f32 %v2181_v26 }
0x1910   :  { %v3572_v12 = vpop.eup %3571 }
0x1911   :  { %v2185_v21 = vmul.f32 0.0, %v3572_v12 }
0x1974   :  { %v2188_v11 = vpop.permute.xlu1 %2187 }
0x1975   :  { %v2190_v17 = vmul.f32 %v3572_v12, %v2188_v11 }
0x1977   :  { %2192 = vrot.lane.b32.xlu0 %v2190_v17, %s3817_s5 }
0x197b   :  { %1824 = vrot.lane.b32.xlu0 %v1682_v19, %s3817_s5 }
0x19e9   :  { %v2193_v22 = vpop.permute.xlu0 %2192 }
0x19ea   :  { %v2195_v30 = vadd.f32 %v2193_v22, %v2185_v21  ;;  %v1926_v21 = vadd.f32 %v4548_v18, %v4543_v58 }
0x19ec   :  { %3573 = vtanh.f32 %v2195_v30 }
0x19ed   :  { %v1825_v23 = vpop.permute.xlu0 %1824 }
0x19ee   :  { %3271 = vmatprep.mubr.msk.bf16.mxu1 %vm354_vm10, %v1825_v23 }
0x19f6   :  { %v3574_v20 = vpop.eup %3573 }
0x19f7   :  { %2198 = vrot.lane.b32.xlu1 %v3574_v20, %s3807_s7 }
0x19fb   :  { %1826 = vrot.lane.b32.xlu1 %v1683_v25, %s3817_s5 }
0x1a69   :  { %v2199_v27 = vpop.permute.xlu1 %2198 }
0x1a6a   :  { %v2201_v15 = vmul.f32 %v3572_v12, %v2199_v27 }
0x1a6c   :  { %v2202_v47 = vpack.c.bf16 %v2201_v15, %v2201_v15 }
0x1a6d   :  { %v1827_v44 = vpop.permute.xlu1 %1826 }
0x1a6e   :  { %2204 = vrot.lane.b32.xlu0 %v2202_v47, %s3817_s5  ;;  %3272 = vmatmul.mubr.msk.bf16.gmra.mrb[48].mxu1 %vm354_vm10, %v1827_v44 }
0x1a6f   :  { %3311 = vmatprep.mubr.msk.bf16.mxu1 %vm3816_vm9, %v3815_v14 }
0x1ae0   :  { %v2205_v29 = vpop.permute.xlu0 %2204 }
0x1ae1   :  { %3312 = vmatmul.mubr.msk.bf16.vlgmr.msra.gmra.mrb[52].mxu1 %vm354_vm10, %v2205_v29 }
0x1ae2   :  { %3324 = vmatpush3.bf16.msra.mxu1 %v4506_v8  ;;  %3327 = vmatprep.mubr.msk.bf16.mxu1 %vm3816_vm9, %v3815_v14 }
0x1ae3   :  { %3325 = vmatprep.subr.bf16.mxu1 %v3815_v14 }
0x1ae6   :  { %3326 = vmatpush3.bf16.msra.mxu1 %v4513_v2 }
0x1ae7   :  { %3339 = vmatprep.subr.bf16.mxu1 %v3815_v14 }
0x1b41   :  { %v4571_v36 = vpop.f32.mrb[48].mxu1 }
0x1b42   :  { %v4573_v24 = vpop.f32.mrb[49].mxu1 }
0x1b43   :  { %v4575_v31 = vpop.f32.mrb[50].mxu1 }
0x1b44   :  { %v4577_v7 = vpop.f32.mrb[51].mxu1 }
0x1bb4   :  { %v2243_v35 = vpop.f32.mrb[52].mxu1 }
0x1bb5   :  { %v2249_v28 = vadd.f32 %v2243_v35, %v1924_v33  ;;  %v3313_v3 = vpop.f32.mrb[53].mxu1 }
0x1bb6   :  { %v2246_v37 = vpop.f32.mrb[54].mxu1 }
0x1bb7   :  { %3575 = vtanh.f32 %v2249_v28  ;;  %v3314_v34 = vpop.f32.mrb[55].mxu1  ;;  %v2944_v40 = vmul.f32 -1.442695, %v2249_v28 }
0x1bb9   :  { %3577 = vpow2.f32 %v2944_v40 }
0x1bc1   :  { %v3576_v43 = vpop.eup %3575 }
0x1bc2   :  { %2259 = vrot.lane.b32.xlu1 %v3576_v43, %s3807_s7 }
0x1bc3   :  { %v3578_v45 = vpop.eup %3577 }
0x1bc4   :  { %v2253_v62 = vadd.f32 1.0, %v3578_v45 }
0x1bc6   :  { %3579 = vrcp.f32 %v2253_v62  ;;  %v1927_v62 = vadd.f32 %v4543_v58, %v4573_v24 }
0x1bd0   :  { %v3580_v4 = vpop.eup %3579 }
0x1bd1   :  { %v2257_v46 = vmul.f32 %v3580_v4, %v2195_v30 }
0x1c34   :  { %v2260_v59 = vpop.permute.xlu1 %2259 }
0x1c35   :  { %v2262_v60 = vmul.f32 %v3580_v4, %v2260_v59 }
0x1c37   :  { %2264 = vrot.lane.b32.xlu0 %v2262_v60, %s3817_s5 }
0x1ca9   :  { %v2265_v9 = vpop.permute.xlu0 %2264 }
0x1caa   :  { %v2267_v54 = vadd.f32 %v2265_v9, %v2257_v46 }
0x1cac   :  { %3581 = vtanh.f32 %v2267_v54 }
0x1cb6   :  { %v3582_v50 = vpop.eup %3581 }
0x1cb7   :  { %2270 = vrot.lane.b32.xlu1 %v3582_v50, %s3807_s7 }
0x1d29   :  { %v2271_v56 = vpop.permute.xlu1 %2270 }
0x1d2a   :  { %v2273_v0 = vmul.f32 %v3580_v4, %v2271_v56 }
0x1d2c   :  { %v2274_v52 = vpack.c.bf16 %v2273_v0, %v2273_v0 }
0x1d2e   :  { %2276 = vrot.lane.b32.xlu0 %v2274_v52, %s3817_s5 }
0x1da0   :  { %v2277_v48 = vpop.permute.xlu0 %2276 }
0x1da1   :  { %3320 = vmatmul.mubr.msk.bf16.vlgmr.msra.gmra.mrb[52].mxu0 %vm354_vm10, %v2277_v48 }
0x1da2   :  { %3332 = vmatpush3.bf16.msra.mxu0 %v4506_v8  ;;  %3335 = vmatprep.mubr.msk.bf16.mxu0 %vm3816_vm9, %v3815_v14 }
0x1da3   :  { %3333 = vmatprep.subr.bf16.mxu0 %v3815_v14 }
0x1da6   :  { %3334 = vmatpush3.bf16.msra.mxu0 %v4513_v2 }
0x1da7   :  { %3347 = vmatprep.subr.bf16.mxu0 %v3815_v14 }
0x1e74   :  { %v2315_v53 = vpop.f32.mrb[52].mxu0 }
0x1e75   :  { %v2321_v51 = vadd.f32 %v2315_v53, %v1925_v49  ;;  %v3321_v38 = vpop.f32.mrb[53].mxu0 }
0x1e76   :  { %v2318_v57 = vpop.f32.mrb[54].mxu0 }
0x1e77   :  { %3583 = vtanh.f32 %v2321_v51  ;;  %v3322_v55 = vpop.f32.mrb[55].mxu0  ;;  %v2946_v39 = vmul.f32 -1.442695, %v2321_v51 }
0x1e79   :  { %3585 = vpow2.f32 %v2946_v39 }
0x1e81   :  { %v3584_v61 = vpop.eup %3583 }
0x1e82   :  { %2331 = vrot.lane.b32.xlu1 %v3584_v61, %s3807_s7 }
0x1e83   :  { %v3586_v41 = vpop.eup %3585 }
0x1e84   :  { %v2325_v1 = vadd.f32 1.0, %v3586_v41  ;;  %v1928_v41 = vadd.f32 %v4543_v58, %v4577_v7 }
0x1e86   :  { %3587 = vrcp.f32 %v2325_v1 }
0x1e90   :  { %v3588_v63 = vpop.eup %3587 }
0x1e91   :  { %v2329_v13 = vmul.f32 %v3588_v63, %v2267_v54 }
0x1ef4   :  { %v2332_v5 = vpop.permute.xlu1 %2331 }
0x1ef5   :  { %v2334_v6 = vmul.f32 %v3588_v63, %v2332_v5 }
0x1ef7   :  { %2336 = vrot.lane.b32.xlu0 %v2334_v6, %s3817_s5 }
0x1f69   :  { %v2337_v42 = vpop.permute.xlu0 %2336 }
0x1f6a   :  { %v2339_v10 = vadd.f32 %v2337_v42, %v2329_v13 }
0x1f6c   :  { %3589 = vtanh.f32 %v2339_v10 }
0x1f76   :  { %v3590_v26 = vpop.eup %3589 }
0x1f77   :  { %2342 = vrot.lane.b32.xlu1 %v3590_v26, %s3807_s7 }
0x1fe9   :  { %v2343_v12 = vpop.permute.xlu1 %2342 }
0x1fea   :  { %v2345_v11 = vmul.f32 %v3588_v63, %v2343_v12 }
0x1fec   :  { %v2346_v17 = vpack.c.bf16 %v2345_v11, %v2345_v11 }
0x1fee   :  { %2348 = vrot.lane.b32.xlu0 %v2346_v17, %s3817_s5 }
0x2060   :  { %v2349_v19 = vpop.permute.xlu0 %2348 }
0x2061   :  { %3328 = vmatmul.mubr.msk.bf16.vlgmr.msra.gmra.mrb[56].mxu1 %vm354_vm10, %v2349_v19 }
0x2062   :  { %3340 = vmatpush3.bf16.msra.mxu1 %v4506_v8  ;;  %3343 = vmatprep.mubr.msk.bf16.mxu1 %vm3816_vm9, %v3815_v14 }
0x2063   :  { %3341 = vmatprep.subr.bf16.mxu1 %v3815_v14 }
0x2066   :  { %3342 = vmatpush3.bf16.msra.mxu1 %v4513_v2 }
0x2067   :  { %3355 = vmatprep.subr.bf16.mxu1 %v3815_v14 }
0x2134   :  { %v2387_v22 = vpop.f32.mrb[56].mxu1 }
0x2135   :  { %v2393_v30 = vadd.f32 %v2387_v22, %v1926_v21  ;;  %v3329_v23 = vpop.f32.mrb[57].mxu1 }
0x2136   :  { %v2390_v20 = vpop.f32.mrb[58].mxu1 }
0x2137   :  { %3591 = vtanh.f32 %v2393_v30  ;;  %v3330_v25 = vpop.f32.mrb[59].mxu1  ;;  %v2948_v15 = vmul.f32 -1.442695, %v2393_v30 }
0x2138   :  { %v1929_v25 = vadd.f32 %v4571_v36, %v4543_v58 }
0x2139   :  { %3593 = vpow2.f32 %v2948_v15 }
0x2141   :  { %v3592_v27 = vpop.eup %3591 }
0x2142   :  { %2403 = vrot.lane.b32.xlu1 %v3592_v27, %s3807_s7 }
0x2143   :  { %v3594_v47 = vpop.eup %3593 }
0x2144   :  { %v2397_v44 = vadd.f32 1.0, %v3594_v47 }
0x2146   :  { %3595 = vrcp.f32 %v2397_v44 }
0x2150   :  { %v3596_v29 = vpop.eup %3595 }
0x2151   :  { %v2401_v18 = vmul.f32 %v3596_v29, %v2339_v10 }
0x21b4   :  { %v2404_v33 = vpop.permute.xlu1 %2403 }
0x21b5   :  { %v2406_v35 = vmul.f32 %v3596_v29, %v2404_v33 }
0x21b7   :  { %2408 = vrot.lane.b32.xlu0 %v2406_v35, %s3817_s5 }
0x2229   :  { %v2409_v28 = vpop.permute.xlu0 %2408 }
0x222a   :  { %v2411_v3 = vadd.f32 %v2409_v28, %v2401_v18 }
0x222c   :  { %3597 = vtanh.f32 %v2411_v3 }
0x2236   :  { %v3598_v37 = vpop.eup %3597 }
0x2237   :  { %2414 = vrot.lane.b32.xlu1 %v3598_v37, %s3807_s7 }
0x22a9   :  { %v2415_v34 = vpop.permute.xlu1 %2414 }
0x22aa   :  { %v2417_v43 = vmul.f32 %v3596_v29, %v2415_v34 }
0x22ac   :  { %v2418_v40 = vpack.c.bf16 %v2417_v43, %v2417_v43  ;;  %v2936_v43 = vld [vmem:[#allocation12] ss:$0 sm:$0xff] }
0x22ae   :  { %2420 = vrot.lane.b32.xlu0 %v2418_v40, %s3817_s5 }
0x2320   :  { %v2421_v45 = vpop.permute.xlu0 %2420 }
0x2321   :  { %3336 = vmatmul.mubr.msk.bf16.vlgmr.msra.gmra.mrb[56].mxu0 %vm354_vm10, %v2421_v45 }
0x2322   :  { %3348 = vmatpush3.bf16.msra.mxu0 %v4506_v8  ;;  %3351 = vmatprep.mubr.msk.bf16.mxu0 %vm3816_vm9, %v3815_v14 }
0x2323   :  { %3349 = vmatprep.subr.bf16.mxu0 %v3815_v14 }
0x2326   :  { %3350 = vmatpush3.bf16.msra.mxu0 %v4513_v2 }
0x2327   :  { %3363 = vmatprep.subr.bf16.mxu0 %v3815_v14 }
0x23f4   :  { %v2459_v4 = vpop.f32.mrb[56].mxu0 }
0x23f5   :  { %v2465_v59 = vadd.f32 %v2459_v4, %v1927_v62  ;;  %v3337_v60 = vpop.f32.mrb[57].mxu0  ;;  %v3379_v62 = vadd.f32 %v2936_v43, %v4541_v32 }
0x23f6   :  { %v2462_v46 = vpop.f32.mrb[58].mxu0 }
0x23f7   :  { %3599 = vtanh.f32 %v2465_v59  ;;  %v3338_v9 = vpop.f32.mrb[59].mxu0  ;;  %v2950_v50 = vmul.f32 -1.442695, %v2465_v59  ;;  %v2939_v60 = vmul.f32 -1.442695, %v3379_v62 }
0x23f9   :  { %3601 = vpow2.f32 %v2950_v50 }
0x2401   :  { %v3600_v54 = vpop.eup %3599 }
0x2402   :  { %2475 = vrot.lane.b32.xlu1 %v3600_v54, %s3807_s7 }
0x2403   :  { %v3602_v56 = vpop.eup %3601 }
0x2404   :  { %v2469_v0 = vadd.f32 1.0, %v3602_v56 }
0x2406   :  { %3603 = vrcp.f32 %v2469_v0 }
0x2410   :  { %v3604_v52 = vpop.eup %3603 }
0x2411   :  { %v2473_v24 = vmul.f32 %v3604_v52, %v2411_v3 }
0x2474   :  { %v2476_v48 = vpop.permute.xlu1 %2475 }
0x2475   :  { %v2478_v49 = vmul.f32 %v3604_v52, %v2476_v48 }
0x2477   :  { %2480 = vrot.lane.b32.xlu0 %v2478_v49, %s3817_s5 }
0x24e9   :  { %v2481_v53 = vpop.permute.xlu0 %2480 }
0x24ea   :  { %v2483_v51 = vadd.f32 %v2481_v53, %v2473_v24 }
0x24ec   :  { %3605 = vtanh.f32 %v2483_v51 }
0x24f6   :  { %v3606_v38 = vpop.eup %3605 }
0x24f7   :  { %2486 = vrot.lane.b32.xlu1 %v3606_v38, %s3807_s7  ;;  %v3435_v38 = vld [vmem:[%s4699_s17] sm:$0xff]  }
0x2569   :  { %v2487_v57 = vpop.permute.xlu1 %2486 }
0x256a   :  { %v2489_v55 = vmul.f32 %v3604_v52, %v2487_v57  ;;  %v3436_v57 = vld [vmem:[%s4699_s17 + $0x8] sm:$0xff]  }
0x256c   :  { %v2490_v61 = vpack.c.bf16 %v2489_v55, %v2489_v55 }
0x256e   :  { %2492 = vrot.lane.b32.xlu0 %v2490_v61, %s3817_s5 }
0x25e0   :  { %v2493_v39 = vpop.permute.xlu0 %2492 }
0x25e1   :  { %3344 = vmatmul.mubr.msk.bf16.vlgmr.msra.gmra.mrb[60].mxu1 %vm354_vm10, %v2493_v39 }
0x25e2   :  { %3356 = vmatpush3.bf16.msra.mxu1 %v4506_v8  ;;  %3359 = vmatprep.mubr.msk.bf16.mxu1 %vm3816_vm9, %v3815_v14 }
0x25e3   :  { %3357 = vmatprep.subr.bf16.mxu1 %v3815_v14 }
0x25e6   :  { %3358 = vmatpush3.bf16.msra.mxu1 %v4513_v2 }
0x25e7   :  { %3371 = vmatprep.subr.bf16.mxu1 %v3815_v14 }
0x26b4   :  { %v2531_v1 = vpop.f32.mrb[60].mxu1 }
0x26b5   :  { %v2537_v63 = vadd.f32 %v2531_v1, %v1928_v41  ;;  %v3345_v5 = vpop.f32.mrb[61].mxu1  ;;  %v1930_v41 = vadd.f32 %v4575_v31, %v4543_v58 }
0x26b6   :  { %v2534_v6 = vpop.f32.mrb[62].mxu1 }
0x26b7   :  { %3607 = vtanh.f32 %v2537_v63  ;;  %v3346_v13 = vpop.f32.mrb[63].mxu1  ;;  %v2952_v8 = vmul.f32 -1.442695, %v2537_v63 }
0x26b9   :  { %3609 = vpow2.f32 %v2952_v8 }
0x26c1   :  { %v3608_v42 = vpop.eup %3607 }
0x26c2   :  { %2547 = vrot.lane.b32.xlu1 %v3608_v42, %s3807_s7 }
0x26c3   :  { %v3610_v10 = vpop.eup %3609 }
0x26c4   :  { %v2541_v26 = vadd.f32 1.0, %v3610_v10 }
0x26c6   :  { %3611 = vrcp.f32 %v2541_v26 }
0x26d0   :  { %v3612_v2 = vpop.eup %3611 }
0x26d1   :  { %v2545_v7 = vmul.f32 %v3612_v2, %v2483_v51 }
0x2734   :  { %v2548_v12 = vpop.permute.xlu1 %2547 }
0x2735   :  { %v2550_v11 = vmul.f32 %v3612_v2, %v2548_v12 }
0x2737   :  { %2552 = vrot.lane.b32.xlu0 %v2550_v11, %s3817_s5 }
0x27a9   :  { %v2553_v17 = vpop.permute.xlu0 %2552 }
0x27aa   :  { %v2555_v19 = vadd.f32 %v2553_v17, %v2545_v7 }
0x27ac   :  { %3613 = vtanh.f32 %v2555_v19 }
0x27b6   :  { %v3614_v21 = vpop.eup %3613 }
0x27b7   :  { %2558 = vrot.lane.b32.xlu1 %v3614_v21, %s3807_s7 }
0x2829   :  { %v2559_v22 = vpop.permute.xlu1 %2558 }
0x282a   :  { %v2561_v30 = vmul.f32 %v3612_v2, %v2559_v22  ;;  %v3437_v22 = vld [vmem:[%s4698_s16] sm:$0xff]  }
0x282c   :  { %v2562_v23 = vpack.c.bf16 %v2561_v30, %v2561_v30 }
0x282e   :  { %2564 = vrot.lane.b32.xlu0 %v2562_v23, %s3817_s5 }
0x28a0   :  { %v2565_v20 = vpop.permute.xlu0 %2564 }
0x28a1   :  { %3352 = vmatmul.mubr.msk.bf16.vlgmr.msra.gmra.mrb[60].mxu0 %vm354_vm10, %v2565_v20  ;;  %v3438_v20 = vld [vmem:[%s4698_s16 + $0x8] sm:$0xff]  }
0x28a2   :  { %3367 = vmatprep.mubr.msk.bf16.mxu0 %vm3816_vm9, %v3815_v14  ;;  %3364 = vmatpush3.bf16.msra.mxu0 %v3435_v38 }
0x28a3   :  { %3365 = vmatprep.subr.bf16.mxu0 %v3815_v14 }
0x28a6   :  { %3366 = vmatpush3.bf16.msra.mxu0 %v3436_v57 }
0x2974   :  { %v2603_v27 = vpop.f32.mrb[60].mxu0 }
0x2975   :  { %v2609_v15 = vadd.f32 %v2603_v27, %v1929_v25  ;;  %v3353_v47 = vpop.f32.mrb[61].mxu0 }
0x2976   :  { %v2606_v44 = vpop.f32.mrb[62].mxu0 }
0x2977   :  { %3615 = vtanh.f32 %v2609_v15  ;;  %v3354_v29 = vpop.f32.mrb[63].mxu0  ;;  %v2954_v35 = vmul.f32 -1.442695, %v2609_v15 }
0x2979   :  { %3617 = vpow2.f32 %v2954_v35 }
0x2981   :  { %v3616_v33 = vpop.eup %3615 }
0x2982   :  { %2619 = vrot.lane.b32.xlu1 %v3616_v33, %s3807_s7  ;;  %v2963_v33 = vld [vmem:[%s4700_s18] ss:$0 sm:$0xff] }
0x2983   :  { %v3618_v18 = vpop.eup %3617 }
0x2984   :  { %v2613_v28 = vadd.f32 1.0, %v3618_v18 }
0x2986   :  { %3619 = vrcp.f32 %v2613_v28 }
0x2990   :  { %v3620_v3 = vpop.eup %3619 }
0x2991   :  { %v2617_v36 = vmul.f32 %v3620_v3, %v2555_v19 }
0x29f4   :  { %v2620_v37 = vpop.permute.xlu1 %2619 }
0x29f5   :  { %v2622_v34 = vmul.f32 %v3620_v3, %v2620_v37 }
0x29f7   :  { %2624 = vrot.lane.b32.xlu0 %v2622_v34, %s3817_s5 }
0x2a69   :  { %v2625_v40 = vpop.permute.xlu0 %2624 }
0x2a6a   :  { %v2627_v45 = vadd.f32 %v2625_v40, %v2617_v36 }
0x2a6c   :  { %3621 = vtanh.f32 %v2627_v45 }
0x2a6d   :  { %3623 = vtanh.f32 %v3379_v62 }
0x2a6e   :  { %3625 = vpow2.f32 %v2939_v60 }
0x2a76   :  { %v3622_v4 = vpop.eup %3621 }
0x2a77   :  { %2630 = vrot.lane.b32.xlu1 %v3622_v4, %s3807_s7  ;;  %v3624_v59 = vpop.eup %3623 }
0x2a78   :  { %v3626_v46 = vpop.eup %3625 }
0x2a79   :  { %v2104_v9 = vadd.f32 1.0, %v3626_v46 }
0x2a7b   :  { %2110 = vrot.lane.b32.xlu1 %v3624_v59, %s3807_s7  ;;  %3627 = vrcp.f32 %v2104_v9 }
0x2a85   :  { %v3628_v0 = vpop.eup %3627 }
0x2a86   :  { %v2108_v49 = vmul.f32 0.0, %v3628_v0 }
0x2ae9   :  { %v2631_v54 = vpop.permute.xlu1 %2630 }
0x2aea   :  { %v2633_v50 = vmul.f32 %v3620_v3, %v2631_v54 }
0x2aec   :  { %v2634_v56 = vpack.c.bf16 %v2633_v50, %v2633_v50 }
0x2aed   :  { %v2111_v52 = vpop.permute.xlu1 %2110 }
0x2aee   :  { %v2113_v48 = vmul.f32 %v3628_v0, %v2111_v52  ;;  %2636 = vrot.lane.b32.xlu0 %v2634_v56, %s3817_s5 }
0x2af0   :  { %2115 = vrot.lane.b32.xlu1 %v2113_v48, %s3817_s5 }
0x2b60   :  { %v2637_v32 = vpop.permute.xlu0 %2636 }
0x2b61   :  { %3360 = vmatmul.mubr.msk.bf16.vlgmr.msra.gmra.mrb[64].mxu1 %vm354_vm10, %v2637_v32 }
0x2b62   :  { %v2116_v24 = vpop.permute.xlu1 %2115  ;;  %3375 = vmatprep.mubr.msk.bf16.mxu1 %vm3816_vm9, %v3815_v14  ;;  %3372 = vmatpush3.bf16.msra.mxu1 %v3437_v22 }
0x2b63   :  { %v2118_v53 = vadd.f32 %v2116_v24, %v2108_v49  ;;  %3373 = vmatprep.subr.bf16.mxu1 %v3815_v14 }
0x2b65   :  { %3629 = vtanh.f32 %v2118_v53 }
0x2b66   :  { %3374 = vmatpush3.bf16.msra.mxu1 %v3438_v20 }
0x2b6f   :  { %v3630_v51 = vpop.eup %3629 }
0x2b70   :  { %2121 = vrot.lane.b32.xlu1 %v3630_v51, %s3807_s7 }
0x2be2   :  { %v2122_v55 = vpop.permute.xlu1 %2121 }
0x2be3   :  { %v2124_v61 = vmul.f32 %v3628_v0, %v2122_v55 }
0x2be5   :  { %v2711_v39 = vpack.c.bf16 %v2124_v61, %v2124_v61 }
0x2be7   :  { %2717 = vrot.lane.b32.xlu1 %v2711_v39, %s3817_s5 }
0x2c34   :  { %v2675_v1 = vpop.f32.mrb[64].mxu1 }
0x2c35   :  { %v2681_v63 = vadd.f32 %v2675_v1, %v1930_v41  ;;  %v3361_v5 = vpop.f32.mrb[65].mxu1 }
0x2c36   :  { %v2678_v6 = vpop.f32.mrb[66].mxu1 }
0x2c37   :  { %3631 = vtanh.f32 %v2681_v63  ;;  %v3362_v13 = vpop.f32.mrb[67].mxu1  ;;  %v2956_v10 = vmul.f32 -1.442695, %v2681_v63 }
0x2c39   :  { %3633 = vpow2.f32 %v2956_v10 }
0x2c41   :  { %v3632_v42 = vpop.eup %3631 }
0x2c42   :  { %2691 = vrot.lane.b32.xlu0 %v3632_v42, %s3807_s7 }
0x2c43   :  { %v3634_v26 = vpop.eup %3633 }
0x2c44   :  { %v2685_v2 = vadd.f32 1.0, %v3634_v26 }
0x2c46   :  { %3635 = vrcp.f32 %v2685_v2 }
0x2c50   :  { %v3636_v12 = vpop.eup %3635 }
0x2c51   :  { %v2689_v31 = vmul.f32 %v3636_v12, %v2627_v45 }
0x2c59   :  { %v2718_v8 = vpop.permute.xlu1 %2717 }
0x2c5a   :  { %3368 = vmatmul.mubr.msk.bf16.vlgmr.msra.gmra.mrb[64].mxu0 %vm354_vm10, %v2718_v8 }
0x2cb4   :  { %v2692_v11 = vpop.permute.xlu0 %2691 }
0x2cb5   :  { %v2694_v58 = vmul.f32 %v3636_v12, %v2692_v11 }
0x2cb7   :  { %2696 = vrot.lane.b32.xlu0 %v2694_v58, %s3817_s5 }
0x2d29   :  { %v2697_v7 = vpop.permute.xlu0 %2696 }
0x2d2a   :  { %v2699_v17 = vadd.f32 %v2697_v7, %v2689_v31 }
0x2d2c   :  { %3637 = vtanh.f32 %v2699_v17 }
0x2d2d   :  { %v2768_v19 = vpop.f32.mrb[64].mxu0 }
0x2d2e   :  { %v3369_v21 = vpop.f32.mrb[65].mxu0 }
0x2d2f   :  { %v2771_v30 = vpop.f32.mrb[66].mxu0 }
0x2d30   :  { %v3370_v23 = vpop.f32.mrb[67].mxu0 }
0x2d36   :  { %v3638_v25 = vpop.eup %3637 }
0x2d37   :  { %2702 = vrot.lane.b32.xlu0 %v3638_v25, %s3807_s7 }
0x2da9   :  { %v2703_v27 = vpop.permute.xlu0 %2702 }
0x2daa   :  { %v2705_v15 = vmul.f32 %v3636_v12, %v2703_v27 }
0x2dac   :  { %v2706_v47 = vpack.c.bf16 %v2705_v15, %v2705_v15 }
0x2dae   :  { %2775 = vrot.lane.b32.xlu0 %v2706_v47, %s3817_s5 }
0x2e20   :  { %v2776_v44 = vpop.permute.xlu0 %2775 }
0x2e21   :  { %3376 = vmatmul.mubr.msk.bf16.vlgmr.msra.gmra.mrb[68].mxu1 %vm354_vm10, %v2776_v44 }
0x2ef4   :  { %v2826_v29 = vpop.f32.mrb[68].mxu1 }
0x2ef5   :  { %v2827_v35 = vadd.f32 %v2826_v29, %v2768_v19  ;;  %v3377_v18 = vpop.f32.mrb[69].mxu1 }
0x2ef6   :  { %v2829_v14 = vpop.f32.mrb[70].mxu1 }
0x2ef7   :  { %v2839_v28 = vadd.f32 %v2963_v33, %v2827_v35  ;;  %v3378_v3 = vpop.f32.mrb[71].mxu1 }
0x2ef9   :  { %v2841_v37 = vsel %vm2840_vm11, %v2839_v28, -1e+30 }
0x2efa   :  { %2842 = vmax.xlane.f32.xlu1 %v2841_v37 }
0x2f87   :  { %v2843_v34 = vpop.xlane.xlu1 %2842 }
0x2f88   :  { %v2844_v36 = vsub.f32 %v2841_v37, %v2843_v34 }
0x2f8a   :  { %v2845_v43 = vmul.f32 1.442695, %v2844_v36 }
0x2f8c   :  { %3639 = vpow2.f32 %v2845_v43 }
0x2f96   :  { %v3640_v40 = vpop.eup %3639 }
0x2f97   :  { %2847 = vadd.xlane.f32.xlu0 %v3640_v40 }
0x3024   :  { %v2848_v45 = vpop.xlane.xlu0 %2847 }
0x3025   :  { %3641 = vlog2.f32 %v2848_v45 }
0x302f   :  { %v3642_v62 = vpop.eup %3641 }
0x3030   :  { %v2850_v4 = vmul.f32 0.6931472, %v3642_v62 }
0x3032   :  { %v2851_v59 = vsub.f32 %v2844_v36, %v2850_v4 }
0x3034   :  { %2852 = vst [vmem:[%s4701_s19] sm:$0xff] %v2851_v59 }
0x3035   :  { %2857 = vsyncpa [#allocation3], 1 }
0x3036   :  { %2858 = vsyncpa [#allocation5], 1 }
0x3037   :  { %2859 = vsyncpa [#allocation8], 1 }
0x3038   :  { %2860 = vsyncpa [#allocation11], 1 }

</bundles_post_ra>
